<compile_context>
chip_gen: v5e
topology: v5e:2x2
jax: 0.10.0
libtpu: 0.0.40
codegen_flags: <defaults>
</compile_context>

<pallas_src>
from functools import partial

import jax
import jax.numpy as jnp
from jax.experimental import pallas as pl
from jax.experimental.pallas import tpu as pltpu


LN_EPS = 1e-5  # torch.nn.LayerNorm default


def _default_vmem_limit():
    """Per-generation VMEM budget (3/4 of physical capacity; conservative fallback)."""
    try:
        cap = pltpu.get_tpu_info().vmem_capacity_bytes
        return int(min(cap, 128 * 1024 * 1024) * 3 // 4)
    except Exception:
        return 48 * 1024 * 1024


VMEM_LIMIT = _default_vmem_limit()


# --------------------------------------------------------------------------
# Helpers
# --------------------------------------------------------------------------
def _round_up(x, m):
    return (x + m - 1) // m * m


def _pick_tile(dim, target, align):
    """Largest tile <= target that divides dim and is `align`-aligned, else dim."""
    if dim <= target:
        return dim
    t = (target // align) * align
    while t >= align:
        if dim % t == 0:
            return t
        t -= align
    return dim


def _pick_head_group(num_heads, head_dim, seq_len):
    """Largest divisor G of num_heads with a 128-lane-aligned group width and a
    bounded (G, N, N) f32 score block."""
    valid = [g for g in range(1, num_heads + 1)
             if num_heads % g == 0 and (g * head_dim) % 128 == 0]
    if not valid:
        return None
    budget = 6 * 1024 * 1024                      # f32 scores per grid step
    fitting = [g for g in valid if g * seq_len * seq_len * 4 <= budget]
    return max(fitting) if fitting else min(valid)


def _erf_approx(x):
    """Abramowitz & Stegun 7.1.26 erf approximation (max abs err 1.5e-7)."""
    p = 0.3275911
    a1, a2, a3, a4, a5 = (0.254829592, -0.284496736, 1.421413741,
                          -1.453152027, 1.061405429)
    ax = jnp.abs(x)
    t = 1.0 / (1.0 + p * ax)
    poly = ((((a5 * t + a4) * t + a3) * t + a2) * t + a1) * t
    e = 1.0 - poly * jnp.exp(-ax * ax)
    return jnp.where(x >= 0, e, -e)


def _gelu_exact(x):
    # exact (erf-based) GELU, matching torch nn.GELU(approximate='none'); f32 math
    return 0.5 * x * (1.0 + _erf_approx(x * 0.7071067811865476))


# --------------------------------------------------------------------------
# Fused linear kernel:  [LayerNorm] -> x @ w + b -> [GELU] -> [res + g * (.)]
# --------------------------------------------------------------------------
def _make_linear_kernel(fuse_ln, activation, fuse_residual, eps, ln_scratch):
    def kernel(*refs):
        it = iter(refs)
        x_ref = next(it)
        if fuse_ln:
            lng_ref = next(it)
            lnb_ref = next(it)
        w_ref = next(it)
        b_ref = next(it)
        if fuse_residual:
            scale_ref = next(it)
            res_ref = next(it)
        o_ref = next(it)
        xn_ref = next(it) if ln_scratch else None

        def layernorm():
            xf = x_ref[...].astype(jnp.float32)
            mu = jnp.mean(xf, axis=-1, keepdims=True)
            xc = xf - mu
            var = jnp.mean(xc * xc, axis=-1, keepdims=True)
            xf = xc * jax.lax.rsqrt(var + eps)
            xf = (xf * lng_ref[...].astype(jnp.float32)
                  + lnb_ref[...].astype(jnp.float32))
            return xf.astype(x_ref.dtype)          # MXU input dtype (bf16 on v6e/v7x)

        if fuse_ln and ln_scratch:
            # column-tiled fallback: compute LN once per row tile (j == 0) into a
            # VMEM scratch and reuse it across all output-column tiles.
            @pl.when(pl.program_id(1) == 0)
            def _():
                xn_ref[...] = layernorm()
            x = xn_ref[...]
        elif fuse_ln:
            x = layernorm()
        else:
            x = x_ref[...]

        acc = jnp.dot(x, w_ref[...], preferred_element_type=jnp.float32)
        acc = acc + b_ref[...].astype(jnp.float32)
        if activation == "gelu":
            acc = _gelu_exact(acc)
        if fuse_residual:
            acc = (res_ref[...].astype(jnp.float32)
                   + scale_ref[...].astype(jnp.float32) * acc)
        o_ref[...] = acc.astype(o_ref.dtype)

    return kernel


def fused_linear(x2d, w, b, *, ln_scale=None, ln_bias=None, activation=None,
                 out_scale=None, residual=None, eps=LN_EPS,
                 tm_target=512, tn_target=1024):
    """x2d: (M, K); w: (K, Nout) [pre-transposed]; b: (Nout,)."""
    M, K = x2d.shape
    Kw, Nout = w.shape
    assert K == Kw
    fuse_ln = ln_scale is not None
    fuse_res = residual is not None
    assert (out_scale is None) == (residual is None)

    itemsize = x2d.dtype.itemsize

    # ---- row tiling: pad M instead of ever falling back to a monolithic block
    tm_cap = max(8, ((VMEM_LIMIT // 8) // max(1, (K + Nout) * itemsize)) // 8 * 8)
    tm = min(tm_target, tm_cap, _round_up(M, 8))
    Mp = _round_up(M, tm)
    if Mp != M:
        x2d = jnp.pad(x2d, ((0, Mp - M), (0, 0)))
        if fuse_res:
            residual = jnp.pad(residual, ((0, Mp - M), (0, 0)))

    # ---- column tiling: keep the whole weight VMEM-resident when it fits, so
    # it is DMA'd once per call (constant block index) instead of per row tile.
    w_bytes = K * Nout * w.dtype.itemsize
    if w_bytes <= VMEM_LIMIT // 3:
        tn = Nout
    else:
        tn_cap = max(128, ((VMEM_LIMIT // 6) // max(1, K * itemsize)) // 128 * 128)
        tn = _pick_tile(Nout, min(tn_target, tn_cap), 128)
    n_col = Nout // tn
    ln_scratch = fuse_ln and n_col > 1
    grid = (Mp // tm, n_col)

    operands = [x2d]
    in_specs = [pl.BlockSpec((tm, K), lambda i, j: (i, 0))]
    if fuse_ln:
        operands += [ln_scale.reshape(1, K), ln_bias.reshape(1, K)]
        in_specs += [pl.BlockSpec((1, K), lambda i, j: (0, 0)),
                     pl.BlockSpec((1, K), lambda i, j: (0, 0))]
    operands += [w, b.reshape(1, Nout)]
    in_specs += [pl.BlockSpec((K, tn), lambda i, j: (0, j)),
                 pl.BlockSpec((1, tn), lambda i, j: (0, j))]
    if fuse_res:
        operands += [out_scale.reshape(1, Nout), residual]
        in_specs += [pl.BlockSpec((1, tn), lambda i, j: (0, j)),
                     pl.BlockSpec((tm, tn), lambda i, j: (i, j))]

    cost = pl.CostEstimate(
        flops=int(2 * M * K * Nout),
        transcendentals=int(M * Nout if activation == "gelu" else 0),
        bytes_accessed=int(itemsize * (M * K + K * Nout + M * Nout
                                       + (M * Nout if fuse_res else 0))))

    out = pl.pallas_call(
        _make_linear_kernel(fuse_ln, activation, fuse_res, eps, ln_scratch),
        out_shape=jax.ShapeDtypeStruct((Mp, Nout), x2d.dtype),
        grid=grid,
        in_specs=in_specs,
        out_specs=pl.BlockSpec((tm, tn), lambda i, j: (i, j)),
        scratch_shapes=([pltpu.VMEM((tm, K), x2d.dtype)] if ln_scratch else []),
        compiler_params=pltpu.CompilerParams(
            dimension_semantics=("parallel",
                                 "arbitrary" if ln_scratch else "parallel"),
            vmem_limit_bytes=VMEM_LIMIT),
        cost_estimate=cost,
    )(*operands)
    return out[:M] if Mp != M else out


# --------------------------------------------------------------------------
# Attention core kernel: one (batch, head-group) per grid step
# --------------------------------------------------------------------------
def _attn_kernel(q_ref, k_ref, v_ref, rpb_ref, mask_ref, o_ref, *,
                 group, head_dim, scale):
    """q/k/v refs: (1, N, G*hd) in the native activation dtype; rpb: (G, N, N)
    f32; mask: (1, 1, N) f32; out: (1, N, G*hd)."""
    G, hd = group, head_dim

    def split_heads(ref):
        slab = ref[0]                                                  # (N, G*hd)
        return jnp.stack([slab[:, g * hd:(g + 1) * hd] for g in range(G)], axis=0)

    q = split_heads(q_ref)                                             # (G, N, hd)
    k = split_heads(k_ref)
    v = split_heads(v_ref)

    # bf16-in / f32-acc on the MXU; softmax scale folded into the f32 scores.
    s = jnp.einsum("gqd,gkd->gqk", q, k,
                   preferred_element_type=jnp.float32)                 # (G, N, N)
    s = s * scale + rpb_ref[...].astype(jnp.float32)
    m = mask_ref[0]                                                    # (1, N)
    # large finite negative (not -inf): fully-masked rows stay NaN-free
    s = jnp.where(m[:, None, :] > 0, s, -1e30)

    s_max = jnp.max(s, axis=-1, keepdims=True)
    p = jnp.exp(s - s_max)
    p = p * pl.reciprocal(jnp.sum(p, axis=-1, keepdims=True), approx=True)

    ctx = jnp.einsum("gqk,gkd->gqd", p.astype(v.dtype), v,
                     preferred_element_type=jnp.float32)               # (G, N, hd)
    # single lane-dense (N, G*hd) store, already in (B, N, C) column order
    o_ref[0] = jnp.concatenate([ctx[g] for g in range(G)], axis=-1).astype(o_ref.dtype)


def pallas_attention_core(qkv, rpb, mask, num_heads, head_dim, scale):
    """qkv: (B, N, 3C); rpb: (H, N, N); mask: (B, N) -> ctx (B, N, C)."""
    B, N, _ = qkv.shape
    C = num_heads * head_dim
    H = num_heads
    G = _pick_head_group(H, head_dim, N)
    assert G is not None, (
        "need some divisor g of num_heads with (g * head_dim) % 128 == 0 "
        "for lane-aligned head grouping")
    Dg = G * head_dim
    HG = H // G

    mask3 = mask.reshape(B, 1, N).astype(jnp.float32)
    rpb = rpb.astype(jnp.float32)

    cost = pl.CostEstimate(
        flops=int(4 * B * H * N * N * head_dim),
        transcendentals=int(B * H * N * N),
        bytes_accessed=int(qkv.dtype.itemsize * (3 * B * N * C + B * N * C)
                           + 4 * (B * H * N * N + B * N)))

    return pl.pallas_call(
        partial(_attn_kernel, group=G, head_dim=head_dim, scale=scale),
        out_shape=jax.ShapeDtypeStruct((B, N, C), qkv.dtype),
        grid=(B, HG),
        in_specs=[
            # q / k / v head-group column slices pulled straight from qkv
            pl.BlockSpec((1, N, Dg), lambda b, g: (b, 0, g)),
            pl.BlockSpec((1, N, Dg), lambda b, g: (b, 0, HG + g)),
            pl.BlockSpec((1, N, Dg), lambda b, g: (b, 0, 2 * HG + g)),
            pl.BlockSpec((G, N, N), lambda b, g: (g, 0, 0)),      # rpb per group
            pl.BlockSpec((1, 1, N), lambda b, g: (b, 0, 0)),      # key mask
        ],
        out_specs=pl.BlockSpec((1, N, Dg), lambda b, g: (b, 0, g)),
        compiler_params=pltpu.CompilerParams(
            dimension_semantics=("parallel", "parallel"),
            vmem_limit_bytes=VMEM_LIMIT),
        cost_estimate=cost,
    )(qkv, qkv, qkv, rpb, mask3)


# --------------------------------------------------------------------------
# Parameter preparation (outside jit): pre-transpose weights, build qkv bias
# --------------------------------------------------------------------------
def _prep_attn(p):
    w_qkv = p["w_qkv"]
    threeC = w_qkv.shape[0]
    if p.get("q_bias") is not None:
        qkv_b = jnp.concatenate([p["q_bias"],
                                 jnp.zeros_like(p["v_bias"]),
                                 p["v_bias"]])
    else:
        qkv_b = jnp.zeros((threeC,), w_qkv.dtype)
    return {"w_qkv_t": w_qkv.T, "qkv_b": qkv_b,
            "w_proj_t": p["w_proj"].T, "b_proj": p["b_proj"]}


def _prep_mlp(p):
    return {"w1_t": p["w1"].T, "b1": p["b1"], "w2_t": p["w2"].T, "b2": p["b2"]}


def prepare_params(params):
    """One-time (non-jit) re-layout of PyTorch (out,in) weights to (in,out)."""
    out = dict(params)
    out["attn_imag"] = _prep_attn(params["attn_imag"])
    out["attn_text"] = _prep_attn(params["attn_text"])
    out["mlp_imag"] = _prep_mlp(params["mlp_imag"])
    out["mlp_text"] = _prep_mlp(params["mlp_text"])
    return out


# --------------------------------------------------------------------------
# SeparateBlock forward (Pallas)
# --------------------------------------------------------------------------
def _attention_branch(x, attn_p, ln_g, ln_b, gamma_1, num_heads, mask, rpb):
    B, N, C = x.shape
    head_dim = C // num_heads
    scale = head_dim ** (-0.5)
    x2d = x.reshape(B * N, C)

    # norm1 + qkv projection fused into one pallas_call
    qkv = fused_linear(x2d, attn_p["w_qkv_t"], attn_p["qkv_b"],
                       ln_scale=ln_g, ln_bias=ln_b)
    ctx = pallas_attention_core(qkv.reshape(B, N, 3 * C), rpb, mask,
                                num_heads, head_dim, scale)
    # proj + gamma_1 * (.) + residual fused into one pallas_call
    out = fused_linear(ctx.reshape(B * N, C), attn_p["w_proj_t"], attn_p["b_proj"],
                       out_scale=gamma_1, residual=x2d)
    return out.reshape(B, N, C)


def _mlp_branch(x, mlp_p, ln_g, ln_b, gamma_2):
    B, N, C = x.shape
    x2d = x.reshape(B * N, C)
    h = fused_linear(x2d, mlp_p["w1_t"], mlp_p["b1"],
                     ln_scale=ln_g, ln_bias=ln_b, activation="gelu")
    out = fused_linear(h, mlp_p["w2_t"], mlp_p["b2"],
                       out_scale=gamma_2, residual=x2d)
    return out.reshape(B, N, C)


@partial(jax.jit, static_argnames=("num_heads", "max_text_len", "modality_type"))
def separate_block_forward(x, params, num_heads, max_text_len,
                           modality_type=None, mask=None,
                           relative_position_bias=None):
    B, N, C = x.shape
    if mask is None:
        mask = jnp.ones((B, N), jnp.float32)
    if relative_position_bias is None:
        relative_position_bias = jnp.zeros((num_heads, N, N), jnp.float32)

    if modality_type == "image":
        x = _attention_branch(x, params["attn_imag"], params["ln1_g"], params["ln1_b"],
                              params["gamma_1"], num_heads, mask, relative_position_bias)
        x = _mlp_branch(x, params["mlp_imag"], params["ln2_imag_g"],
                        params["ln2_imag_b"], params["gamma_2"])
    elif modality_type == "text":
        x = _attention_branch(x, params["attn_text"], params["ln1_g"], params["ln1_b"],
                              params["gamma_1"], num_heads, mask, relative_position_bias)
        x = _mlp_branch(x, params["mlp_text"], params["ln2_text_g"],
                        params["ln2_text_b"], params["gamma_2"])
    else:
        # with_vlffn=False path: modality-split MLPs only (no attention)
        x_text = x[:, :max_text_len]
        x_imag = x[:, max_text_len:]
        x_text = _mlp_branch(x_text, params["mlp_text"], params["ln2_text_g"],
                             params["ln2_text_b"], params["gamma_2"])
        x_imag = _mlp_branch(x_imag, params["mlp_imag"], params["ln2_imag_g"],
                             params["ln2_imag_b"], params["gamma_2"])
        x = jnp.concatenate([x_text, x_imag], axis=1)
    return x


# --------------------------------------------------------------------------
# Pure-JAX reference (mirrors the PyTorch forward) for verification
# --------------------------------------------------------------------------
def _ref_layernorm(x, g, b, eps=LN_EPS):
    mu = jnp.mean(x, axis=-1, keepdims=True)
    var = jnp.mean((x - mu) ** 2, axis=-1, keepdims=True)
    return (x - mu) * jax.lax.rsqrt(var + eps) * g + b


def _ref_attention(x, p, num_heads, mask, rpb):
    B, N, C = x.shape
    hd = C // num_heads
    scale = hd ** (-0.5)
    qkv_b = jnp.concatenate([p["q_bias"], jnp.zeros_like(p["v_bias"]), p["v_bias"]])
    qkv = x @ p["w_qkv"].T + qkv_b
    qkv = qkv.reshape(B, N, 3, num_heads, hd).transpose(2, 0, 3, 1, 4)
    q, k, v = qkv[0] * scale, qkv[1], qkv[2]
    attn = jnp.einsum("bhqd,bhkd->bhqk",
                      q.astype(jnp.float32), k.astype(jnp.float32))
    attn = attn + rpb[None].astype(jnp.float32)
    attn = jnp.where(mask[:, None, None, :] > 0, attn, -jnp.inf)
    attn = jax.nn.softmax(attn, axis=-1).astype(x.dtype)
    out = jnp.einsum("bhqk,bhkd->bhqd", attn, v)
    out = out.transpose(0, 2, 1, 3).reshape(B, N, C)
    return out @ p["w_proj"].T + p["b_proj"]


def _ref_mlp(x, p):
    h = x @ p["w1"].T + p["b1"]
    h = jax.nn.gelu(h, approximate=False)
    return h @ p["w2"].T + p["b2"]


def reference_forward(x, params, num_heads, max_text_len, modality_type, mask, rpb):
    if modality_type == "image":
        x = x + params["gamma_1"] * _ref_attention(
            _ref_layernorm(x, params["ln1_g"], params["ln1_b"]),
            params["attn_imag"], num_heads, mask, rpb)
        x = x + params["gamma_2"] * _ref_mlp(
            _ref_layernorm(x, params["ln2_imag_g"], params["ln2_imag_b"]),
            params["mlp_imag"])
    elif modality_type == "text":
        x = x + params["gamma_1"] * _ref_attention(
            _ref_layernorm(x, params["ln1_g"], params["ln1_b"]),
            params["attn_text"], num_heads, mask, rpb)
        x = x + params["gamma_2"] * _ref_mlp(
            _ref_layernorm(x, params["ln2_text_g"], params["ln2_text_b"]),
            params["mlp_text"])
    else:
        x_text = x[:, :max_text_len]
        x_imag = x[:, max_text_len:]
        x_text = x_text + params["gamma_2"] * _ref_mlp(
            _ref_layernorm(x_text, params["ln2_text_g"], params["ln2_text_b"]),
            params["mlp_text"])
        x_imag = x_imag + params["gamma_2"] * _ref_mlp(
            _ref_layernorm(x_imag, params["ln2_imag_g"], params["ln2_imag_b"]),
            params["mlp_imag"])
        x = jnp.concatenate([x_text, x_imag], axis=1)
    return x


# --------------------------------------------------------------------------
# Main
# --------------------------------------------------------------------------
if __name__ == "__main__":
    B, N, C, H = 2, 16, 128, 4          # head_dim = 32, lane-dense C
    hidden = 4 * C                      # mlp_ratio = 4.0
    max_text_len = 8

    keys = iter(jax.random.split(jax.random.PRNGKey(0), 64))

    def nrm(shape, s=0.05):
        return jax.random.normal(next(keys), shape, jnp.float32) * s

    x = jax.random.normal(next(keys), (B, N, C), jnp.float32)

    def attn_params():
        return {"w_qkv": nrm((3 * C, C)),          # torch layout (out, in)
                "q_bias": nrm((C,)), "v_bias": nrm((C,)),
                "w_proj": nrm((C, C)), "b_proj": nrm((C,))}

    def mlp_params():
        return {"w1": nrm((hidden, C)), "b1": nrm((hidden,)),
                "w2": nrm((C, hidden)), "b2": nrm((C,))}

    params = {
        "ln1_g": 1.0 + nrm((C,), 0.1), "ln1_b": nrm((C,), 0.1),
        "ln2_imag_g": 1.0 + nrm((C,), 0.1), "ln2_imag_b": nrm((C,), 0.1),
        "ln2_text_g": 1.0 + nrm((C,), 0.1), "ln2_text_b": nrm((C,), 0.1),
        "gamma_1": 0.1 * jnp.ones((C,), jnp.float32),
        "gamma_2": 0.1 * jnp.ones((C,), jnp.float32),
        "attn_imag": attn_params(), "attn_text": attn_params(),
        "mlp_imag": mlp_params(), "mlp_text": mlp_params(),
    }
    pparams = prepare_params(params)    # one-time weight re-layout, outside jit

    rpb = nrm((H, N, N), 0.1)
    mask = jnp.ones((B, N), jnp.float32).at[1, -3:].set(0.0)   # mask 3 keys in batch 1

    # f32 correctness for all three forward branches
    for modality in ("image", "text", None):
        out = separate_block_forward(x, pparams, num_heads=H,
                                     max_text_len=max_text_len,
                                     modality_type=modality, mask=mask,
                                     relative_position_bias=rpb)
        out = jax.block_until_ready(out)
        with jax.default_matmul_precision("highest"):
            ref = reference_forward(x, params, H, max_text_len, modality, mask, rpb)
        assert out.shape == x.shape
        assert bool(jnp.allclose(out, ref, atol=2e-3, rtol=2e-3)), \
            f"mismatch vs reference (modality={modality})"

    # non-8-aligned row-count path (exercises the row-padding logic)
    xs = jax.random.normal(next(keys), (20, C), jnp.float32)
    ws, bs = nrm((C, C)), nrm((C,))
    ys = jax.block_until_ready(fused_linear(xs, ws, bs))
    assert bool(jnp.allclose(ys, xs @ ws + bs, atol=2e-3, rtol=2e-3)), \
        "padded-row fused_linear mismatch"

    # bf16 pass: exercises the bf16-MXU (f32-accumulate) path for v6e/v7x
    xb = x.astype(jnp.bfloat16)
    pb = prepare_params(jax.tree_util.tree_map(lambda a: a.astype(jnp.bfloat16), params))
    outb = separate_block_forward(xb, pb, num_heads=H, max_text_len=max_text_len,
                                  modality_type="image", mask=mask,
                                  relative_position_bias=rpb)
    outb = jax.block_until_ready(outb)
    with jax.default_matmul_precision("highest"):
        ref32 = reference_forward(x, params, H, max_text_len, "image", mask, rpb)
    assert bool(jnp.allclose(outb.astype(jnp.float32), ref32, atol=0.1, rtol=0.1)), \
        "bf16 path diverged from f32 reference"

    print("KERNEL_OK")
</pallas_src>

<mosaic_0001>
module attributes {stable_mosaic.version = 11 : i64} {
  func.func @_attn_kernel(%arg0: i32, %arg1: i32, %arg2: memref<1x16x128xf32, #tpu.memory_space<vmem>>, %arg3: memref<1x16x128xf32, #tpu.memory_space<vmem>>, %arg4: memref<1x16x128xf32, #tpu.memory_space<vmem>>, %arg5: memref<4x16x16xf32, #tpu.memory_space<vmem>>, %arg6: memref<1x1x16xf32, #tpu.memory_space<vmem>>, %arg7: memref<1x16x128xf32, #tpu.memory_space<vmem>>) attributes {dimension_semantics = [#tpu.dimension_semantics<parallel>, #tpu.dimension_semantics<parallel>], iteration_bounds = array<i64: 2, 1>, scalar_prefetch = 0 : i64, scratch_operands = 0 : i64, tpu.core_type = #tpu.core_type<tc>, window_params = [{transform_indices = @transform_0, window_bounds = array<i64: 1, 16, 128>}, {transform_indices = @transform_1, window_bounds = array<i64: 1, 16, 128>}, {transform_indices = @transform_2, window_bounds = array<i64: 1, 16, 128>}, {transform_indices = @transform_3, window_bounds = array<i64: 4, 16, 16>}, {transform_indices = @transform_4, window_bounds = array<i64: 1, 1, 16>}, {transform_indices = @transform_5, window_bounds = array<i64: 1, 16, 128>}]} {
    %c0 = arith.constant 0 : index
    %c0_0 = arith.constant 0 : index
    %c0_1 = arith.constant 0 : index
    %0 = vector.load %arg2[%c0, %c0_0, %c0_1] : memref<1x16x128xf32, #tpu.memory_space<vmem>>, vector<1x16x128xf32>
    %1 = vector.shape_cast %0 : vector<1x16x128xf32> to vector<16x128xf32>
    %2 = vector.extract_strided_slice %1 {offsets = [0, 0], sizes = [16, 32], strides = [1, 1]} : vector<16x128xf32> to vector<16x32xf32>
    %3 = vector.extract_strided_slice %1 {offsets = [0, 32], sizes = [16, 32], strides = [1, 1]} : vector<16x128xf32> to vector<16x32xf32>
    %4 = vector.extract_strided_slice %1 {offsets = [0, 64], sizes = [16, 32], strides = [1, 1]} : vector<16x128xf32> to vector<16x32xf32>
    %5 = vector.extract_strided_slice %1 {offsets = [0, 96], sizes = [16, 32], strides = [1, 1]} : vector<16x128xf32> to vector<16x32xf32>
    %6 = vector.shape_cast %2 : vector<16x32xf32> to vector<1x16x32xf32>
    %7 = vector.shape_cast %3 : vector<16x32xf32> to vector<1x16x32xf32>
    %8 = vector.shape_cast %4 : vector<16x32xf32> to vector<1x16x32xf32>
    %9 = vector.shape_cast %5 : vector<16x32xf32> to vector<1x16x32xf32>
    %10 = tpu.concatenate %6, %7, %8, %9 in 0 : vector<1x16x32xf32>, vector<1x16x32xf32>, vector<1x16x32xf32>, vector<1x16x32xf32> -> vector<4x16x32xf32>
    %c0_2 = arith.constant 0 : index
    %c0_3 = arith.constant 0 : index
    %c0_4 = arith.constant 0 : index
    %11 = vector.load %arg3[%c0_2, %c0_3, %c0_4] : memref<1x16x128xf32, #tpu.memory_space<vmem>>, vector<1x16x128xf32>
    %12 = vector.shape_cast %11 : vector<1x16x128xf32> to vector<16x128xf32>
    %13 = vector.extract_strided_slice %12 {offsets = [0, 0], sizes = [16, 32], strides = [1, 1]} : vector<16x128xf32> to vector<16x32xf32>
    %14 = vector.extract_strided_slice %12 {offsets = [0, 32], sizes = [16, 32], strides = [1, 1]} : vector<16x128xf32> to vector<16x32xf32>
    %15 = vector.extract_strided_slice %12 {offsets = [0, 64], sizes = [16, 32], strides = [1, 1]} : vector<16x128xf32> to vector<16x32xf32>
    %16 = vector.extract_strided_slice %12 {offsets = [0, 96], sizes = [16, 32], strides = [1, 1]} : vector<16x128xf32> to vector<16x32xf32>
    %17 = vector.shape_cast %13 : vector<16x32xf32> to vector<1x16x32xf32>
    %18 = vector.shape_cast %14 : vector<16x32xf32> to vector<1x16x32xf32>
    %19 = vector.shape_cast %15 : vector<16x32xf32> to vector<1x16x32xf32>
    %20 = vector.shape_cast %16 : vector<16x32xf32> to vector<1x16x32xf32>
    %21 = tpu.concatenate %17, %18, %19, %20 in 0 : vector<1x16x32xf32>, vector<1x16x32xf32>, vector<1x16x32xf32>, vector<1x16x32xf32> -> vector<4x16x32xf32>
    %c0_5 = arith.constant 0 : index
    %c0_6 = arith.constant 0 : index
    %c0_7 = arith.constant 0 : index
    %22 = vector.load %arg4[%c0_5, %c0_6, %c0_7] : memref<1x16x128xf32, #tpu.memory_space<vmem>>, vector<1x16x128xf32>
    %23 = vector.shape_cast %22 : vector<1x16x128xf32> to vector<16x128xf32>
    %24 = vector.extract_strided_slice %23 {offsets = [0, 0], sizes = [16, 32], strides = [1, 1]} : vector<16x128xf32> to vector<16x32xf32>
    %25 = vector.extract_strided_slice %23 {offsets = [0, 32], sizes = [16, 32], strides = [1, 1]} : vector<16x128xf32> to vector<16x32xf32>
    %26 = vector.extract_strided_slice %23 {offsets = [0, 64], sizes = [16, 32], strides = [1, 1]} : vector<16x128xf32> to vector<16x32xf32>
    %27 = vector.extract_strided_slice %23 {offsets = [0, 96], sizes = [16, 32], strides = [1, 1]} : vector<16x128xf32> to vector<16x32xf32>
    %28 = vector.shape_cast %24 : vector<16x32xf32> to vector<1x16x32xf32>
    %29 = vector.shape_cast %25 : vector<16x32xf32> to vector<1x16x32xf32>
    %30 = vector.shape_cast %26 : vector<16x32xf32> to vector<1x16x32xf32>
    %31 = vector.shape_cast %27 : vector<16x32xf32> to vector<1x16x32xf32>
    %32 = tpu.concatenate %28, %29, %30, %31 in 0 : vector<1x16x32xf32>, vector<1x16x32xf32>, vector<1x16x32xf32>, vector<1x16x32xf32> -> vector<4x16x32xf32>
    "tpu.trace_start"() <{level = 10 : i32, message = "gqd,gkd->gqk"}> : () -> ()
    %cst = arith.constant dense<0.000000e+00> : vector<4x16x16xf32>
    %33 = tpu.matmul %10, %21, %cst {dimension_numbers = #tpu.dot_dimension_numbers<[2], [2], [1], [1], [0, 0, 0, 1, 1, 1], [0], [0]>} : vector<4x16x32xf32>, vector<4x16x32xf32>, vector<4x16x16xf32> -> vector<4x16x16xf32>
    "tpu.trace_stop"() : () -> ()
    %cst_8 = arith.constant 0.176776692 : f32
    %34 = vector.broadcast %cst_8 : f32 to vector<4x16x16xf32>
    %35 = arith.mulf %33, %34 : vector<4x16x16xf32>
    %c0_9 = arith.constant 0 : index
    %c0_10 = arith.constant 0 : index
    %c0_11 = arith.constant 0 : index
    %36 = vector.load %arg5[%c0_9, %c0_10, %c0_11] : memref<4x16x16xf32, #tpu.memory_space<vmem>>, vector<4x16x16xf32>
    %37 = arith.addf %35, %36 : vector<4x16x16xf32>
    %c0_12 = arith.constant 0 : index
    %c0_13 = arith.constant 0 : index
    %c0_14 = arith.constant 0 : index
    %38 = vector.load %arg6[%c0_12, %c0_13, %c0_14] : memref<1x1x16xf32, #tpu.memory_space<vmem>>, vector<1x1x16xf32>
    %39 = vector.shape_cast %38 : vector<1x1x16xf32> to vector<1x16xf32>
    %40 = vector.shape_cast %39 : vector<1x16xf32> to vector<1x1x16xf32>
    %cst_15 = arith.constant 0.000000e+00 : f32
    %41 = vector.broadcast %cst_15 : f32 to vector<1x1x16xf32>
    %42 = arith.cmpf ogt, %40, %41 : vector<1x1x16xf32>
    %cst_16 = arith.constant -1.000000e+30 : f32
    %43 = vector.shape_cast %42 : vector<1x1x16xi1> to vector<1x1x16xi1>
    %44 = vector.broadcast %43 : vector<1x1x16xi1> to vector<4x16x16xi1>
    %45 = vector.broadcast %cst_16 : f32 to vector<4x16x16xf32>
    %46 = arith.select %44, %37, %45 : vector<4x16x16xi1>, vector<4x16x16xf32>
    %cst_17 = arith.constant dense<0xFF800000> : vector<4x16xf32>
    %47 = vector.multi_reduction <maximumf>, %46, %cst_17 [2] : vector<4x16x16xf32> to vector<4x16xf32>
    %48 = vector.shape_cast %47 : vector<4x16xf32> to vector<4x16x1xf32>
    %49 = vector.broadcast %48 : vector<4x16x1xf32> to vector<4x16x16xf32>
    %50 = arith.subf %46, %49 : vector<4x16x16xf32>
    %51 = math.exp %50 : vector<4x16x16xf32>
    %cst_18 = arith.constant dense<0.000000e+00> : vector<4x16xf32>
    %52 = vector.multi_reduction <add>, %51, %cst_18 [2] : vector<4x16x16xf32> to vector<4x16xf32>
    %53 = vector.shape_cast %52 : vector<4x16xf32> to vector<4x16x1xf32>
    %54 = tpu.reciprocal %53 {approx = true} : vector<4x16x1xf32> -> vector<4x16x1xf32>
    %55 = vector.broadcast %54 : vector<4x16x1xf32> to vector<4x16x16xf32>
    %56 = arith.mulf %51, %55 : vector<4x16x16xf32>
    "tpu.trace_start"() <{level = 10 : i32, message = "gqk,gkd->gqd"}> : () -> ()
    %cst_19 = arith.constant dense<0.000000e+00> : vector<4x16x32xf32>
    %57 = tpu.matmul %56, %32, %cst_19 {dimension_numbers = #tpu.dot_dimension_numbers<[2], [1], [1], [2], [0, 0, 0, 1, 1, 2], [0], [0]>} : vector<4x16x16xf32>, vector<4x16x32xf32>, vector<4x16x32xf32> -> vector<4x16x32xf32>
    "tpu.trace_stop"() : () -> ()
    %58 = vector.extract_strided_slice %57 {offsets = [0, 0, 0], sizes = [1, 16, 32], strides = [1, 1, 1]} : vector<4x16x32xf32> to vector<1x16x32xf32>
    %59 = vector.shape_cast %58 : vector<1x16x32xf32> to vector<16x32xf32>
    %60 = vector.extract_strided_slice %57 {offsets = [1, 0, 0], sizes = [1, 16, 32], strides = [1, 1, 1]} : vector<4x16x32xf32> to vector<1x16x32xf32>
    %61 = vector.shape_cast %60 : vector<1x16x32xf32> to vector<16x32xf32>
    %62 = vector.extract_strided_slice %57 {offsets = [2, 0, 0], sizes = [1, 16, 32], strides = [1, 1, 1]} : vector<4x16x32xf32> to vector<1x16x32xf32>
    %63 = vector.shape_cast %62 : vector<1x16x32xf32> to vector<16x32xf32>
    %64 = vector.extract_strided_slice %57 {offsets = [3, 0, 0], sizes = [1, 16, 32], strides = [1, 1, 1]} : vector<4x16x32xf32> to vector<1x16x32xf32>
    %65 = vector.shape_cast %64 : vector<1x16x32xf32> to vector<16x32xf32>
    %66 = tpu.concatenate %59, %61, %63, %65 in 1 : vector<16x32xf32>, vector<16x32xf32>, vector<16x32xf32>, vector<16x32xf32> -> vector<16x128xf32>
    %c0_20 = arith.constant 0 : index
    %c0_21 = arith.constant 0 : index
    %c0_22 = arith.constant 0 : index
    %67 = vector.load %arg7[%c0_20, %c0_21, %c0_22] : memref<1x16x128xf32, #tpu.memory_space<vmem>>, vector<1x16x128xf32>
    %68 = vector.shape_cast %67 : vector<1x16x128xf32> to vector<16x128xf32>
    %69 = vector.shape_cast %66 : vector<16x128xf32> to vector<1x16x128xf32>
    tpu.vector_store %arg7[%c0_20, %c0_21, %c0_22], %69 {strides = array<i32>} : memref<1x16x128xf32, #tpu.memory_space<vmem>>, vector<1x16x128xf32>,
    return
  }
  func.func @transform_0(%arg0: i32, %arg1: i32) -> (i32, i32, i32) {
    %c0_i32 = arith.constant 0 : i32
    %c0_i32_0 = arith.constant 0 : i32
    return %arg0, %c0_i32, %arg1 : i32, i32, i32
  }
  func.func @transform_1(%arg0: i32, %arg1: i32) -> (i32, i32, i32) {
    %c1_i32 = arith.constant 1 : i32
    %0 = arith.addi %c1_i32, %arg1 : i32
    %c0_i32 = arith.constant 0 : i32
    %c0_i32_0 = arith.constant 0 : i32
    return %arg0, %c0_i32, %0 : i32, i32, i32
  }
  func.func @transform_2(%arg0: i32, %arg1: i32) -> (i32, i32, i32) {
    %c2_i32 = arith.constant 2 : i32
    %0 = arith.addi %c2_i32, %arg1 : i32
    %c0_i32 = arith.constant 0 : i32
    %c0_i32_0 = arith.constant 0 : i32
    return %arg0, %c0_i32, %0 : i32, i32, i32
  }
  func.func @transform_3(%arg0: i32, %arg1: i32) -> (i32, i32, i32) {
    %c0_i32 = arith.constant 0 : i32
    %c0_i32_0 = arith.constant 0 : i32
    %c0_i32_1 = arith.constant 0 : i32
    return %arg1, %c0_i32, %c0_i32_0 : i32, i32, i32
  }
  func.func @transform_4(%arg0: i32, %arg1: i32) -> (i32, i32, i32) {
    %c0_i32 = arith.constant 0 : i32
    %c0_i32_0 = arith.constant 0 : i32
    %c0_i32_1 = arith.constant 0 : i32
    return %arg0, %c0_i32, %c0_i32_0 : i32, i32, i32
  }
  func.func @transform_5(%arg0: i32, %arg1: i32) -> (i32, i32, i32) {
    %c0_i32 = arith.constant 0 : i32
    %c0_i32_0 = arith.constant 0 : i32
    return %arg0, %c0_i32, %arg1 : i32, i32, i32
  }
}

module attributes {stable_mosaic.version = 11 : i64} {
  func.func @kernel(%arg0: i32, %arg1: i32, %arg2: memref<32x128xf32, #tpu.memory_space<vmem>>, %arg3: memref<128x128xf32, #tpu.memory_space<vmem>>, %arg4: memref<1x128xf32, #tpu.memory_space<vmem>>, %arg5: memref<1x128xf32, #tpu.memory_space<vmem>>, %arg6: memref<32x128xf32, #tpu.memory_space<vmem>>, %arg7: memref<32x128xf32, #tpu.memory_space<vmem>>) attributes {dimension_semantics = [#tpu.dimension_semantics<parallel>, #tpu.dimension_semantics<parallel>], iteration_bounds = array<i64: 1, 1>, scalar_prefetch = 0 : i64, scratch_operands = 0 : i64, tpu.core_type = #tpu.core_type<tc>, window_params = [{transform_indices = @transform_0, window_bounds = array<i64: 32, 128>}, {transform_indices = @transform_1, window_bounds = array<i64: 128, 128>}, {transform_indices = @transform_2, window_bounds = array<i64: 1, 128>}, {transform_indices = @transform_3, window_bounds = array<i64: 1, 128>}, {transform_indices = @transform_4, window_bounds = array<i64: 32, 128>}, {transform_indices = @transform_5, window_bounds = array<i64: 32, 128>}]} {
    %c0 = arith.constant 0 : index
    %c0_0 = arith.constant 0 : index
    %0 = vector.load %arg2[%c0, %c0_0] : memref<32x128xf32, #tpu.memory_space<vmem>>, vector<32x128xf32>
    %c0_1 = arith.constant 0 : index
    %c0_2 = arith.constant 0 : index
    %1 = vector.load %arg3[%c0_1, %c0_2] : memref<128x128xf32, #tpu.memory_space<vmem>>, vector<128x128xf32>
    %cst = arith.constant dense<0.000000e+00> : vector<32x128xf32>
    %2 = tpu.matmul %0, %1, %cst {dimension_numbers = #tpu.dot_dimension_numbers<[1], [0], [0], [1], [0, 0, 1, 1], [], []>} : vector<32x128xf32>, vector<128x128xf32>, vector<32x128xf32> -> vector<32x128xf32>
    %c0_3 = arith.constant 0 : index
    %c0_4 = arith.constant 0 : index
    %3 = vector.load %arg4[%c0_3, %c0_4] : memref<1x128xf32, #tpu.memory_space<vmem>>, vector<1x128xf32>
    %4 = vector.broadcast %3 : vector<1x128xf32> to vector<32x128xf32>
    %5 = arith.addf %2, %4 : vector<32x128xf32>
    %c0_5 = arith.constant 0 : index
    %c0_6 = arith.constant 0 : index
    %6 = vector.load %arg6[%c0_5, %c0_6] : memref<32x128xf32, #tpu.memory_space<vmem>>, vector<32x128xf32>
    %c0_7 = arith.constant 0 : index
    %c0_8 = arith.constant 0 : index
    %7 = vector.load %arg5[%c0_7, %c0_8] : memref<1x128xf32, #tpu.memory_space<vmem>>, vector<1x128xf32>
    %8 = vector.broadcast %7 : vector<1x128xf32> to vector<32x128xf32>
    %9 = arith.mulf %8, %5 : vector<32x128xf32>
    %10 = arith.addf %6, %9 : vector<32x128xf32>
    %c0_9 = arith.constant 0 : index
    %c0_10 = arith.constant 0 : index
    %11 = vector.load %arg7[%c0_9, %c0_10] : memref<32x128xf32, #tpu.memory_space<vmem>>, vector<32x128xf32>
    tpu.vector_store %arg7[%c0_9, %c0_10], %10 {strides = array<i32>} : memref<32x128xf32, #tpu.memory_space<vmem>>, vector<32x128xf32>,
    return
  }
  func.func @transform_0(%arg0: i32, %arg1: i32) -> (i32, i32) {
    %c0_i32 = arith.constant 0 : i32
    %c0_i32_0 = arith.constant 0 : i32
    return %arg0, %c0_i32 : i32, i32
  }
  func.func @transform_1(%arg0: i32, %arg1: i32) -> (i32, i32) {
    %c0_i32 = arith.constant 0 : i32
    %c0_i32_0 = arith.constant 0 : i32
    return %c0_i32, %arg1 : i32, i32
  }
  func.func @transform_2(%arg0: i32, %arg1: i32) -> (i32, i32) {
    %c0_i32 = arith.constant 0 : i32
    %c0_i32_0 = arith.constant 0 : i32
    return %c0_i32, %arg1 : i32, i32
  }
  func.func @transform_3(%arg0: i32, %arg1: i32) -> (i32, i32) {
    %c0_i32 = arith.constant 0 : i32
    %c0_i32_0 = arith.constant 0 : i32
    return %c0_i32, %arg1 : i32, i32
  }
  func.func @transform_4(%arg0: i32, %arg1: i32) -> (i32, i32) {
    %c0_i32 = arith.constant 0 : i32
    return %arg0, %arg1 : i32, i32
  }
  func.func @transform_5(%arg0: i32, %arg1: i32) -> (i32, i32) {
    %c0_i32 = arith.constant 0 : i32
    return %arg0, %arg1 : i32, i32
  }
}

module attributes {stable_mosaic.version = 11 : i64} {
  func.func @kernel(%arg0: i32, %arg1: i32, %arg2: memref<32x128xf32, #tpu.memory_space<vmem>>, %arg3: memref<1x128xf32, #tpu.memory_space<vmem>>, %arg4: memref<1x128xf32, #tpu.memory_space<vmem>>, %arg5: memref<128x384xf32, #tpu.memory_space<vmem>>, %arg6: memref<1x384xf32, #tpu.memory_space<vmem>>, %arg7: memref<32x384xf32, #tpu.memory_space<vmem>>) attributes {dimension_semantics = [#tpu.dimension_semantics<parallel>, #tpu.dimension_semantics<parallel>], iteration_bounds = array<i64: 1, 1>, scalar_prefetch = 0 : i64, scratch_operands = 0 : i64, tpu.core_type = #tpu.core_type<tc>, window_params = [{transform_indices = @transform_0, window_bounds = array<i64: 32, 128>}, {pipeline_mode = #tpu.pipeline_mode<synchronous>, transform_indices = @transform_1, window_bounds = array<i64: 1, 128>}, {pipeline_mode = #tpu.pipeline_mode<synchronous>, transform_indices = @transform_2, window_bounds = array<i64: 1, 128>}, {transform_indices = @transform_3, window_bounds = array<i64: 128, 384>}, {transform_indices = @transform_4, window_bounds = array<i64: 1, 384>}, {transform_indices = @transform_5, window_bounds = array<i64: 32, 384>}]} {
    %c0 = arith.constant 0 : index
    %c0_0 = arith.constant 0 : index
    %0 = vector.load %arg2[%c0, %c0_0] : memref<32x128xf32, #tpu.memory_space<vmem>>, vector<32x128xf32>
    %cst = arith.constant dense<0.000000e+00> : vector<32xf32>
    %1 = vector.multi_reduction <add>, %0, %cst [1] : vector<32x128xf32> to vector<32xf32>
    %2 = vector.shape_cast %1 : vector<32xf32> to vector<32x1xf32>
    %cst_1 = arith.constant 1.280000e+02 : f32
    %3 = vector.broadcast %cst_1 : f32 to vector<32x1xf32>
    %4 = arith.divf %2, %3 : vector<32x1xf32>
    %5 = vector.broadcast %4 : vector<32x1xf32> to vector<32x128xf32>
    %6 = arith.subf %0, %5 : vector<32x128xf32>
    %7 = arith.mulf %6, %6 : vector<32x128xf32>
    %cst_2 = arith.constant dense<0.000000e+00> : vector<32xf32>
    %8 = vector.multi_reduction <add>, %7, %cst_2 [1] : vector<32x128xf32> to vector<32xf32>
    %9 = vector.shape_cast %8 : vector<32xf32> to vector<32x1xf32>
    %cst_3 = arith.constant 1.280000e+02 : f32
    %10 = vector.broadcast %cst_3 : f32 to vector<32x1xf32>
    %11 = arith.divf %9, %10 : vector<32x1xf32>
    %cst_4 = arith.constant 9.99999974E-6 : f32
    %12 = vector.broadcast %cst_4 : f32 to vector<32x1xf32>
    %13 = arith.addf %11, %12 : vector<32x1xf32>
    %14 = math.rsqrt %13 : vector<32x1xf32>
    %15 = vector.broadcast %14 : vector<32x1xf32> to vector<32x128xf32>
    %16 = arith.mulf %6, %15 : vector<32x128xf32>
    %c0_5 = arith.constant 0 : index
    %c0_6 = arith.constant 0 : index
    %17 = vector.load %arg3[%c0_5, %c0_6] : memref<1x128xf32, #tpu.memory_space<vmem>>, vector<1x128xf32>
    %18 = vector.broadcast %17 : vector<1x128xf32> to vector<32x128xf32>
    %19 = arith.mulf %16, %18 : vector<32x128xf32>
    %c0_7 = arith.constant 0 : index
    %c0_8 = arith.constant 0 : index
    %20 = vector.load %arg4[%c0_7, %c0_8] : memref<1x128xf32, #tpu.memory_space<vmem>>, vector<1x128xf32>
    %21 = vector.broadcast %20 : vector<1x128xf32> to vector<32x128xf32>
    %22 = arith.addf %19, %21 : vector<32x128xf32>
    %c0_9 = arith.constant 0 : index
    %c0_10 = arith.constant 0 : index
    %23 = vector.load %arg5[%c0_9, %c0_10] : memref<128x384xf32, #tpu.memory_space<vmem>>, vector<128x384xf32>
    %cst_11 = arith.constant dense<0.000000e+00> : vector<32x384xf32>
    %24 = tpu.matmul %22, %23, %cst_11 {dimension_numbers = #tpu.dot_dimension_numbers<[1], [0], [0], [1], [0, 0, 1, 1], [], []>} : vector<32x128xf32>, vector<128x384xf32>, vector<32x384xf32> -> vector<32x384xf32>
    %c0_12 = arith.constant 0 : index
    %c0_13 = arith.constant 0 : index
    %25 = vector.load %arg6[%c0_12, %c0_13] : memref<1x384xf32, #tpu.memory_space<vmem>>, vector<1x384xf32>
    %26 = vector.broadcast %25 : vector<1x384xf32> to vector<32x384xf32>
    %27 = arith.addf %24, %26 : vector<32x384xf32>
    %c0_14 = arith.constant 0 : index
    %c0_15 = arith.constant 0 : index
    %28 = vector.load %arg7[%c0_14, %c0_15] : memref<32x384xf32, #tpu.memory_space<vmem>>, vector<32x384xf32>
    tpu.vector_store %arg7[%c0_14, %c0_15], %27 {strides = array<i32>} : memref<32x384xf32, #tpu.memory_space<vmem>>, vector<32x384xf32>,
    return
  }
  func.func @transform_0(%arg0: i32, %arg1: i32) -> (i32, i32) {
    %c0_i32 = arith.constant 0 : i32
    %c0_i32_0 = arith.constant 0 : i32
    return %arg0, %c0_i32 : i32, i32
  }
  func.func @transform_1(%arg0: i32, %arg1: i32) -> (i32, i32) {
    %c0_i32 = arith.constant 0 : i32
    %c0_i32_0 = arith.constant 0 : i32
    %c0_i32_1 = arith.constant 0 : i32
    return %c0_i32, %c0_i32_0 : i32, i32
  }
  func.func @transform_2(%arg0: i32, %arg1: i32) -> (i32, i32) {
    %c0_i32 = arith.constant 0 : i32
    %c0_i32_0 = arith.constant 0 : i32
    %c0_i32_1 = arith.constant 0 : i32
    return %c0_i32, %c0_i32_0 : i32, i32
  }
  func.func @transform_3(%arg0: i32, %arg1: i32) -> (i32, i32) {
    %c0_i32 = arith.constant 0 : i32
    %c0_i32_0 = arith.constant 0 : i32
    return %c0_i32, %arg1 : i32, i32
  }
  func.func @transform_4(%arg0: i32, %arg1: i32) -> (i32, i32) {
    %c0_i32 = arith.constant 0 : i32
    %c0_i32_0 = arith.constant 0 : i32
    return %c0_i32, %arg1 : i32, i32
  }
  func.func @transform_5(%arg0: i32, %arg1: i32) -> (i32, i32) {
    %c0_i32 = arith.constant 0 : i32
    return %arg0, %arg1 : i32, i32
  }
}

module attributes {stable_mosaic.version = 11 : i64} {
  func.func @kernel(%arg0: i32, %arg1: i32, %arg2: memref<32x128xf32, #tpu.memory_space<vmem>>, %arg3: memref<1x128xf32, #tpu.memory_space<vmem>>, %arg4: memref<1x128xf32, #tpu.memory_space<vmem>>, %arg5: memref<128x512xf32, #tpu.memory_space<vmem>>, %arg6: memref<1x512xf32, #tpu.memory_space<vmem>>, %arg7: memref<32x512xf32, #tpu.memory_space<vmem>>) attributes {dimension_semantics = [#tpu.dimension_semantics<parallel>, #tpu.dimension_semantics<parallel>], iteration_bounds = array<i64: 1, 1>, scalar_prefetch = 0 : i64, scratch_operands = 0 : i64, tpu.core_type = #tpu.core_type<tc>, window_params = [{transform_indices = @transform_0, window_bounds = array<i64: 32, 128>}, {pipeline_mode = #tpu.pipeline_mode<synchronous>, transform_indices = @transform_1, window_bounds = array<i64: 1, 128>}, {pipeline_mode = #tpu.pipeline_mode<synchronous>, transform_indices = @transform_2, window_bounds = array<i64: 1, 128>}, {transform_indices = @transform_3, window_bounds = array<i64: 128, 512>}, {transform_indices = @transform_4, window_bounds = array<i64: 1, 512>}, {transform_indices = @transform_5, window_bounds = array<i64: 32, 512>}]} {
    %c0 = arith.constant 0 : index
    %c0_0 = arith.constant 0 : index
    %0 = vector.load %arg2[%c0, %c0_0] : memref<32x128xf32, #tpu.memory_space<vmem>>, vector<32x128xf32>
    %cst = arith.constant dense<0.000000e+00> : vector<32xf32>
    %1 = vector.multi_reduction <add>, %0, %cst [1] : vector<32x128xf32> to vector<32xf32>
    %2 = vector.shape_cast %1 : vector<32xf32> to vector<32x1xf32>
    %cst_1 = arith.constant 1.280000e+02 : f32
    %3 = vector.broadcast %cst_1 : f32 to vector<32x1xf32>
    %4 = arith.divf %2, %3 : vector<32x1xf32>
    %5 = vector.broadcast %4 : vector<32x1xf32> to vector<32x128xf32>
    %6 = arith.subf %0, %5 : vector<32x128xf32>
    %7 = arith.mulf %6, %6 : vector<32x128xf32>
    %cst_2 = arith.constant dense<0.000000e+00> : vector<32xf32>
    %8 = vector.multi_reduction <add>, %7, %cst_2 [1] : vector<32x128xf32> to vector<32xf32>
    %9 = vector.shape_cast %8 : vector<32xf32> to vector<32x1xf32>
    %cst_3 = arith.constant 1.280000e+02 : f32
    %10 = vector.broadcast %cst_3 : f32 to vector<32x1xf32>
    %11 = arith.divf %9, %10 : vector<32x1xf32>
    %cst_4 = arith.constant 9.99999974E-6 : f32
    %12 = vector.broadcast %cst_4 : f32 to vector<32x1xf32>
    %13 = arith.addf %11, %12 : vector<32x1xf32>
    %14 = math.rsqrt %13 : vector<32x1xf32>
    %15 = vector.broadcast %14 : vector<32x1xf32> to vector<32x128xf32>
    %16 = arith.mulf %6, %15 : vector<32x128xf32>
    %c0_5 = arith.constant 0 : index
    %c0_6 = arith.constant 0 : index
    %17 = vector.load %arg3[%c0_5, %c0_6] : memref<1x128xf32, #tpu.memory_space<vmem>>, vector<1x128xf32>
    %18 = vector.broadcast %17 : vector<1x128xf32> to vector<32x128xf32>
    %19 = arith.mulf %16, %18 : vector<32x128xf32>
    %c0_7 = arith.constant 0 : index
    %c0_8 = arith.constant 0 : index
    %20 = vector.load %arg4[%c0_7, %c0_8] : memref<1x128xf32, #tpu.memory_space<vmem>>, vector<1x128xf32>
    %21 = vector.broadcast %20 : vector<1x128xf32> to vector<32x128xf32>
    %22 = arith.addf %19, %21 : vector<32x128xf32>
    %c0_9 = arith.constant 0 : index
    %c0_10 = arith.constant 0 : index
    %23 = vector.load %arg5[%c0_9, %c0_10] : memref<128x512xf32, #tpu.memory_space<vmem>>, vector<128x512xf32>
    %cst_11 = arith.constant dense<0.000000e+00> : vector<32x512xf32>
    %24 = tpu.matmul %22, %23, %cst_11 {dimension_numbers = #tpu.dot_dimension_numbers<[1], [0], [0], [1], [0, 0, 1, 1], [], []>} : vector<32x128xf32>, vector<128x512xf32>, vector<32x512xf32> -> vector<32x512xf32>
    %c0_12 = arith.constant 0 : index
    %c0_13 = arith.constant 0 : index
    %25 = vector.load %arg6[%c0_12, %c0_13] : memref<1x512xf32, #tpu.memory_space<vmem>>, vector<1x512xf32>
    %26 = vector.broadcast %25 : vector<1x512xf32> to vector<32x512xf32>
    %27 = arith.addf %24, %26 : vector<32x512xf32>
    %cst_14 = arith.constant 5.000000e-01 : f32
    %28 = vector.broadcast %cst_14 : f32 to vector<32x512xf32>
    %29 = arith.mulf %28, %27 : vector<32x512xf32>
    %cst_15 = arith.constant 0.707106769 : f32
    %30 = vector.broadcast %cst_15 : f32 to vector<32x512xf32>
    %31 = arith.mulf %27, %30 : vector<32x512xf32>
    %32 = math.absf %31 : vector<32x512xf32>
    %cst_16 = arith.constant 0.327591091 : f32
    %33 = vector.broadcast %cst_16 : f32 to vector<32x512xf32>
    %34 = arith.mulf %33, %32 : vector<32x512xf32>
    %cst_17 = arith.constant 1.000000e+00 : f32
    %35 = vector.broadcast %cst_17 : f32 to vector<32x512xf32>
    %36 = arith.addf %35, %34 : vector<32x512xf32>
    %cst_18 = arith.constant 1.000000e+00 : f32
    %37 = vector.broadcast %cst_18 : f32 to vector<32x512xf32>
    %38 = arith.divf %37, %36 : vector<32x512xf32>
    %cst_19 = arith.constant 1.06140542 : f32
    %39 = vector.broadcast %cst_19 : f32 to vector<32x512xf32>
    %40 = arith.mulf %39, %38 : vector<32x512xf32>
    %cst_20 = arith.constant -1.45315206 : f32
    %41 = vector.broadcast %cst_20 : f32 to vector<32x512xf32>
    %42 = arith.addf %40, %41 : vector<32x512xf32>
    %43 = arith.mulf %42, %38 : vector<32x512xf32>
    %cst_21 = arith.constant 1.42141378 : f32
    %44 = vector.broadcast %cst_21 : f32 to vector<32x512xf32>
    %45 = arith.addf %43, %44 : vector<32x512xf32>
    %46 = arith.mulf %45, %38 : vector<32x512xf32>
    %cst_22 = arith.constant -0.284496725 : f32
    %47 = vector.broadcast %cst_22 : f32 to vector<32x512xf32>
    %48 = arith.addf %46, %47 : vector<32x512xf32>
    %49 = arith.mulf %48, %38 : vector<32x512xf32>
    %cst_23 = arith.constant 0.254829586 : f32
    %50 = vector.broadcast %cst_23 : f32 to vector<32x512xf32>
    %51 = arith.addf %49, %50 : vector<32x512xf32>
    %52 = arith.mulf %51, %38 : vector<32x512xf32>
    %cst_24 = arith.constant 0.000000e+00 : f32
    %53 = vector.broadcast %cst_24 : f32 to vector<32x512xf32>
    %54 = arith.subf %53, %32 : vector<32x512xf32>
    %55 = arith.mulf %54, %32 : vector<32x512xf32>
    %56 = math.exp %55 : vector<32x512xf32>
    %57 = arith.mulf %52, %56 : vector<32x512xf32>
    %cst_25 = arith.constant 1.000000e+00 : f32
    %58 = vector.broadcast %cst_25 : f32 to vector<32x512xf32>
    %59 = arith.subf %58, %57 : vector<32x512xf32>
    %cst_26 = arith.constant 0.000000e+00 : f32
    %60 = vector.broadcast %cst_26 : f32 to vector<32x512xf32>
    %61 = arith.cmpf oge, %31, %60 : vector<32x512xf32>
    %cst_27 = arith.constant 0.000000e+00 : f32
    %62 = vector.broadcast %cst_27 : f32 to vector<32x512xf32>
    %63 = arith.subf %62, %59 : vector<32x512xf32>
    %64 = arith.select %61, %59, %63 : vector<32x512xi1>, vector<32x512xf32>
    %cst_28 = arith.constant 1.000000e+00 : f32
    %65 = vector.broadcast %cst_28 : f32 to vector<32x512xf32>
    %66 = arith.addf %65, %64 : vector<32x512xf32>
    %67 = arith.mulf %29, %66 : vector<32x512xf32>
    %c0_29 = arith.constant 0 : index
    %c0_30 = arith.constant 0 : index
    %68 = vector.load %arg7[%c0_29, %c0_30] : memref<32x512xf32, #tpu.memory_space<vmem>>, vector<32x512xf32>
    tpu.vector_store %arg7[%c0_29, %c0_30], %67 {strides = array<i32>} : memref<32x512xf32, #tpu.memory_space<vmem>>, vector<32x512xf32>,
    return
  }
  func.func @transform_0(%arg0: i32, %arg1: i32) -> (i32, i32) {
    %c0_i32 = arith.constant 0 : i32
    %c0_i32_0 = arith.constant 0 : i32
    return %arg0, %c0_i32 : i32, i32
  }
  func.func @transform_1(%arg0: i32, %arg1: i32) -> (i32, i32) {
    %c0_i32 = arith.constant 0 : i32
    %c0_i32_0 = arith.constant 0 : i32
    %c0_i32_1 = arith.constant 0 : i32
    return %c0_i32, %c0_i32_0 : i32, i32
  }
  func.func @transform_2(%arg0: i32, %arg1: i32) -> (i32, i32) {
    %c0_i32 = arith.constant 0 : i32
    %c0_i32_0 = arith.constant 0 : i32
    %c0_i32_1 = arith.constant 0 : i32
    return %c0_i32, %c0_i32_0 : i32, i32
  }
  func.func @transform_3(%arg0: i32, %arg1: i32) -> (i32, i32) {
    %c0_i32 = arith.constant 0 : i32
    %c0_i32_0 = arith.constant 0 : i32
    return %c0_i32, %arg1 : i32, i32
  }
  func.func @transform_4(%arg0: i32, %arg1: i32) -> (i32, i32) {
    %c0_i32 = arith.constant 0 : i32
    %c0_i32_0 = arith.constant 0 : i32
    return %c0_i32, %arg1 : i32, i32
  }
  func.func @transform_5(%arg0: i32, %arg1: i32) -> (i32, i32) {
    %c0_i32 = arith.constant 0 : i32
    return %arg0, %arg1 : i32, i32
  }
}

module attributes {stable_mosaic.version = 11 : i64} {
  func.func @kernel(%arg0: i32, %arg1: i32, %arg2: memref<32x512xf32, #tpu.memory_space<vmem>>, %arg3: memref<512x128xf32, #tpu.memory_space<vmem>>, %arg4: memref<1x128xf32, #tpu.memory_space<vmem>>, %arg5: memref<1x128xf32, #tpu.memory_space<vmem>>, %arg6: memref<32x128xf32, #tpu.memory_space<vmem>>, %arg7: memref<32x128xf32, #tpu.memory_space<vmem>>) attributes {dimension_semantics = [#tpu.dimension_semantics<parallel>, #tpu.dimension_semantics<parallel>], iteration_bounds = array<i64: 1, 1>, scalar_prefetch = 0 : i64, scratch_operands = 0 : i64, tpu.core_type = #tpu.core_type<tc>, window_params = [{transform_indices = @transform_0, window_bounds = array<i64: 32, 512>}, {transform_indices = @transform_1, window_bounds = array<i64: 512, 128>}, {transform_indices = @transform_2, window_bounds = array<i64: 1, 128>}, {transform_indices = @transform_3, window_bounds = array<i64: 1, 128>}, {transform_indices = @transform_4, window_bounds = array<i64: 32, 128>}, {transform_indices = @transform_5, window_bounds = array<i64: 32, 128>}]} {
    %c0 = arith.constant 0 : index
    %c0_0 = arith.constant 0 : index
    %0 = vector.load %arg2[%c0, %c0_0] : memref<32x512xf32, #tpu.memory_space<vmem>>, vector<32x512xf32>
    %c0_1 = arith.constant 0 : index
    %c0_2 = arith.constant 0 : index
    %1 = vector.load %arg3[%c0_1, %c0_2] : memref<512x128xf32, #tpu.memory_space<vmem>>, vector<512x128xf32>
    %cst = arith.constant dense<0.000000e+00> : vector<32x128xf32>
    %2 = tpu.matmul %0, %1, %cst {dimension_numbers = #tpu.dot_dimension_numbers<[1], [0], [0], [1], [0, 0, 1, 1], [], []>} : vector<32x512xf32>, vector<512x128xf32>, vector<32x128xf32> -> vector<32x128xf32>
    %c0_3 = arith.constant 0 : index
    %c0_4 = arith.constant 0 : index
    %3 = vector.load %arg4[%c0_3, %c0_4] : memref<1x128xf32, #tpu.memory_space<vmem>>, vector<1x128xf32>
    %4 = vector.broadcast %3 : vector<1x128xf32> to vector<32x128xf32>
    %5 = arith.addf %2, %4 : vector<32x128xf32>
    %c0_5 = arith.constant 0 : index
    %c0_6 = arith.constant 0 : index
    %6 = vector.load %arg6[%c0_5, %c0_6] : memref<32x128xf32, #tpu.memory_space<vmem>>, vector<32x128xf32>
    %c0_7 = arith.constant 0 : index
    %c0_8 = arith.constant 0 : index
    %7 = vector.load %arg5[%c0_7, %c0_8] : memref<1x128xf32, #tpu.memory_space<vmem>>, vector<1x128xf32>
    %8 = vector.broadcast %7 : vector<1x128xf32> to vector<32x128xf32>
    %9 = arith.mulf %8, %5 : vector<32x128xf32>
    %10 = arith.addf %6, %9 : vector<32x128xf32>
    %c0_9 = arith.constant 0 : index
    %c0_10 = arith.constant 0 : index
    %11 = vector.load %arg7[%c0_9, %c0_10] : memref<32x128xf32, #tpu.memory_space<vmem>>, vector<32x128xf32>
    tpu.vector_store %arg7[%c0_9, %c0_10], %10 {strides = array<i32>} : memref<32x128xf32, #tpu.memory_space<vmem>>, vector<32x128xf32>,
    return
  }
  func.func @transform_0(%arg0: i32, %arg1: i32) -> (i32, i32) {
    %c0_i32 = arith.constant 0 : i32
    %c0_i32_0 = arith.constant 0 : i32
    return %arg0, %c0_i32 : i32, i32
  }
  func.func @transform_1(%arg0: i32, %arg1: i32) -> (i32, i32) {
    %c0_i32 = arith.constant 0 : i32
    %c0_i32_0 = arith.constant 0 : i32
    return %c0_i32, %arg1 : i32, i32
  }
  func.func @transform_2(%arg0: i32, %arg1: i32) -> (i32, i32) {
    %c0_i32 = arith.constant 0 : i32
    %c0_i32_0 = arith.constant 0 : i32
    return %c0_i32, %arg1 : i32, i32
  }
  func.func @transform_3(%arg0: i32, %arg1: i32) -> (i32, i32) {
    %c0_i32 = arith.constant 0 : i32
    %c0_i32_0 = arith.constant 0 : i32
    return %c0_i32, %arg1 : i32, i32
  }
  func.func @transform_4(%arg0: i32, %arg1: i32) -> (i32, i32) {
    %c0_i32 = arith.constant 0 : i32
    return %arg0, %arg1 : i32, i32
  }
  func.func @transform_5(%arg0: i32, %arg1: i32) -> (i32, i32) {
    %c0_i32 = arith.constant 0 : i32
    return %arg0, %arg1 : i32, i32
  }
}

</mosaic_0001>

<bundles_post_ra>
// kernel: separate_block_forward.7
= control target key start
LH: loop header
LB: loop body
LE: loop exit
PB: predicated region body
PF: predicated region fallthrough
CT: control target
= control target key end

     0   :  { %s267_s1 = inlined_call_operand.vmem [shape: f32[128,128], index: 1, kind: input, shape index: {}]   ;;  %s268_s2 = inlined_call_operand.vmem [shape: f32[1,128], index: 2, kind: input, shape index: {}]   ;;  %s269_s3 = inlined_call_operand.vmem [shape: f32[1,128], index: 3, kind: input, shape index: {}]   ;;  %s270_s0 = inlined_call_operand.vmem [shape: f32[32,128], index: 0, kind: input, shape index: {}]   ;;  %s271_s4 = inlined_call_operand.vmem [shape: f32[32,128], index: 4, kind: input, shape index: {}]   ;;  %s272_s5 = inlined_call_operand.vmem [shape: f32[32,128], index: 5, kind: output, shape index: {}]  }
   0x1   :  { %v39_v0 = vld [vmem:[%s267_s1 + $0x78] sm:$0xff]  ;;  %v38_v1 = vld [vmem:[%s267_s1 + $0x70] sm:$0xff]  ;;  %v37_v2 = vld [vmem:[%s267_s1 + $0x68] sm:$0xff] }
   0x2   :  { %98 = vmatpush.msra.mxu2 %v39_v0  ;;  %99 = vmatpush.msra.mxu3 %v39_v0  ;;  %v36_v3 = vld [vmem:[%s267_s1 + $0x60] sm:$0xff]  ;;  %v35_v4 = vld [vmem:[%s267_s1 + $0x58] sm:$0xff]  ;;  %v34_v5 = vld [vmem:[%s267_s1 + $0x50] sm:$0xff] }
   0x3   :  { %44 = vmatpush.msra.mxu0 %v39_v0  ;;  %97 = vmatpush.msra.mxu1 %v39_v0  ;;  %v33_v6 = vld [vmem:[%s267_s1 + $0x48] sm:$0xff]  ;;  %v32_v7 = vld [vmem:[%s267_s1 + $0x40] sm:$0xff]  ;;  %v31_v8 = vld [vmem:[%s267_s1 + $0x38] sm:$0xff] }
   0x4   :  { %101 = vmatpush.msra.mxu2 %v38_v1  ;;  %102 = vmatpush.msra.mxu3 %v38_v1  ;;  %v30_v9 = vld [vmem:[%s267_s1 + $0x30] sm:$0xff]  ;;  %v29_v10 = vld [vmem:[%s267_s1 + $0x28] sm:$0xff]  ;;  %v28_v11 = vld [vmem:[%s267_s1 + $0x20] sm:$0xff] }
   0x5   :  { %45 = vmatpush.msra.mxu0 %v38_v1  ;;  %100 = vmatpush.msra.mxu1 %v38_v1  ;;  %v27_v12 = vld [vmem:[%s267_s1 + $0x18] sm:$0xff]  ;;  %v26_v13 = vld [vmem:[%s267_s1 + $0x10] sm:$0xff]  ;;  %v25_v14 = vld [vmem:[%s267_s1 + $0x8] sm:$0xff] }
   0x6   :  { %104 = vmatpush.msra.mxu2 %v37_v2  ;;  %105 = vmatpush.msra.mxu3 %v37_v2  ;;  %v24_v15 = vld [vmem:[%s267_s1] sm:$0xff]  ;;  %v22_v16 = vld [vmem:[%s270_s0 + $0x10] sm:$0xff]  ;;  %v23_v17 = vld [vmem:[%s270_s0 + $0x18] sm:$0xff] }
   0x7   :  { %46 = vmatpush.msra.mxu0 %v37_v2  ;;  %103 = vmatpush.msra.mxu1 %v37_v2  ;;  %v20_v18 = vld [vmem:[%s270_s0] sm:$0xff]  ;;  %v21_v19 = vld [vmem:[%s270_s0 + $0x8] sm:$0xff]  ;;  %v75_v36 = vld [vmem:[%s271_s4 + $0x10] sm:$0xff] }
   0x8   :  { %107 = vmatpush.msra.mxu2 %v36_v3  ;;  %108 = vmatpush.msra.mxu3 %v36_v3  ;;  %v145_v20 = vld [vmem:[%s268_s2] ss:$0 sm:$0xff]  ;;  %v74_v27 = vld [vmem:[%s271_s4 + $0x8] sm:$0xff]  ;;  %v76_v37 = vld [vmem:[%s271_s4 + $0x18] sm:$0xff] }
   0x9   :  { %47 = vmatpush.msra.mxu0 %v36_v3  ;;  %106 = vmatpush.msra.mxu1 %v36_v3  ;;  %v146_v21 = vld [vmem:[%s269_s3] ss:$0 sm:$0xff] }
   0xa   :  { %110 = vmatpush.msra.mxu2 %v35_v4  ;;  %111 = vmatpush.msra.mxu3 %v35_v4  ;;  %v73_v26 = vld [vmem:[%s271_s4] sm:$0xff] }
   0xb   :  { %48 = vmatpush.msra.mxu0 %v35_v4  ;;  %109 = vmatpush.msra.mxu1 %v35_v4 }
   0xc   :  { %113 = vmatpush.msra.mxu2 %v34_v5  ;;  %114 = vmatpush.msra.mxu3 %v34_v5 }
   0xd   :  { %49 = vmatpush.msra.mxu0 %v34_v5  ;;  %112 = vmatpush.msra.mxu1 %v34_v5 }
   0xe   :  { %116 = vmatpush.msra.mxu2 %v33_v6  ;;  %117 = vmatpush.msra.mxu3 %v33_v6 }
   0xf   :  { %50 = vmatpush.msra.mxu0 %v33_v6  ;;  %115 = vmatpush.msra.mxu1 %v33_v6 }
  0x10   :  { %119 = vmatpush.msra.mxu2 %v32_v7  ;;  %120 = vmatpush.msra.mxu3 %v32_v7 }
  0x11   :  { %51 = vmatpush.msra.mxu0 %v32_v7  ;;  %118 = vmatpush.msra.mxu1 %v32_v7 }
  0x12   :  { %122 = vmatpush.msra.mxu2 %v31_v8  ;;  %123 = vmatpush.msra.mxu3 %v31_v8 }
  0x13   :  { %52 = vmatpush.msra.mxu0 %v31_v8  ;;  %121 = vmatpush.msra.mxu1 %v31_v8 }
  0x14   :  { %125 = vmatpush.msra.mxu2 %v30_v9  ;;  %126 = vmatpush.msra.mxu3 %v30_v9 }
  0x15   :  { %53 = vmatpush.msra.mxu0 %v30_v9  ;;  %124 = vmatpush.msra.mxu1 %v30_v9 }
  0x16   :  { %128 = vmatpush.msra.mxu2 %v29_v10  ;;  %129 = vmatpush.msra.mxu3 %v29_v10 }
  0x17   :  { %54 = vmatpush.msra.mxu0 %v29_v10  ;;  %127 = vmatpush.msra.mxu1 %v29_v10 }
  0x18   :  { %131 = vmatpush.msra.mxu2 %v28_v11  ;;  %132 = vmatpush.msra.mxu3 %v28_v11 }
  0x19   :  { %55 = vmatpush.msra.mxu0 %v28_v11  ;;  %130 = vmatpush.msra.mxu1 %v28_v11 }
  0x1a   :  { %134 = vmatpush.msra.mxu2 %v27_v12  ;;  %135 = vmatpush.msra.mxu3 %v27_v12 }
  0x1b   :  { %56 = vmatpush.msra.mxu0 %v27_v12  ;;  %133 = vmatpush.msra.mxu1 %v27_v12 }
  0x1c   :  { %137 = vmatpush.msra.mxu2 %v26_v13  ;;  %138 = vmatpush.msra.mxu3 %v26_v13 }
  0x1d   :  { %57 = vmatpush.msra.mxu0 %v26_v13  ;;  %136 = vmatpush.msra.mxu1 %v26_v13 }
  0x1e   :  { %140 = vmatpush.msra.mxu2 %v25_v14  ;;  %141 = vmatpush.msra.mxu3 %v25_v14 }
  0x1f   :  { %58 = vmatpush.msra.mxu0 %v25_v14  ;;  %139 = vmatpush.msra.mxu1 %v25_v14 }
  0x20   :  { %143 = vmatpush.msra.mxu2 %v24_v15  ;;  %144 = vmatpush.msra.mxu3 %v24_v15 }
  0x21   :  { %66 = vmatmul.f32.vlgmr.msra.gmra.mxu2 %v22_v16  ;;  %69 = vmatmul.f32.vlgmr.msra.gmra.mxu3 %v23_v17 }
  0x22   :  { %59 = vmatpush.msra.mxu0 %v24_v15  ;;  %142 = vmatpush.msra.mxu1 %v24_v15 }
  0x23   :  { %60 = vmatmul.f32.vlgmr.msra.gmra.mxu0 %v20_v18  ;;  %63 = vmatmul.f32.vlgmr.msra.gmra.mxu1 %v21_v19 }
  0xa0   :  { %v61_v22 = vpop.f32.mrf.mxu0  ;;  %v64_v23 = vpop.f32.mrf.mxu1 }
  0xa1   :  { %v62_v24 = vadd.f32 %v145_v20, %v61_v22  ;;  %v65_v25 = vadd.f32 %v145_v20, %v64_v23 }
  0xa3   :  { %v81_v28 = vmul.f32 %v146_v21, %v62_v24  ;;  %v82_v29 = vmul.f32 %v146_v21, %v65_v25 }
  0xa4   :  { %v67_v30 = vpop.f32.mrf.mxu2  ;;  %v70_v31 = vpop.f32.mrf.mxu3 }
  0xa5   :  { %v85_v32 = vadd.f32 %v81_v28, %v73_v26  ;;  %v86_v33 = vadd.f32 %v82_v29, %v74_v27  ;;  %v68_v34 = vadd.f32 %v145_v20, %v67_v30  ;;  %v71_v35 = vadd.f32 %v145_v20, %v70_v31 }
  0xa7   :  { %89 = vst [vmem:[%s272_s5] sm:$0xff] %v85_v32  ;;  %v83_v38 = vmul.f32 %v146_v21, %v68_v34  ;;  %v84_v39 = vmul.f32 %v146_v21, %v71_v35 }
  0xa8   :  { %90 = vst [vmem:[%s272_s5 + $0x8] sm:$0xff] %v86_v33 }
  0xa9   :  { %v87_v40 = vadd.f32 %v83_v38, %v75_v36  ;;  %v88_v41 = vadd.f32 %v84_v39, %v76_v37 }
  0xab   :  { %91 = vst [vmem:[%s272_s5 + $0x10] sm:$0xff] %v87_v40 }
  0xac   :  { %92 = vst [vmem:[%s272_s5 + $0x18] sm:$0xff] %v88_v41 }

// kernel: separate_block_forward.5
= control target key start
LH: loop header
LB: loop body
LE: loop exit
PB: predicated region body
PF: predicated region fallthrough
CT: control target
= control target key end

     0   :  { %10 = vsyncpa [#allocation3], 0  ;;  %s613_s0 = inlined_call_operand.hbm [shape: f32[32,128], index: 0, kind: input, shape index: {}]   ;;  %s614_s1 = inlined_call_operand.hbm [shape: f32[1,128], index: 1, kind: input, shape index: {}]   ;;  %s615_s2 = inlined_call_operand.hbm [shape: f32[1,128], index: 2, kind: input, shape index: {}]   ;;  %s616_s3 = inlined_call_operand.hbm [shape: f32[128,384], index: 3, kind: input, shape index: {}]   ;;  %s617_s4 = inlined_call_operand.vmem [shape: f32[1,384], index: 4, kind: input, shape index: {}]   ;;  %s618_s5 = inlined_call_operand.vmem [shape: f32[32,384], index: 5, kind: output, shape index: {}]  }
   0x1   :  { %11 = vsyncpa [#allocation5], 0  ;;  %s31_s20 = sshll.u32 %s614_s1, 4  ;;  %s32_s20 = int_to_ptr.hbm [resolvable:$true] %s31_s20 }
   0x2   :  { %12 = vsyncpa [#allocation8], 0  ;;  %s487_s21 = smov [#allocation4]   ;;  %s17_s25 = sshll.u32 %s613_s0, 4  ;;  %s18_s25 = int_to_ptr.hbm [resolvable:$true] %s17_s25 }
   0x3   :  { %s33_s22 = sshll.u32 %s487_s21, 4  ;;  %s488_s26 = smov [#allocation2]   ;;  %s34_s22 = int_to_ptr.vmem [resolvable:$true] %s33_s22 }
   0x4   :  { %36 = dma.hbm_to_vmem [thread:$0]  %s32_s20, 16, %s34_s22, [#allocation5]  }
   0x5   :  { %s19_s27 = sshll.u32 %s488_s26, 4  ;;  %s489_s28 = smov 128   ;;  %s20_s27 = int_to_ptr.vmem [resolvable:$true] %s19_s27 }
   0x6   :  { %s490_s29 = smov 8   ;;  %s42_s1 = sshll.u32 %s615_s2, 4  ;;  %s43_s1 = int_to_ptr.hbm [resolvable:$true] %s42_s1 }
   0x7   :  { %25 = dma.hbm_to_vmem [thread:$0]  %s18_s25, 512, %s20_s27, [#allocation3], %s489_s28, %s489_s28, %s490_s29  }
   0x8   :  { %s491_s7 = smov [#allocation6]   ;;  %s52_s0 = sshll.u32 %s616_s3, 4  ;;  %s53_s0 = int_to_ptr.hbm [resolvable:$true] %s52_s0 }
   0x9   :  { %s44_s8 = sshll.u32 %s491_s7, 4  ;;  %s492_s11 = smov [#allocation7]   ;;  %s45_s8 = int_to_ptr.vmem [resolvable:$true] %s44_s8 }
   0xa   :  { %47 = dma.hbm_to_vmem [thread:$0]  %s43_s1, 16, %s45_s8, [#allocation5]  }
   0xb   :  { %s54_s12 = sshll.u32 %s492_s11, 4  ;;  %s493_s13 = smov 384   ;;  %s55_s12 = int_to_ptr.vmem [resolvable:$true] %s54_s12 }
   0xc   :  { %s494_s14 = smov 24  }
   0xd   :  { %60 = dma.hbm_to_vmem [thread:$0]  %s53_s0, 6144, %s55_s12, [#allocation8], %s493_s13, %s493_s13, %s494_s14  }
   0xe   :  { %481 = dma.done.wait [#allocation3], 512  }
   0xf   :  { %482 = vsyncadd [#allocation3], 4294966784 }
  0x10   :  { %483 = dma.done.wait [#allocation5], 32  }
  0x11   :  { %484 = vsyncadd [#allocation5], 4294967264 }
  0x12   :  { %485 = dma.done.wait [#allocation8], 6144  }
  0x13   :  { %486 = vsyncadd [#allocation8], 4294961152  ;;  %v81_v0 = vld [vmem:[#allocation2 + $0x10] sm:$0xff]  ;;  %v79_v1 = vld [vmem:[#allocation2] sm:$0xff]  ;;  %v495_v4 = vmov 128.0  }
  0x14   :  { %87 = vadd.xlane.f32.xlu1 %v81_v0  ;;  %83 = vadd.xlane.f32.xlu0 %v79_v1  ;;  %v82_v2 = vld [vmem:[#allocation2 + $0x18] sm:$0xff]  ;;  %v80_v3 = vld [vmem:[#allocation2 + $0x8] sm:$0xff]  ;;  %375 = vrcp.f32 %v495_v4 }
  0x15   :  { %v231_v7 = vld [vmem:[#allocation7 + $0x168] sm:$0xff]  ;;  %v232_v8 = vld [vmem:[#allocation7 + $0x170] sm:$0xff]  ;;  %v233_v9 = vld [vmem:[#allocation7 + $0x178] sm:$0xff] }
  0x16   :  { %242 = vmatpush.msra.mxu0 %v231_v7  ;;  %271 = vmatpush.msra.mxu1 %v232_v8  ;;  %v228_v10 = vld [vmem:[#allocation7 + $0x150] sm:$0xff]  ;;  %v229_v11 = vld [vmem:[#allocation7 + $0x158] sm:$0xff]  ;;  %v230_v12 = vld [vmem:[#allocation7 + $0x160] sm:$0xff] }
  0x17   :  { %300 = vmatpush.msra.mxu2 %v233_v9  ;;  %348 = vmatpush.msra.mxu3 %v231_v7  ;;  %v225_v33 = vld [vmem:[#allocation7 + $0x138] sm:$0xff]  ;;  %v226_v34 = vld [vmem:[#allocation7 + $0x140] sm:$0xff]  ;;  %v227_v35 = vld [vmem:[#allocation7 + $0x148] sm:$0xff] }
  0x18   :  { %243 = vmatpush.msra.mxu0 %v228_v10  ;;  %272 = vmatpush.msra.mxu1 %v229_v11  ;;  %v222_v36 = vld [vmem:[#allocation7 + $0x120] sm:$0xff]  ;;  %v223_v37 = vld [vmem:[#allocation7 + $0x128] sm:$0xff]  ;;  %v224_v38 = vld [vmem:[#allocation7 + $0x130] sm:$0xff] }
  0x19   :  { %301 = vmatpush.msra.mxu2 %v230_v12  ;;  %349 = vmatpush.msra.mxu3 %v228_v10  ;;  %v219_v39 = vld [vmem:[#allocation7 + $0x108] sm:$0xff]  ;;  %v220_v40 = vld [vmem:[#allocation7 + $0x110] sm:$0xff]  ;;  %v221_v41 = vld [vmem:[#allocation7 + $0x118] sm:$0xff] }
  0x1a   :  { %v376_v5 = vpop.eup %375  ;;  %244 = vmatpush.msra.mxu0 %v225_v33  ;;  %273 = vmatpush.msra.mxu1 %v226_v34  ;;  %v216_v42 = vld [vmem:[#allocation7 + $0xf0] sm:$0xff]  ;;  %v217_v43 = vld [vmem:[#allocation7 + $0xf8] sm:$0xff]  ;;  %v218_v44 = vld [vmem:[#allocation7 + $0x100] sm:$0xff] }
  0x1b   :  { %v92_v6 = vmul.f32 128.0, %v376_v5  ;;  %vm96_vm0 = vweird.f32 %v376_v5  ;;  %302 = vmatpush.msra.mxu2 %v227_v35  ;;  %350 = vmatpush.msra.mxu3 %v225_v33  ;;  %v213_v45 = vld [vmem:[#allocation7 + $0xd8] sm:$0xff]  ;;  %v214_v46 = vld [vmem:[#allocation7 + $0xe0] sm:$0xff]  ;;  %v215_v47 = vld [vmem:[#allocation7 + $0xe8] sm:$0xff] }
  0x1c   :  { %89 = vadd.xlane.f32.xlu1 %v82_v2  ;;  %85 = vadd.xlane.f32.xlu0 %v80_v3  ;;  %v210_v48 = vld [vmem:[#allocation7 + $0xc0] sm:$0xff]  ;;  %v211_v49 = vld [vmem:[#allocation7 + $0xc8] sm:$0xff]  ;;  %v212_v50 = vld [vmem:[#allocation7 + $0xd0] sm:$0xff] }
  0x1d   :  { %v93_v13 = vsub.f32 1.0, %v92_v6  ;;  %245 = vmatpush.msra.mxu0 %v222_v36  ;;  %274 = vmatpush.msra.mxu1 %v223_v37  ;;  %v207_v51 = vld [vmem:[#allocation7 + $0xa8] sm:$0xff]  ;;  %v208_v52 = vld [vmem:[#allocation7 + $0xb0] sm:$0xff]  ;;  %v209_v53 = vld [vmem:[#allocation7 + $0xb8] sm:$0xff] }
  0x1e   :  { %303 = vmatpush.msra.mxu2 %v224_v38  ;;  %351 = vmatpush.msra.mxu3 %v222_v36  ;;  %v204_v54 = vld [vmem:[#allocation7 + $0x90] sm:$0xff]  ;;  %v205_v55 = vld [vmem:[#allocation7 + $0x98] sm:$0xff]  ;;  %v206_v56 = vld [vmem:[#allocation7 + $0xa0] sm:$0xff] }
  0x1f   :  { %v94_v14 = vmul.f32 %v376_v5, %v93_v13  ;;  %246 = vmatpush.msra.mxu0 %v219_v39  ;;  %275 = vmatpush.msra.mxu1 %v220_v40  ;;  %v201_v57 = vld [vmem:[#allocation7 + $0x78] sm:$0xff]  ;;  %v202_v58 = vld [vmem:[#allocation7 + $0x80] sm:$0xff]  ;;  %v203_v59 = vld [vmem:[#allocation7 + $0x88] sm:$0xff] }
  0x20   :  { %304 = vmatpush.msra.mxu2 %v221_v41  ;;  %352 = vmatpush.msra.mxu3 %v219_v39  ;;  %v198_v60 = vld [vmem:[#allocation7 + $0x60] sm:$0xff]  ;;  %v199_v61 = vld [vmem:[#allocation7 + $0x68] sm:$0xff]  ;;  %v200_v62 = vld [vmem:[#allocation7 + $0x70] sm:$0xff] }
  0x21   :  { %v95_v15 = vadd.f32 %v376_v5, %v94_v14  ;;  %247 = vmatpush.msra.mxu0 %v216_v42  ;;  %276 = vmatpush.msra.mxu1 %v217_v43  ;;  %v195_v63 = vld [vmem:[#allocation7 + $0x48] sm:$0xff]  ;;  %v194_v4 = vld [vmem:[#allocation7 + $0x40] sm:$0xff]  ;;  %v188_v10 = vld [vmem:[#allocation7 + $0x10] sm:$0xff] }
  0x22   :  { %305 = vmatpush.msra.mxu2 %v218_v44  ;;  %353 = vmatpush.msra.mxu3 %v216_v42  ;;  %v190_v6 = vld [vmem:[#allocation7 + $0x20] sm:$0xff]  ;;  %v191_v7 = vld [vmem:[#allocation7 + $0x28] sm:$0xff]  ;;  %v373_v41 = vld [vmem:[#allocation4] ss:$0 sm:$0xff] }
  0x23   :  { %v538_v16 = vsel %vm96_vm0, %v376_v5, %v95_v15  ;;  %248 = vmatpush.msra.mxu0 %v213_v45  ;;  %277 = vmatpush.msra.mxu1 %v214_v46  ;;  %v189_v5 = vld [vmem:[#allocation7 + $0x18] sm:$0xff]  ;;  %v186_v8 = vld [vmem:[#allocation7] sm:$0xff]  ;;  %v187_v9 = vld [vmem:[#allocation7 + $0x8] sm:$0xff] }
  0x24   :  { %306 = vmatpush.msra.mxu2 %v215_v47  ;;  %354 = vmatpush.msra.mxu3 %v213_v45  ;;  %v374_v45 = vld [vmem:[#allocation6] ss:$0 sm:$0xff] }
  0x25   :  { %249 = vmatpush.msra.mxu0 %v210_v48  ;;  %278 = vmatpush.msra.mxu1 %v211_v49 }
  0x26   :  { %307 = vmatpush.msra.mxu2 %v212_v50  ;;  %355 = vmatpush.msra.mxu3 %v210_v48 }
  0x27   :  { %250 = vmatpush.msra.mxu0 %v207_v51  ;;  %279 = vmatpush.msra.mxu1 %v208_v52 }
  0x28   :  { %308 = vmatpush.msra.mxu2 %v209_v53  ;;  %356 = vmatpush.msra.mxu3 %v207_v51 }
  0x29   :  { %251 = vmatpush.msra.mxu0 %v204_v54  ;;  %280 = vmatpush.msra.mxu1 %v205_v55 }
  0x2a   :  { %309 = vmatpush.msra.mxu2 %v206_v56  ;;  %357 = vmatpush.msra.mxu3 %v204_v54 }
  0x2b   :  { %252 = vmatpush.msra.mxu0 %v201_v57  ;;  %281 = vmatpush.msra.mxu1 %v202_v58 }
  0x2c   :  { %310 = vmatpush.msra.mxu2 %v203_v59  ;;  %358 = vmatpush.msra.mxu3 %v201_v57 }
  0x2d   :  { %253 = vmatpush.msra.mxu0 %v198_v60  ;;  %282 = vmatpush.msra.mxu1 %v199_v61 }
  0x2e   :  { %311 = vmatpush.msra.mxu2 %v200_v62  ;;  %359 = vmatpush.msra.mxu3 %v198_v60 }
  0x2f   :  { %254 = vmatpush.msra.mxu0 %v195_v63 }
  0x30   :  { %360 = vmatpush.msra.mxu3 %v195_v63 }
  0x87   :  { %v88_v17 = vpop.xlane.xlu1 %87  ;;  %v84_v18 = vpop.xlane.xlu0 %83 }
  0x88   :  { %v100_v19 = vmul.f32 %v538_v16, %v88_v17  ;;  %v98_v20 = vmul.f32 %v538_v16, %v84_v18 }
  0x8a   :  { %v542_v21 = vsub.f32 %v81_v0, %v100_v19  ;;  %v544_v22 = vsub.f32 %v79_v1, %v98_v20  ;;  %v196_v0 = vld [vmem:[#allocation7 + $0x50] sm:$0xff]  ;;  %v197_v1 = vld [vmem:[#allocation7 + $0x58] sm:$0xff] }
  0x8b   :  { %283 = vmatpush.msra.mxu1 %v196_v0  ;;  %312 = vmatpush.msra.mxu2 %v197_v1 }
  0x8c   :  { %v108_v23 = vmul.f32 %v542_v21, %v542_v21  ;;  %v106_v24 = vmul.f32 %v544_v22, %v544_v22 }
  0x8d   :  { %313 = vmatpush.msra.mxu2 %v194_v4 }
  0x8e   :  { %114 = vadd.xlane.f32.xlu0 %v108_v23  ;;  %110 = vadd.xlane.f32.xlu2 %v106_v24 }
  0x8f   :  { %v90_v25 = vpop.xlane.xlu1 %89  ;;  %v86_v26 = vpop.xlane.xlu0 %85  ;;  %314 = vmatpush.msra.mxu2 %v191_v7 }
  0x90   :  { %v101_v27 = vmul.f32 %v538_v16, %v90_v25  ;;  %v99_v28 = vmul.f32 %v538_v16, %v86_v26 }
  0x91   :  { %315 = vmatpush.msra.mxu2 %v188_v10 }
  0x92   :  { %v552_v29 = vsub.f32 %v82_v2, %v101_v27  ;;  %v554_v30 = vsub.f32 %v80_v3, %v99_v28  ;;  %v192_v2 = vld [vmem:[#allocation7 + $0x30] sm:$0xff]  ;;  %v193_v3 = vld [vmem:[#allocation7 + $0x38] sm:$0xff] }
  0x93   :  { %255 = vmatpush.msra.mxu0 %v192_v2  ;;  %284 = vmatpush.msra.mxu1 %v193_v3 }
  0x94   :  { %v109_v31 = vmul.f32 %v552_v29, %v552_v29  ;;  %v107_v32 = vmul.f32 %v554_v30, %v554_v30  ;;  %361 = vmatpush.msra.mxu3 %v192_v2 }
  0x95   :  { %256 = vmatpush.msra.mxu0 %v189_v5  ;;  %285 = vmatpush.msra.mxu1 %v190_v6 }
  0x96   :  { %116 = vadd.xlane.f32.xlu1 %v109_v31  ;;  %112 = vadd.xlane.f32.xlu2 %v107_v32 }
  0x97   :  { %362 = vmatpush.msra.mxu3 %v189_v5  ;;  %257 = vmatpush.msra.mxu0 %v186_v8 }
  0x98   :  { %286 = vmatpush.msra.mxu1 %v187_v9 }
  0x99   :  { %363 = vmatpush.msra.mxu3 %v186_v8 }
 0x101   :  { %v111_v11 = vpop.xlane.xlu2 %110  ;;  %v115_v12 = vpop.xlane.xlu0 %114 }
 0x102   :  { %v118_v13 = vmul.f32 %v111_v11, %v538_v16  ;;  %v120_v14 = vmul.f32 %v115_v12, %v538_v16 }
 0x104   :  { %v122_v15 = vadd.f32 1e-05, %v118_v13  ;;  %v124_v17 = vadd.f32 1e-05, %v120_v14 }
 0x106   :  { %377 = vrsqrt.f32 %v122_v15  ;;  %vm132_vm2 = vweird.f32 %v122_v15  ;;  %vm152_vm4 = vweird.f32 %v124_v17 }
 0x107   :  { %379 = vrsqrt.f32 %v124_v17 }
 0x109   :  { %v117_v18 = vpop.xlane.xlu1 %116  ;;  %v113_v19 = vpop.xlane.xlu2 %112 }
 0x10a   :  { %v121_v20 = vmul.f32 %v117_v18, %v538_v16  ;;  %v119_v23 = vmul.f32 %v113_v19, %v538_v16 }
 0x10c   :  { %v378_v24 = vpop.eup %377  ;;  %v125_v25 = vadd.f32 1e-05, %v121_v20  ;;  %v123_v26 = vadd.f32 1e-05, %v119_v23 }
 0x10d   :  { %v380_v27 = vpop.eup %379  ;;  %v127_v28 = vmul.f32 %v378_v24, %v122_v15  ;;  %vm133_vm1 = vweird.f32 %v378_v24 }
 0x10e   :  { %v147_v31 = vmul.f32 %v380_v27, %v124_v17  ;;  %381 = vrsqrt.f32 %v125_v25  ;;  %vm134_vm3 = vmor %vm132_vm2, %vm133_vm1  ;;  %vm153_vm5 = vweird.f32 %v380_v27  ;;  %vm142_vm8 = vweird.f32 %v123_v26 }
 0x10f   :  { %v128_v32 = vmul.f32 %v378_v24, %v127_v28  ;;  %383 = vrsqrt.f32 %v123_v26  ;;  %vm565_vm7 = vmor %vm152_vm4, %vm153_vm5  ;;  %vm162_vm10 = vweird.f32 %v125_v25 }
 0x110   :  { %v148_v34 = vmul.f32 %v380_v27, %v147_v31 }
 0x111   :  { %v129_v33 = vmul.f32 0.5, %v128_v32 }
 0x112   :  { %v149_v39 = vmul.f32 0.5, %v148_v34 }
 0x113   :  { %v130_v35 = vsub.f32 1.5, %v129_v33 }
 0x114   :  { %v382_v36 = vpop.eup %381  ;;  %v150_v46 = vsub.f32 1.5, %v149_v39 }
 0x115   :  { %v384_v37 = vpop.eup %383  ;;  %v131_v38 = vmul.f32 %v378_v24, %v130_v35  ;;  %v157_v16 = vmul.f32 %v382_v36, %v125_v25  ;;  %vm163_vm11 = vweird.f32 %v382_v36 }
 0x116   :  { %v137_v40 = vmul.f32 %v384_v37, %v123_v26  ;;  %vm143_vm6 = vweird.f32 %v384_v37  ;;  %v151_v52 = vmul.f32 %v380_v27, %v150_v46  ;;  %vm164_vm12 = vmor %vm162_vm10, %vm163_vm11 }
 0x117   :  { %v135_v42 = vsel %vm134_vm3, %v378_v24, %v131_v38  ;;  %v158_v47 = vmul.f32 %v382_v36, %v157_v16  ;;  %vm144_vm9 = vmor %vm142_vm8, %vm143_vm6 }
 0x118   :  { %v138_v43 = vmul.f32 %v384_v37, %v137_v40  ;;  %v166_v44 = vmul.f32 %v135_v42, %v544_v22  ;;  %v155_v57 = vsel %vm565_vm7, %v380_v27, %v151_v52 }
 0x119   :  { %v159_v54 = vmul.f32 0.5, %v158_v47  ;;  %v168_v61 = vmul.f32 %v155_v57, %v542_v21  ;;  %v234_v21 = vld [vmem:[%s617_s4] sm:$0x7] }
 0x11a   :  { %v139_v48 = vmul.f32 0.5, %v138_v43  ;;  %v174_v49 = vmul.f32 %v373_v41, %v166_v44  ;;  %v236_v4 = vperm.slane %v234_v21, 0  ;;  %v237_v5 = vperm.slane %v234_v21, 1 }
 0x11b   :  { %v160_v58 = vsub.f32 1.5, %v159_v54  ;;  %v176_v63 = vmul.f32 %v373_v41, %v168_v61 }
 0x11c   :  { %v140_v50 = vsub.f32 1.5, %v139_v48  ;;  %v182_v51 = vadd.f32 %v374_v45, %v174_v49 }
 0x11d   :  { %v161_v62 = vmul.f32 %v382_v36, %v160_v58  ;;  %v184_v1 = vadd.f32 %v374_v45, %v176_v63 }
 0x11e   :  { %v141_v55 = vmul.f32 %v384_v37, %v140_v50  ;;  %258 = vmatmul.f32.vlgmr.msra.gmra.mxu0 %v182_v51  ;;  %287 = vmatmul.f32.vlgmr.msra.gmra.mxu1 %v182_v51 }
 0x11f   :  { %316 = vmatmul.f32.vlgmr.msra.gmra.mxu2 %v182_v51  ;;  %v165_v0 = vsel %vm164_vm12, %v382_v36, %v161_v62 }
 0x120   :  { %v145_v22 = vsel %vm144_vm9, %v384_v37, %v141_v55 }
 0x121   :  { %v167_v56 = vmul.f32 %v145_v22, %v554_v30  ;;  %v169_v30 = vmul.f32 %v165_v0, %v552_v29  ;;  %v238_v29 = vperm.slane %v234_v21, 2 }
 0x123   :  { %v175_v59 = vmul.f32 %v373_v41, %v167_v56  ;;  %v177_v2 = vmul.f32 %v373_v41, %v169_v30 }
 0x125   :  { %v183_v60 = vadd.f32 %v374_v45, %v175_v59  ;;  %v185_v3 = vadd.f32 %v374_v45, %v177_v2 }
 0x127   :  { %261 = vmatmul.f32.vlgmr.msra.gmra.mxu3 %v183_v60  ;;  %290 = vmatmul.f32.gmra.mxu1 %v183_v60 }
 0x128   :  { %319 = vmatmul.f32.gmra.mxu2 %v183_v60 }
 0x12f   :  { %264 = vmatmul.f32.gmra.mxu3 %v184_v1  ;;  %293 = vmatmul.f32.gmra.mxu1 %v184_v1 }
 0x130   :  { %322 = vmatmul.f32.gmra.mxu2 %v184_v1 }
 0x137   :  { %267 = vmatmul.f32.gmra.mxu3 %v185_v3  ;;  %296 = vmatmul.f32.gmra.mxu1 %v185_v3 }
 0x138   :  { %325 = vmatmul.f32.gmra.mxu2 %v185_v3 }
 0x19b   :  { %v259_v6 = vpop.f32.mrf.mxu0  ;;  %v288_v7 = vpop.f32.mrf.mxu1 }
 0x19c   :  { %v260_v8 = vadd.f32 %v259_v6, %v236_v4  ;;  %v289_v9 = vadd.f32 %v288_v7, %v237_v5 }
 0x19e   :  { %329 = vst [vmem:[%s618_s5] sm:$0xff] %v260_v8 }
 0x19f   :  { %330 = vst [vmem:[%s618_s5 + $0x8] sm:$0xff] %v289_v9 }
 0x1a2   :  { %v317_v10 = vpop.f32.mrf.mxu2 }
 0x1a3   :  { %v318_v11 = vadd.f32 %v317_v10, %v238_v29 }
 0x1a4   :  { %v291_v12 = vpop.f32.mrf.mxu1 }
 0x1a5   :  { %331 = vst [vmem:[%s618_s5 + $0x10] sm:$0xff] %v318_v11  ;;  %v292_v13 = vadd.f32 %v291_v12, %v237_v5 }
 0x1a7   :  { %333 = vst [vmem:[%s618_s5 + $0x20] sm:$0xff] %v292_v13 }
 0x1aa   :  { %v262_v14 = vpop.f32.mrf.mxu3 }
 0x1ab   :  { %v263_v15 = vadd.f32 %v262_v14, %v236_v4  ;;  %v320_v17 = vpop.f32.mrf.mxu2 }
 0x1ac   :  { %v321_v18 = vadd.f32 %v320_v17, %v238_v29  ;;  %v294_v19 = vpop.f32.mrf.mxu1 }
 0x1ad   :  { %332 = vst [vmem:[%s618_s5 + $0x18] sm:$0xff] %v263_v15  ;;  %v295_v20 = vadd.f32 %v294_v19, %v237_v5 }
 0x1ae   :  { %334 = vst [vmem:[%s618_s5 + $0x28] sm:$0xff] %v321_v18 }
 0x1af   :  { %336 = vst [vmem:[%s618_s5 + $0x38] sm:$0xff] %v295_v20 }
 0x1b2   :  { %v265_v23 = vpop.f32.mrf.mxu3 }
 0x1b3   :  { %v266_v24 = vadd.f32 %v265_v23, %v236_v4  ;;  %v323_v25 = vpop.f32.mrf.mxu2 }
 0x1b4   :  { %v324_v26 = vadd.f32 %v323_v25, %v238_v29  ;;  %v297_v27 = vpop.f32.mrf.mxu1 }
 0x1b5   :  { %335 = vst [vmem:[%s618_s5 + $0x30] sm:$0xff] %v266_v24  ;;  %v298_v28 = vadd.f32 %v297_v27, %v237_v5 }
 0x1b6   :  { %337 = vst [vmem:[%s618_s5 + $0x40] sm:$0xff] %v324_v26 }
 0x1b7   :  { %339 = vst [vmem:[%s618_s5 + $0x50] sm:$0xff] %v298_v28 }
 0x1ba   :  { %v268_v31 = vpop.f32.mrf.mxu3 }
 0x1bb   :  { %v269_v32 = vadd.f32 %v268_v31, %v236_v4  ;;  %v326_v33 = vpop.f32.mrf.mxu2 }
 0x1bc   :  { %v327_v34 = vadd.f32 %v326_v33, %v238_v29 }
 0x1bd   :  { %338 = vst [vmem:[%s618_s5 + $0x48] sm:$0xff] %v269_v32 }
 0x1be   :  { %340 = vst [vmem:[%s618_s5 + $0x58] sm:$0xff] %v327_v34 }
 0x1bf   :  { %345 = vsyncpa [#allocation3], 1 }
 0x1c0   :  { %346 = vsyncpa [#allocation5], 1 }
 0x1c1   :  { %347 = vsyncpa [#allocation8], 1 }

// kernel: separate_block_forward.6
= control target key start
LH: loop header
LB: loop body
LE: loop exit
PB: predicated region body
PF: predicated region fallthrough
CT: control target
= control target key end

     0   :  { %10 = vsyncpa [#allocation6], 0  ;;  %s1334_s18 = smov 0   ;;  %s1336_s19 = smov 0   ;;  %s1553_s0 = inlined_call_operand.vmem [shape: f32[2,16,384], index: 0, kind: input, shape index: {}, may-alias: {0,1,2}]   ;;  %s1554_s1 = inlined_call_operand.vmem [shape: f32[2,16,384], index: 1, kind: input, shape index: {}, may-alias: {0,1,2}]   ;;  %s1555_s2 = inlined_call_operand.vmem [shape: f32[2,16,384], index: 2, kind: input, shape index: {}, may-alias: {0,1,2}]   ;;  %s1556_s3 = inlined_call_operand.hbm [shape: f32[4,16,16], index: 3, kind: input, shape index: {}]   ;;  %s1557_s4 = inlined_call_operand.vmem [shape: f32[2,1,16], index: 4, kind: input, shape index: {}]   ;;  %s1558_s5 = inlined_call_operand.vmem [shape: f32[2,16,128], index: 5, kind: output, shape index: {}]  }
   0x1   :  { %s1338_s20 = smov 0   ;;  %s1340_s21 = smov 0  }
   0x2   :  { %s1342_s22 = smov 0  }
   0x3 LB: > { %s1069_s23 = sadd.s32 4294967295, %s1295_s22   ;;  %s28_s24 = sadd.s32 1, %s1291_s21  ;;  %s1295_s22 = sphi %s1342_s22, %s16_s22   ;;  %s1291_s21 = sphi %s1340_s21, %s1567_s21   ;;  %s1287_s20 = sphi %s1338_s20, %s1566_s20   ;;  %s1283_s19 = sphi %s1336_s19, %s1565_s19   ;;  %s1279_s18 = sphi %s1334_s18, %s1564_s18  }
   0x4   : > { %p30_p0 = scmp.ge.s32.totalorder %s28_s24, 2  ;;  %s37_s25 = sadd.s32 1, %s1283_s19 }
   0x5   : > { %p44_p1 = scmp.ne.s32.totalorder %s1283_s19, %s1279_s18  ;;  %p45_p2 = scmp.eq.s32.totalorder %s1295_s22, 0 }
   0x6   : > { %s1569_s24 = smov (%p30_p0, %s28_s24), 0  ;;  %p1071_p4 = scmp.ge.s32.totalorder %s1295_s22, 1 }
   0x7   : > { %p1367_p3 = por %p45_p2, %p44_p1  ;;  %s32_s27 = ssub.s32 %s1291_s21, %s1569_s24 }
   0x8   : > { %p201_p5 = scmp.lt.s32.totalorder %s1295_s22, 3  ;;  %p35_p6 = scmp.eq.s32.totalorder %s32_s27, 0 }
   0x9   : > { %p1379_p8 = scmp.eq.s32.totalorder %s1069_s23, 0  ;;  %s216_s8 = sshll.u32 %s1556_s3, 4  ;;  %s217_s8 = int_to_ptr.hbm [resolvable:$true] %s216_s8 }
   0xa   : > { %p1375_p7 = pnand %p1071_p4, %p201_p5  ;;  %s1297_s9 = smov [#allocation5]  }
   0xb   : > { %s1384_s30 = scalar_select %p35_p6, %s1283_s19, %s37_s25  }
   0xc   : > { %p1123_p9 = pneg %p1375_p7  ;;  %s218_s10 = sshll.u32 %s1297_s9, 4  ;;  %s219_s10 = int_to_ptr.vmem [resolvable:$true] %s218_s10 }
   0xd   : > { %s1298_s11 = smov 128   ;;  %s1299_s12 = smov 8  }
   0xe   : > { %p1124_p10 = pnand %p1379_p8, %p1123_p9  ;;  %p1073_p11 = scmp.ge.s32.totalorder %s1295_s22, 2 }
  0x10   : > { %1126 = dma.hbm_to_vmem [thread:$0]  (!%p1124_p10), %s217_s8, 1024, %s219_s10, [#allocation6], %s1298_s11, %s1298_s11, %s1299_s12  }
  0x11   : > { %228 = sbr.rel (%p1073_p11) target bundleno = 43 (0x2b), region = 20 }
  0x16   : > { %231 = sbr.rel (!%p1367_p3) target bundleno = 29 (0x1d), region = 24  ;;  %s233_s13 = sand.u32 (%p1367_p3), 1, %s1283_s19  }
  0x17   : > { %s1118_s14 = smul.u32 (%p1367_p3), 48, %s1291_s21  ;;  %s1074_s15 = sshll.u32 (%p1367_p3), %s233_s13, 4 }
  0x18   : > { %s235_s25 = scalar_lea.vmem (%p1367_p3), [#allocation2], %s1074_s15 }
  0x19   : > { %s239_s23 = scalar_lea.vmem (%p1367_p3), %s1553_s0, %s1118_s14 }
  0x1a   : > { %v270_v0 = vld [vmem:[%s239_s23] sm:$0xff] (%p1367_p3)  ;;  %v272_v1 = vld [vmem:[%s239_s23 + $0x18] sm:$0xff] (%p1367_p3) }
  0x1b   : > { %271 = vst [vmem:[%s235_s25] sm:$0xff] %v270_v0 }
  0x1c   : > { %273 = vst [vmem:[%s235_s25 + $0x8] sm:$0xff] %v272_v1 }
  0x1d PF: > { %279 = sbr.rel (!%p1367_p3) target bundleno = 36 (0x24), region = 62  ;;  %s281_s27 = sand.u32 (%p1367_p3), 1, %s1283_s19  }
  0x1e   : > { %s1077_s6 = smul.u32 (%p1367_p3), 48, %s1291_s21  ;;  %s1076_s7 = sshll.u32 (%p1367_p3), %s281_s27, 4 }
  0x1f   : > { %s283_s11 = scalar_lea.vmem (%p1367_p3), [#allocation3], %s1076_s7 }
  0x20   : > { %s961_s10 = scalar_lea.vmem (%p1367_p3), %s1554_s1, %s1077_s6 }
  0x21   : > { %v1078_v2 = vld [vmem:[%s961_s10 + $0x8] sm:$0xff] (%p1367_p3)  ;;  %v1079_v3 = vld [vmem:[%s961_s10 + $0x20] sm:$0xff] (%p1367_p3) }
  0x22   : > { %320 = vst [vmem:[%s283_s11] sm:$0xff] %v1078_v2 }
  0x23   : > { %322 = vst [vmem:[%s283_s11 + $0x8] sm:$0xff] %v1079_v3 }
  0x24 PF: > { %328 = sbr.rel (!%p1367_p3) target bundleno = 43 (0x2b), region = 100  ;;  %s330_s12 = sand.u32 (%p1367_p3), 1, %s1283_s19  }
  0x25   : > { %s1081_s13 = smul.u32 (%p1367_p3), 48, %s1291_s21  ;;  %s1080_s14 = sshll.u32 (%p1367_p3), %s330_s12, 4 }
  0x26   : > { %s332_s23 = scalar_lea.vmem (%p1367_p3), [#allocation4], %s1080_s14 }
  0x27   : > { %s968_s17 = scalar_lea.vmem (%p1367_p3), %s1555_s2, %s1081_s13 }
  0x28   : > { %v1082_v4 = vld [vmem:[%s968_s17 + $0x10] sm:$0xff] (%p1367_p3)  ;;  %v1083_v5 = vld [vmem:[%s968_s17 + $0x28] sm:$0xff] (%p1367_p3) }
  0x29   : > { %369 = vst [vmem:[%s332_s23] sm:$0xff] %v1082_v4 }
  0x2a   : > { %371 = vst [vmem:[%s332_s23 + $0x8] sm:$0xff] %v1083_v5 }
  0x2b PF: > { %386 = sbr.rel (%p1375_p7) target bundleno = 864 (0x360), region = 142  ;;  %s389_s26 = sand.u32 (!%p1375_p7), 1, %s1279_s18  }
  0x2c   : > { %s1418_s25 = sshll.u32 (!%p1375_p7), %s389_s26, 4 }
  0x2d   : > { %s391_s27 = scalar_lea.vmem (!%p1375_p7), [#allocation2], %s1418_s25  ;;  %s398_s6 = scalar_lea.vmem (!%p1375_p7), [#allocation3], %s1418_s25 }
  0x2e   : > { %s405_s7 = scalar_lea.vmem (!%p1375_p7), [#allocation4], %s1418_s25 }
  0x30   : > { %1274 = dma.done.wait (%p1379_p8), [#allocation6], 1024  }
  0x31   : > { %1276 = vsyncadd (%p1379_p8), [#allocation6], 4294966272  ;;  %v480_v6 = vld [vmem:[%s398_s6 + $0x8] sm:$0xff]  ;;  %v479_v7 = vld [vmem:[%s398_s6] sm:$0xff]  ;;  %s1300_s28 = smov 64   ;;  %s1301_s18 = smov 32  }
  0x32   : > { %489 = vrot.lane.b32.xlu0 %v480_v6, %s1300_s28  ;;  %487 = vrot.lane.b32.xlu1 %v479_v7, %s1300_s28  ;;  %v463_v8 = vld [vmem:[%s391_s27] sm:$0xff]  ;;  %v464_v9 = vld [vmem:[%s391_s27 + $0x8] sm:$0xff]  ;;  %s1302_s29 = smov 96   ;;  %vm517_vm0 = vcmask 261120   ;;  %p452_p12 = scmp.lt.s32.totalorder %s1287_s20, 1  ;;  %v1303_v24 = vmov 0  }
  0x33   : > { %471 = vrot.lane.b32.xlu2 %v463_v8, %s1300_s28  ;;  %1091 = vmatpush.xpose.msk.msra.mxu0 %vm517_vm0, %v480_v6  ;;  %v654_v29 = vld [vmem:[#allocation5 + $0x20] sm:$0xff]  ;;  %v651_v33 = vld [vmem:[#allocation5 + $0x8] sm:$0xff]  ;;  %vm679_vm3 = vcmask 130048   ;;  %v656_v39 = vld [vmem:[#allocation5 + $0x30] sm:$0xff]  ;;  %vm910_vm4 = vcmask 523264   ;;  %vm913_vm5 = vcmask 785408  }
  0x34   : > { %s1571_s20 = smov (!%p452_p12, %s1287_s20), 1  ;;  %v652_v45 = vld [vmem:[#allocation5 + $0x10] sm:$0xff]  ;;  %v655_v52 = vld [vmem:[#allocation5 + $0x28] sm:$0xff]  ;;  %v657_v55 = vld [vmem:[#allocation5 + $0x38] sm:$0xff] }
  0x35   : > { %s454_s10 = scalar_lea.vmem %s1557_s4, %s1571_s20  ;;  %v653_v60 = vld [vmem:[#allocation5 + $0x18] sm:$0xff]  ;;  %v650_v3 = vld [vmem:[#allocation5] sm:$0xff]  ;;  %s1117_s11 = sshll.u32 %s1571_s20, 4 }
  0x36   : > { %v666_v23 = vld [vmem:[%s454_s10] sm:$0x1]  ;;  %s462_s14 = scalar_lea.vmem %s1558_s5, %s1117_s11 }
  0x37   : > { %1092 = vmatpush.xpose.msk.msra.mxu0 %vm517_vm0, %v479_v7  ;;  %vm667_vm1 = vcmp.gt.f32.partialorder %v666_v23, 0.0 }
  0x38   : > { %v668_v25 = vsel %vm667_vm1, 1, %v1303_v24 }
  0x39   : > { %v669_v26 = vperm.slane %v668_v25, 0 }
  0x3a   : > { %493 = vrot.lane.b32.xlu0 %v480_v6, %s1301_s18  ;;  %491 = vrot.lane.b32.xlu1 %v479_v7, %s1301_s18 }
  0x3b   : > { %475 = vrot.lane.b32.xlu2 %v463_v8, %s1301_s18  ;;  %1093 = vmatmul.msk.f32.vlgmr.msra.gmra.mxu0 %vm517_vm0, %v463_v8  ;;  %vm1463_vm2 = vcmp.eq.s32.totalorder %v669_v26, 1 }
  0x42   : > { %485 = vrot.lane.b32.xlu0 %v480_v6, %s1302_s29  ;;  %473 = vrot.lane.b32.xlu1 %v464_v9, %s1300_s28 }
  0x43   : > { %483 = vrot.lane.b32.xlu2 %v479_v7, %s1302_s29  ;;  %1094 = vmatmul.msk.f32.gmra.mxu0 %vm517_vm0, %v464_v9 }
  0x4a   : > { %477 = vrot.lane.b32.xlu0 %v464_v9, %s1301_s18  ;;  %467 = vrot.lane.b32.xlu1 %v463_v8, %s1302_s29 }
  0x4b   : > { %469 = vrot.lane.b32.xlu2 %v464_v9, %s1302_s29 }
  0x8d   : > { %v472_v10 = vpop.permute.xlu2 %471 }
  0x95   : > { %v476_v13 = vpop.permute.xlu2 %475 }
  0x9d   : > { %v484_v18 = vpop.permute.xlu2 %483 }
  0xa4   : > { %v490_v11 = vpop.permute.xlu0 %489  ;;  %v488_v12 = vpop.permute.xlu1 %487 }
  0xa5   : > { %1099 = vmatpush.xpose.msk.msra.mxu2 %vm517_vm0, %v490_v11  ;;  %v470_v21 = vpop.permute.xlu2 %469 }
  0xa9   : > { %1100 = vmatpush.xpose.msk.msra.mxu2 %vm517_vm0, %v488_v12 }
  0xac   : > { %v494_v14 = vpop.permute.xlu0 %493  ;;  %v492_v15 = vpop.permute.xlu1 %491  ;;  %1101 = vmatmul.msk.f32.vlgmr.msra.gmra.mxu2 %vm517_vm0, %v472_v10 }
  0xad   : > { %1103 = vmatpush.xpose.msk.msra.mxu3 %vm517_vm0, %v494_v14 }
  0xb1   : > { %1104 = vmatpush.xpose.msk.msra.mxu3 %vm517_vm0, %v492_v15  ;;  %v495_v15 = vld [vmem:[%s405_s7] sm:$0xff] }
  0xb4   : > { %v486_v16 = vpop.permute.xlu0 %485  ;;  %v474_v17 = vpop.permute.xlu1 %473  ;;  %1105 = vmatmul.msk.f32.vlgmr.msra.gmra.mxu3 %vm517_vm0, %v476_v13  ;;  %v496_v13 = vld [vmem:[%s405_s7 + $0x8] sm:$0xff] }
  0xb5   : > { %1102 = vmatmul.msk.f32.gmra.mxu2 %vm517_vm0, %v474_v17  ;;  %1095 = vmatpush.xpose.msk.msra.mxu1 %vm517_vm0, %v486_v16 }
  0xb6   : > { %788 = vmatpush.msrb.mxu0 %v496_v13 }
  0xb8   : > { %v543_v22 = vpop.f32.mrf.mxu0  ;;  %789 = vmatpush.msrb.mxu0 %v495_v15 }
  0xb9   : > { %1096 = vmatpush.xpose.msk.msra.mxu1 %vm517_vm0, %v484_v18  ;;  %v642_v63 = vmul.f32 0.17677669, %v543_v22 }
  0xbb   : > { %v658_v8 = vadd.f32 %v650_v3, %v642_v63 }
  0xbc   : > { %v478_v19 = vpop.permute.xlu0 %477  ;;  %v468_v20 = vpop.permute.xlu1 %467 }
  0xbd   : > { %1097 = vmatmul.msk.f32.vlgmr.msra.gmra.mxu1 %vm517_vm0, %v468_v20  ;;  %1106 = vmatmul.msk.f32.gmra.mxu3 %vm517_vm0, %v478_v19  ;;  %v671_v9 = vsel %vm1463_vm2, %v658_v8, -1e+30 }
  0xbe   : > { %v680_v10 = vsel %vm679_vm3, %v671_v9, -inf }
  0xc0   : > { %v546_v27 = vpop.f32.mrf.mxu0 }
  0xc1   : > { %v643_v31 = vmul.f32 0.17677669, %v546_v27 }
  0xc3   : > { %v659_v36 = vadd.f32 %v651_v33, %v643_v31 }
  0xc5   : > { %1098 = vmatmul.msk.f32.gmra.mxu1 %vm517_vm0, %v470_v21  ;;  %v1472_v41 = vsel %vm1463_vm2, %v659_v36, -1e+30 }
  0xc6   : > { %v683_v47 = vsel %vm679_vm3, %v1472_v41, -inf }
 0x12f   : > { %v605_v28 = vpop.f32.mrf.mxu2 }
 0x130   : > { %v646_v30 = vmul.f32 0.17677669, %v605_v28 }
 0x132   : > { %v662_v34 = vadd.f32 %v654_v29, %v646_v30 }
 0x134   : > { %v675_v35 = vsel %vm1463_vm2, %v662_v34, -1e+30 }
 0x135   : > { %v692_v37 = vsel %vm679_vm3, %v675_v35, -inf }
 0x136   : > { %693 = vmax.xlane.f32.xlu0 %v692_v37  ;;  %v1176_v37 = vpack.i.bf16 %v495_v15, %v496_v13 }
 0x137   : > { %v636_v38 = vpop.f32.mrf.mxu3 }
 0x138   : > { %v648_v40 = vmul.f32 0.17677669, %v636_v38  ;;  %v608_v43 = vpop.f32.mrf.mxu2 }
 0x139   : > { %v647_v49 = vmul.f32 0.17677669, %v608_v43 }
 0x13a   : > { %v664_v42 = vadd.f32 %v656_v39, %v648_v40  ;;  %v574_v44 = vpop.f32.mrf.mxu1 }
 0x13b   : > { %v644_v46 = vmul.f32 0.17677669, %v574_v44  ;;  %v663_v57 = vadd.f32 %v655_v52, %v647_v49 }
 0x13c   : > { %v677_v48 = vsel %vm1463_vm2, %v664_v42, -1e+30 }
 0x13d   : > { %v660_v50 = vadd.f32 %v652_v45, %v644_v46  ;;  %v698_v51 = vsel %vm679_vm3, %v677_v48, -inf  ;;  %v676_v2 = vsel %vm1463_vm2, %v663_v57, -1e+30 }
 0x13e   : > { %699 = vmax.xlane.f32.xlu1 %v698_v51  ;;  %684 = vmax.xlane.f32.xlu0 %v683_v47  ;;  %v695_v6 = vsel %vm679_vm3, %v676_v2, -inf }
 0x13f   : > { %v673_v53 = vsel %vm1463_vm2, %v660_v50, -1e+30 }
 0x140   : > { %v639_v54 = vpop.f32.mrf.mxu3  ;;  %v686_v56 = vsel %vm679_vm3, %v673_v53, -inf }
 0x141   : > { %v649_v58 = vmul.f32 0.17677669, %v639_v54  ;;  %687 = vmax.xlane.f32.xlu2 %v686_v56 }
 0x142   : > { %v577_v59 = vpop.f32.mrf.mxu1 }
 0x143   : > { %v665_v61 = vadd.f32 %v657_v55, %v649_v58  ;;  %v645_v62 = vmul.f32 0.17677669, %v577_v59 }
 0x145   : > { %v661_v0 = vadd.f32 %v653_v60, %v645_v62  ;;  %v678_v1 = vsel %vm1463_vm2, %v665_v61, -1e+30 }
 0x146   : > { %v701_v4 = vsel %vm679_vm3, %v678_v1, -inf }
 0x147   : > { %702 = vmax.xlane.f32.xlu0 %v701_v4  ;;  %v674_v5 = vsel %vm1463_vm2, %v661_v0, -1e+30 }
 0x148   : > { %v689_v7 = vsel %vm679_vm3, %v674_v5, -inf }
 0x149   : > { %696 = vmax.xlane.f32.xlu2 %v695_v6  ;;  %690 = vmax.xlane.f32.xlu1 %v689_v7 }
 0x151   : > { %681 = vmax.xlane.f32.xlu2 %v680_v10 }
 0x1a9   : > { %v694_v11 = vpop.xlane.xlu0 %693 }
 0x1aa   : > { %v708_v12 = vsub.f32 %v675_v35, %v694_v11 }
 0x1ac   : > { %v720_v14 = vmul.f32 1.442695, %v708_v12 }
 0x1ae   : > { %1191 = vpow2.f32 %v720_v14 }
 0x1b1   : > { %v700_v16 = vpop.xlane.xlu1 %699  ;;  %v685_v18 = vpop.xlane.xlu0 %684 }
 0x1b2   : > { %v710_v17 = vsub.f32 %v677_v48, %v700_v16  ;;  %v705_v50 = vsub.f32 %v1472_v41, %v685_v18 }
 0x1b4   : > { %v1498_v19 = vpop.eup %1191  ;;  %v724_v20 = vmul.f32 1.442695, %v710_v17  ;;  %v688_v21 = vpop.xlane.xlu2 %687  ;;  %v714_v52 = vmul.f32 1.442695, %v705_v50 }
 0x1b5   : > { %v706_v22 = vsub.f32 %v673_v53, %v688_v21  ;;  %v740_v23 = vsel %vm679_vm3, %v1498_v19, 0.0 }
 0x1b6   : > { %1193 = vpow2.f32 %v724_v20  ;;  %741 = vadd.xlane.f32.xlu1 %v740_v23 }
 0x1b7   : > { %v716_v24 = vmul.f32 1.442695, %v706_v22 }
 0x1b9   : > { %1195 = vpow2.f32 %v716_v24 }
 0x1ba   : > { %v703_v27 = vpop.xlane.xlu0 %702 }
 0x1bb   : > { %v711_v32 = vsub.f32 %v678_v1, %v703_v27 }
 0x1bc   : > { %v1194_v25 = vpop.eup %1193  ;;  %v697_v26 = vpop.xlane.xlu2 %696 }
 0x1bd   : > { %v709_v28 = vsub.f32 %v676_v2, %v697_v26  ;;  %v746_v29 = vsel %vm679_vm3, %v1194_v25, 0.0  ;;  %v726_v34 = vmul.f32 1.442695, %v711_v32  ;;  %v691_v40 = vpop.xlane.xlu1 %690 }
 0x1be   : > { %747 = vadd.xlane.f32.xlu2 %v746_v29  ;;  %v707_v42 = vsub.f32 %v674_v5, %v691_v40 }
 0x1bf   : > { %v1503_v30 = vpop.eup %1195  ;;  %v722_v31 = vmul.f32 1.442695, %v709_v28 }
 0x1c0   : > { %v734_v33 = vsel %vm679_vm3, %v1503_v30, 0.0  ;;  %v718_v44 = vmul.f32 1.442695, %v707_v42 }
 0x1c1   : > { %735 = vadd.xlane.f32.xlu0 %v734_v33  ;;  %1197 = vpow2.f32 %v722_v31 }
 0x1c2   : > { %1199 = vpow2.f32 %v726_v34 }
 0x1c3   : > { %1201 = vpow2.f32 %v718_v44 }
 0x1c4   : > { %v682_v43 = vpop.xlane.xlu2 %681 }
 0x1c5   : > { %v704_v45 = vsub.f32 %v671_v9, %v682_v43 }
 0x1c7   : > { %v1198_v35 = vpop.eup %1197  ;;  %v712_v46 = vmul.f32 1.442695, %v704_v45 }
 0x1c8   : > { %v743_v36 = vsel %vm679_vm3, %v1198_v35, 0.0  ;;  %v1200_v38 = vpop.eup %1199 }
 0x1c9   : > { %744 = vadd.xlane.f32.xlu0 %v743_v36  ;;  %v749_v39 = vsel %vm679_vm3, %v1200_v38, 0.0  ;;  %v1202_v47 = vpop.eup %1201  ;;  %1203 = vpow2.f32 %v712_v46 }
 0x1ca   : > { %v737_v48 = vsel %vm679_vm3, %v1202_v47, 0.0  ;;  %1205 = vpow2.f32 %v714_v52 }
 0x1cf   : > { %1177 = vrot.lane.b32.xlu1 %v1176_v37, %s1300_s28  ;;  %v1204_v49 = vpop.eup %1203 }
 0x1d0   : > { %v728_v51 = vsel %vm679_vm3, %v1204_v49, 0.0  ;;  %v1206_v53 = vpop.eup %1205 }
 0x1d1   : > { %750 = vadd.xlane.f32.xlu0 %v749_v39  ;;  %v731_v54 = vsel %vm679_vm3, %v1206_v53, 0.0 }
 0x1d6   : > { %1182 = vrot.lane.b32.xlu2 %v1176_v37, %s1301_s18 }
 0x1e5   : > { %1187 = vrot.lane.b32.xlu0 %v1176_v37, %s1302_s29 }
 0x1f9   : > { %738 = vadd.xlane.f32.xlu1 %v737_v48 }
 0x1ff   : > { %729 = vadd.xlane.f32.xlu2 %v728_v51 }
 0x20f   : > { %732 = vadd.xlane.f32.xlu0 %v731_v54 }
 0x229   : > { %v742_v57 = vpop.xlane.xlu1 %741 }
 0x231   : > { %v748_v55 = vpop.xlane.xlu2 %747 }
 0x232   : > { %1207 = vrcp.f32 %v748_v55 }
 0x233   : > { %1209 = vrcp.f32 %v742_v57 }
 0x234   : > { %v736_v56 = vpop.xlane.xlu0 %735 }
 0x238   : > { %v1208_v59 = vpop.eup %1207 }
 0x239   : > { %v1183_v58 = vpop.permute.xlu2 %1182  ;;  %v766_v62 = vmul.f32 %v1208_v59, %v1194_v25  ;;  %v1210_v0 = vpop.eup %1209 }
 0x23a   : > { %v1184_v60 = vunpack.i.l.bf16 %v1183_v58  ;;  %v1185_v61 = vunpack.i.h.bf16 %v1183_v58  ;;  %v764_v4 = vmul.f32 %v1210_v0, %v1498_v19 }
 0x23c   : > { %875 = vmatpush.msrb.mxu3 %v1184_v60  ;;  %v745_v41 = vpop.xlane.xlu0 %744 }
 0x23d   : > { %1211 = vrcp.f32 %v745_v41 }
 0x23e   : > { %876 = vmatpush.msrb.mxu3 %v1185_v61 }
 0x23f   : > { %1113 = vmatmul.msk.f32.vlgmr.msrb.gmra.mxu3 %vm679_vm3, %v766_v62 }
 0x241   : > { %v1178_v63 = vpop.permute.xlu1 %1177 }
 0x242   : > { %v1179_v1 = vunpack.i.l.bf16 %v1178_v63  ;;  %v1180_v2 = vunpack.i.h.bf16 %v1178_v63 }
 0x243   : > { %v1212_v5 = vpop.eup %1211 }
 0x244   : > { %846 = vmatpush.msrb.mxu2 %v1179_v1  ;;  %v751_v3 = vpop.xlane.xlu0 %750  ;;  %v765_v8 = vmul.f32 %v1212_v5, %v1198_v35 }
 0x245   : > { %1213 = vrcp.f32 %v751_v3 }
 0x246   : > { %847 = vmatpush.msrb.mxu2 %v1180_v2  ;;  %1215 = vrcp.f32 %v736_v56 }
 0x247   : > { %1111 = vmatmul.msk.f32.vlgmr.msrb.gmra.mxu2 %vm679_vm3, %v764_v4 }
 0x24b   : > { %v1214_v6 = vpop.eup %1213 }
 0x24c   : > { %v767_v7 = vmul.f32 %v1214_v6, %v1200_v38  ;;  %v1216_v10 = vpop.eup %1215 }
 0x24d   : > { %v762_v13 = vmul.f32 %v1216_v10, %v1503_v30 }
 0x24e   : > { %1114 = vmatmul.msk.f32.gmra.mxu3 %vm679_vm3, %v767_v7 }
 0x24f   : > { %1112 = vmatmul.msk.f32.gmra.mxu2 %vm679_vm3, %v765_v8 }
 0x257   : > { %v1188_v9 = vpop.permute.xlu0 %1187 }
 0x258   : > { %v1189_v11 = vunpack.i.l.bf16 %v1188_v9  ;;  %v1190_v12 = vunpack.i.h.bf16 %v1188_v9 }
 0x25a   : > { %817 = vmatpush.msrb.mxu1 %v1189_v11 }
 0x25c   : > { %818 = vmatpush.msrb.mxu1 %v1190_v12 }
 0x25d   : > { %1109 = vmatmul.msk.f32.vlgmr.msrb.gmra.mxu1 %vm679_vm3, %v762_v13 }
 0x26c   : > { %v739_v14 = vpop.xlane.xlu1 %738 }
 0x26d   : > { %1217 = vrcp.f32 %v739_v14 }
 0x272   : > { %v730_v15 = vpop.xlane.xlu2 %729 }
 0x273   : > { %v1218_v16 = vpop.eup %1217  ;;  %1219 = vrcp.f32 %v730_v15 }
 0x274   : > { %v763_v17 = vmul.f32 %v1218_v16, %v1202_v47 }
 0x276   : > { %1110 = vmatmul.msk.f32.gmra.mxu1 %vm679_vm3, %v763_v17 }
 0x279   : > { %v1220_v18 = vpop.eup %1219 }
 0x27a   : > { %v760_v19 = vmul.f32 %v1220_v18, %v1204_v49 }
 0x27c   : > { %1107 = vmatmul.msk.f32.vlgmr.msrb.gmra.mxu0 %vm679_vm3, %v760_v19 }
 0x282   : > { %v733_v20 = vpop.xlane.xlu0 %732 }
 0x283   : > { %1221 = vrcp.f32 %v733_v20 }
 0x289   : > { %v1222_v21 = vpop.eup %1221 }
 0x28a   : > { %v761_v22 = vmul.f32 %v1222_v21, %v1206_v53 }
 0x28c   : > { %1108 = vmatmul.msk.f32.gmra.mxu0 %vm679_vm3, %v761_v22 }
 0x2c2   : > { %v878_v25 = vpop.f32.mrf.mxu3 }
 0x2ca   : > { %v849_v23 = vpop.f32.mrf.mxu2 }
 0x2cb   : > { %894 = vrot.lane.b32.xlu0 %v849_v23, %s1300_s28 }
 0x2d1   : > { %v881_v27 = vpop.f32.mrf.mxu3 }
 0x2d2   : > { %v852_v26 = vpop.f32.mrf.mxu2 }
 0x2da   : > { %v820_v24 = vpop.f32.mrf.mxu1 }
 0x2db   : > { %886 = vrot.lane.b32.xlu1 %v820_v24, %s1301_s18 }
 0x2e3   : > { %896 = vrot.lane.b32.xlu1 %v852_v26, %s1300_s28 }
 0x2eb   : > { %904 = vrot.lane.b32.xlu1 %v881_v27, %s1302_s29 }
 0x2f3   : > { %v823_v28 = vpop.f32.mrf.mxu1 }
 0x2f4   : > { %888 = vrot.lane.b32.xlu2 %v823_v28, %s1301_s18 }
 0x2f9   : > { %v791_v31 = vpop.f32.mrf.mxu0 }
 0x2fc   : > { %902 = vrot.lane.b32.xlu2 %v878_v25, %s1302_s29 }
 0x309   : > { %v794_v38 = vpop.f32.mrf.mxu0 }
 0x33d   : > { %v895_v33 = vpop.permute.xlu0 %894 }
 0x34d   : > { %v887_v29 = vpop.permute.xlu1 %886 }
 0x34e   : > { %v889_v30 = vpop.permute.xlu2 %888  ;;  %v908_v32 = vsel %vm517_vm0, %v791_v31, %v887_v29 }
 0x34f   : > { %v911_v35 = vsel %vm910_vm4, %v908_v32, %v895_v33  ;;  %v909_v39 = vsel %vm517_vm0, %v794_v38, %v889_v30 }
 0x355   : > { %v897_v34 = vpop.permute.xlu1 %896 }
 0x356   : > { %v903_v36 = vpop.permute.xlu2 %902  ;;  %v912_v40 = vsel %vm910_vm4, %v909_v39, %v897_v34 }
 0x357   : > { %v914_v37 = vsel %vm913_vm5, %v911_v35, %v903_v36 }
 0x358   : > { %916 = vst [vmem:[%s462_s14] sm:$0xff] %v914_v37 }
 0x35d   : > { %v905_v42 = vpop.permute.xlu1 %904 }
 0x35e   : > { %v915_v43 = vsel %vm913_vm5, %v912_v40, %v905_v42 }
 0x35f   : > { %917 = vst [vmem:[%s462_s14 + $0x8] sm:$0xff] %v915_v43 }
 0x360 PF: > { %s16_s22 = sadd.s32 1, %s1295_s22   ;;  %s1564_s18 = smov %s1283_s19 }
 0x361   : > { %p13_p13 = scmp.ge.s32.totalorder %s16_s22, 4   ;;  %s1565_s19 = smov %s1384_s30 }
 0x362   : > { %s1566_s20 = smov %s1291_s21  ;;  %s1567_s21 = smov %s1569_s24 }
 0x363   :  { %15 = sbr.rel (!%p13_p13) target bundleno = 3 (0x3), region = 214 }
 0x368   :  { %945 = vsyncpa [#allocation6], 1 }
 0x369   :  { %947 = vsyncpa [#allocation6 + $0x1], 1 }

// kernel: separate_block_forward.9
= control target key start
LH: loop header
LB: loop body
LE: loop exit
PB: predicated region body
PF: predicated region fallthrough
CT: control target
= control target key end

     0   :  { %s584_s0 = inlined_call_operand.vmem [shape: f32[32,512], index: 0, kind: input, shape index: {}]   ;;  %s585_s1 = inlined_call_operand.vmem [shape: f32[512,128], index: 1, kind: input, shape index: {}]   ;;  %s586_s2 = inlined_call_operand.vmem [shape: f32[1,128], index: 2, kind: input, shape index: {}]   ;;  %s587_s3 = inlined_call_operand.vmem [shape: f32[1,128], index: 3, kind: input, shape index: {}]   ;;  %s588_s4 = inlined_call_operand.vmem [shape: f32[32,128], index: 4, kind: input, shape index: {}]   ;;  %s589_s5 = inlined_call_operand.hbm [shape: f32[32,128], index: 5, kind: output, shape index: {}]  }
   0x1   :  { %v84_v0 = vld [vmem:[%s585_s1 + $0x178] sm:$0xff]  ;;  %v83_v2 = vld [vmem:[%s585_s1 + $0x170] sm:$0xff]  ;;  %v82_v6 = vld [vmem:[%s585_s1 + $0x168] sm:$0xff] }
   0x2   :  { %v52_v1 = vld [vmem:[%s585_s1 + $0x78] sm:$0xff]  ;;  %163 = vmatpush.msra.mxu2 %v84_v0  ;;  %v51_v4 = vld [vmem:[%s585_s1 + $0x70] sm:$0xff]  ;;  %v50_v8 = vld [vmem:[%s585_s1 + $0x68] sm:$0xff] }
   0x3   :  { %105 = vmatpush.msra.mxu0 %v52_v1  ;;  %v100_v3 = vld [vmem:[%s585_s1 + $0x1f8] sm:$0xff]  ;;  %v99_v7 = vld [vmem:[%s585_s1 + $0x1f0] sm:$0xff]  ;;  %v98_v10 = vld [vmem:[%s585_s1 + $0x1e8] sm:$0xff] }
   0x4   :  { %v68_v5 = vld [vmem:[%s585_s1 + $0xf8] sm:$0xff]  ;;  %192 = vmatpush.msra.mxu3 %v100_v3  ;;  %164 = vmatpush.msra.mxu2 %v83_v2  ;;  %v67_v9 = vld [vmem:[%s585_s1 + $0xf0] sm:$0xff]  ;;  %v81_v11 = vld [vmem:[%s585_s1 + $0x160] sm:$0xff] }
   0x5   :  { %134 = vmatpush.msra.mxu1 %v68_v5  ;;  %106 = vmatpush.msra.mxu0 %v51_v4  ;;  %v49_v12 = vld [vmem:[%s585_s1 + $0x60] sm:$0xff]  ;;  %v66_v13 = vld [vmem:[%s585_s1 + $0xe8] sm:$0xff]  ;;  %v80_v16 = vld [vmem:[%s585_s1 + $0x158] sm:$0xff] }
   0x6   :  { %193 = vmatpush.msra.mxu3 %v99_v7  ;;  %165 = vmatpush.msra.mxu2 %v82_v6  ;;  %v97_v14 = vld [vmem:[%s585_s1 + $0x1e0] sm:$0xff]  ;;  %v48_v17 = vld [vmem:[%s585_s1 + $0x58] sm:$0xff]  ;;  %v79_v20 = vld [vmem:[%s585_s1 + $0x150] sm:$0xff] }
   0x7   :  { %135 = vmatpush.msra.mxu1 %v67_v9  ;;  %107 = vmatpush.msra.mxu0 %v50_v8  ;;  %v65_v15 = vld [vmem:[%s585_s1 + $0xe0] sm:$0xff]  ;;  %v96_v18 = vld [vmem:[%s585_s1 + $0x1d8] sm:$0xff]  ;;  %v47_v21 = vld [vmem:[%s585_s1 + $0x50] sm:$0xff] }
   0x8   :  { %194 = vmatpush.msra.mxu3 %v98_v10  ;;  %166 = vmatpush.msra.mxu2 %v81_v11  ;;  %v64_v19 = vld [vmem:[%s585_s1 + $0xd8] sm:$0xff]  ;;  %v95_v22 = vld [vmem:[%s585_s1 + $0x1d0] sm:$0xff]  ;;  %v78_v24 = vld [vmem:[%s585_s1 + $0x148] sm:$0xff] }
   0x9   :  { %136 = vmatpush.msra.mxu1 %v66_v13  ;;  %108 = vmatpush.msra.mxu0 %v49_v12  ;;  %v63_v23 = vld [vmem:[%s585_s1 + $0xd0] sm:$0xff]  ;;  %v46_v25 = vld [vmem:[%s585_s1 + $0x48] sm:$0xff]  ;;  %v77_v28 = vld [vmem:[%s585_s1 + $0x140] sm:$0xff] }
   0xa   :  { %195 = vmatpush.msra.mxu3 %v97_v14  ;;  %167 = vmatpush.msra.mxu2 %v80_v16  ;;  %v94_v26 = vld [vmem:[%s585_s1 + $0x1c8] sm:$0xff]  ;;  %v45_v29 = vld [vmem:[%s585_s1 + $0x40] sm:$0xff]  ;;  %v76_v32 = vld [vmem:[%s585_s1 + $0x138] sm:$0xff] }
   0xb   :  { %137 = vmatpush.msra.mxu1 %v65_v15  ;;  %109 = vmatpush.msra.mxu0 %v48_v17  ;;  %v62_v27 = vld [vmem:[%s585_s1 + $0xc8] sm:$0xff]  ;;  %v93_v30 = vld [vmem:[%s585_s1 + $0x1c0] sm:$0xff]  ;;  %v44_v33 = vld [vmem:[%s585_s1 + $0x38] sm:$0xff] }
   0xc   :  { %196 = vmatpush.msra.mxu3 %v96_v18  ;;  %168 = vmatpush.msra.mxu2 %v79_v20  ;;  %v61_v31 = vld [vmem:[%s585_s1 + $0xc0] sm:$0xff]  ;;  %v92_v34 = vld [vmem:[%s585_s1 + $0x1b8] sm:$0xff]  ;;  %v75_v36 = vld [vmem:[%s585_s1 + $0x130] sm:$0xff] }
   0xd   :  { %138 = vmatpush.msra.mxu1 %v64_v19  ;;  %110 = vmatpush.msra.mxu0 %v47_v21  ;;  %v60_v35 = vld [vmem:[%s585_s1 + $0xb8] sm:$0xff]  ;;  %v43_v37 = vld [vmem:[%s585_s1 + $0x30] sm:$0xff]  ;;  %v74_v40 = vld [vmem:[%s585_s1 + $0x128] sm:$0xff] }
   0xe   :  { %197 = vmatpush.msra.mxu3 %v95_v22  ;;  %169 = vmatpush.msra.mxu2 %v78_v24  ;;  %v91_v38 = vld [vmem:[%s585_s1 + $0x1b0] sm:$0xff]  ;;  %v42_v41 = vld [vmem:[%s585_s1 + $0x28] sm:$0xff]  ;;  %v73_v44 = vld [vmem:[%s585_s1 + $0x120] sm:$0xff] }
   0xf   :  { %139 = vmatpush.msra.mxu1 %v63_v23  ;;  %111 = vmatpush.msra.mxu0 %v46_v25  ;;  %v59_v39 = vld [vmem:[%s585_s1 + $0xb0] sm:$0xff]  ;;  %v90_v42 = vld [vmem:[%s585_s1 + $0x1a8] sm:$0xff]  ;;  %v41_v45 = vld [vmem:[%s585_s1 + $0x20] sm:$0xff] }
  0x10   :  { %198 = vmatpush.msra.mxu3 %v94_v26  ;;  %170 = vmatpush.msra.mxu2 %v77_v28  ;;  %v58_v43 = vld [vmem:[%s585_s1 + $0xa8] sm:$0xff]  ;;  %v89_v46 = vld [vmem:[%s585_s1 + $0x1a0] sm:$0xff]  ;;  %v72_v48 = vld [vmem:[%s585_s1 + $0x118] sm:$0xff] }
  0x11   :  { %140 = vmatpush.msra.mxu1 %v62_v27  ;;  %112 = vmatpush.msra.mxu0 %v45_v29  ;;  %v57_v47 = vld [vmem:[%s585_s1 + $0xa0] sm:$0xff]  ;;  %v40_v49 = vld [vmem:[%s585_s1 + $0x18] sm:$0xff]  ;;  %v71_v52 = vld [vmem:[%s585_s1 + $0x110] sm:$0xff] }
  0x12   :  { %199 = vmatpush.msra.mxu3 %v93_v30  ;;  %171 = vmatpush.msra.mxu2 %v76_v32  ;;  %v88_v50 = vld [vmem:[%s585_s1 + $0x198] sm:$0xff]  ;;  %v39_v53 = vld [vmem:[%s585_s1 + $0x10] sm:$0xff]  ;;  %v70_v54 = vld [vmem:[%s585_s1 + $0x108] sm:$0xff] }
  0x13   :  { %141 = vmatpush.msra.mxu1 %v61_v31  ;;  %113 = vmatpush.msra.mxu0 %v44_v33  ;;  %v56_v51 = vld [vmem:[%s585_s1 + $0x98] sm:$0xff]  ;;  %v87_v55 = vld [vmem:[%s585_s1 + $0x190] sm:$0xff]  ;;  %v38_v57 = vld [vmem:[%s585_s1 + $0x8] sm:$0xff] }
  0x14   :  { %200 = vmatpush.msra.mxu3 %v92_v34  ;;  %172 = vmatpush.msra.mxu2 %v75_v36  ;;  %v55_v56 = vld [vmem:[%s585_s1 + $0x90] sm:$0xff]  ;;  %v86_v58 = vld [vmem:[%s585_s1 + $0x188] sm:$0xff] }
  0x15   :  { %142 = vmatpush.msra.mxu1 %v60_v35  ;;  %114 = vmatpush.msra.mxu0 %v43_v37  ;;  %v54_v59 = vld [vmem:[%s585_s1 + $0x88] sm:$0xff] }
  0x16   :  { %201 = vmatpush.msra.mxu3 %v91_v38  ;;  %173 = vmatpush.msra.mxu2 %v74_v40 }
  0x17   :  { %143 = vmatpush.msra.mxu1 %v59_v39  ;;  %115 = vmatpush.msra.mxu0 %v42_v41 }
  0x18   :  { %202 = vmatpush.msra.mxu3 %v90_v42  ;;  %174 = vmatpush.msra.mxu2 %v73_v44 }
  0x19   :  { %144 = vmatpush.msra.mxu1 %v58_v43  ;;  %116 = vmatpush.msra.mxu0 %v41_v45 }
  0x1a   :  { %203 = vmatpush.msra.mxu3 %v89_v46  ;;  %175 = vmatpush.msra.mxu2 %v72_v48 }
  0x1b   :  { %145 = vmatpush.msra.mxu1 %v57_v47  ;;  %117 = vmatpush.msra.mxu0 %v40_v49 }
  0x1c   :  { %204 = vmatpush.msra.mxu3 %v88_v50  ;;  %176 = vmatpush.msra.mxu2 %v71_v52 }
  0x1d   :  { %146 = vmatpush.msra.mxu1 %v56_v51  ;;  %118 = vmatpush.msra.mxu0 %v39_v53 }
  0x1e   :  { %10 = vsyncpa [#allocation3], 0  ;;  %205 = vmatpush.msra.mxu3 %v87_v55  ;;  %v69_v60 = vld [vmem:[%s585_s1 + $0x100] sm:$0xff]  ;;  %177 = vmatpush.msra.mxu2 %v70_v54  ;;  %v23_v62 = vld [vmem:[%s584_s0 + $0x10] sm:$0xff]  ;;  %s247_s12 = sshll.u32 %s589_s5, 4  ;;  %s291_s15 = smov 128   ;;  %s248_s12 = int_to_ptr.hbm [resolvable:$true] %s247_s12 }
  0x1f   :  { %147 = vmatpush.msra.mxu1 %v55_v56  ;;  %v37_v61 = vld [vmem:[%s585_s1] sm:$0xff]  ;;  %119 = vmatpush.msra.mxu0 %v38_v57  ;;  %v24_v1 = vld [vmem:[%s584_s0 + $0x18] sm:$0xff]  ;;  %v22_v3 = vld [vmem:[%s584_s0 + $0x8] sm:$0xff]  ;;  %s292_s16 = smov 8  }
  0x20   :  { %v85_v63 = vld [vmem:[%s585_s1 + $0x180] sm:$0xff]  ;;  %206 = vmatpush.msra.mxu3 %v86_v58  ;;  %178 = vmatpush.msra.mxu2 %v69_v60  ;;  %v27_v4 = vld [vmem:[%s584_s0 + $0x30] sm:$0xff]  ;;  %v28_v6 = vld [vmem:[%s584_s0 + $0x38] sm:$0xff] }
  0x21   :  { %148 = vmatpush.msra.mxu1 %v54_v59  ;;  %v21_v0 = vld [vmem:[%s584_s0] sm:$0xff]  ;;  %120 = vmatpush.msra.mxu0 %v37_v61  ;;  %v26_v7 = vld [vmem:[%s584_s0 + $0x28] sm:$0xff]  ;;  %v31_v8 = vld [vmem:[%s584_s0 + $0x50] sm:$0xff] }
  0x22   :  { %v53_v2 = vld [vmem:[%s585_s1 + $0x80] sm:$0xff]  ;;  %179 = vmatmul.f32.vlgmr.msra.gmra.mxu2 %v23_v62  ;;  %207 = vmatpush.msra.mxu3 %v85_v63  ;;  %v32_v10 = vld [vmem:[%s584_s0 + $0x58] sm:$0xff]  ;;  %v30_v11 = vld [vmem:[%s584_s0 + $0x48] sm:$0xff]  ;;  %s290_s1 = smov [#allocation2]  }
  0x23   :  { %121 = vmatmul.f32.vlgmr.msra.gmra.mxu0 %v21_v0  ;;  %208 = vmatmul.f32.vlgmr.msra.gmra.mxu3 %v24_v1  ;;  %v25_v5 = vld [vmem:[%s584_s0 + $0x20] sm:$0xff]  ;;  %v35_v12 = vld [vmem:[%s584_s0 + $0x70] sm:$0xff]  ;;  %v36_v14 = vld [vmem:[%s584_s0 + $0x78] sm:$0xff]  ;;  %s245_s9 = sshll.u32 %s290_s1, 4  ;;  %s246_s9 = int_to_ptr.vmem [resolvable:$true] %s245_s9 }
  0x24   :  { %149 = vmatpush.msra.mxu1 %v53_v2  ;;  %v29_v9 = vld [vmem:[%s584_s0 + $0x40] sm:$0xff]  ;;  %v34_v15 = vld [vmem:[%s584_s0 + $0x68] sm:$0xff]  ;;  %v223_v49 = vld [vmem:[%s588_s4 + $0x10] sm:$0xff] }
  0x25   :  { %150 = vmatmul.f32.vlgmr.msra.gmra.mxu1 %v22_v3  ;;  %v33_v13 = vld [vmem:[%s584_s0 + $0x60] sm:$0xff]  ;;  %v222_v38 = vld [vmem:[%s588_s4 + $0x8] sm:$0xff]  ;;  %v224_v59 = vld [vmem:[%s588_s4 + $0x18] sm:$0xff] }
  0x26   :  { %v262_v16 = vld [vmem:[%s586_s2] ss:$0 sm:$0xff] }
  0x27   :  { %v263_v24 = vld [vmem:[%s587_s3] ss:$0 sm:$0xff] }
  0x28   :  { %v221_v27 = vld [vmem:[%s588_s4] sm:$0xff] }
  0x2a   :  { %182 = vmatmul.f32.gmra.mxu2 %v27_v4 }
  0x2b   :  { %124 = vmatmul.f32.gmra.mxu0 %v25_v5  ;;  %211 = vmatmul.f32.gmra.mxu3 %v28_v6 }
  0x2d   :  { %153 = vmatmul.f32.gmra.mxu1 %v26_v7 }
  0x32   :  { %185 = vmatmul.f32.gmra.mxu2 %v31_v8 }
  0x33   :  { %127 = vmatmul.f32.gmra.mxu0 %v29_v9  ;;  %214 = vmatmul.f32.gmra.mxu3 %v32_v10 }
  0x35   :  { %156 = vmatmul.f32.gmra.mxu1 %v30_v11 }
  0x3a   :  { %188 = vmatmul.f32.gmra.mxu2 %v35_v12 }
  0x3b   :  { %130 = vmatmul.f32.gmra.mxu0 %v33_v13  ;;  %217 = vmatmul.f32.gmra.mxu3 %v36_v14 }
  0x3d   :  { %159 = vmatmul.f32.gmra.mxu1 %v34_v15 }
  0xa0   :  { %v122_v17 = vpop.f32.mrf.mxu0 }
  0xa1   :  { %v123_v18 = vadd.f32 %v262_v16, %v122_v17 }
  0xa2   :  { %v151_v19 = vpop.f32.mrf.mxu1 }
  0xa3   :  { %v152_v20 = vadd.f32 %v151_v19, %v123_v18 }
  0xa5   :  { %v180_v21 = vpop.f32.mrf.mxu2 }
  0xa6   :  { %v181_v22 = vadd.f32 %v180_v21, %v152_v20  ;;  %v209_v23 = vpop.f32.mrf.mxu3 }
  0xa8   :  { %v210_v25 = vadd.f32 %v209_v23, %v181_v22  ;;  %v125_v26 = vpop.f32.mrf.mxu0 }
  0xa9   :  { %v126_v28 = vadd.f32 %v262_v16, %v125_v26 }
  0xaa   :  { %v229_v29 = vmul.f32 %v263_v24, %v210_v25  ;;  %v154_v30 = vpop.f32.mrf.mxu1 }
  0xab   :  { %v155_v31 = vadd.f32 %v154_v30, %v126_v28 }
  0xac   :  { %v233_v32 = vadd.f32 %v229_v29, %v221_v27 }
  0xad   :  { %v183_v33 = vpop.f32.mrf.mxu2 }
  0xae   :  { %237 = vst [vmem:[#allocation2] sm:$0xff] %v233_v32  ;;  %v184_v34 = vadd.f32 %v183_v33, %v155_v31  ;;  %v212_v35 = vpop.f32.mrf.mxu3 }
  0xb0   :  { %v213_v36 = vadd.f32 %v212_v35, %v184_v34  ;;  %v128_v37 = vpop.f32.mrf.mxu0 }
  0xb1   :  { %v129_v39 = vadd.f32 %v262_v16, %v128_v37 }
  0xb2   :  { %v230_v40 = vmul.f32 %v263_v24, %v213_v36  ;;  %v157_v41 = vpop.f32.mrf.mxu1 }
  0xb3   :  { %v158_v42 = vadd.f32 %v157_v41, %v129_v39 }
  0xb4   :  { %v234_v43 = vadd.f32 %v230_v40, %v222_v38 }
  0xb5   :  { %v186_v44 = vpop.f32.mrf.mxu2 }
  0xb6   :  { %238 = vst [vmem:[#allocation2 + $0x8] sm:$0xff] %v234_v43  ;;  %v187_v45 = vadd.f32 %v186_v44, %v158_v42  ;;  %v215_v46 = vpop.f32.mrf.mxu3 }
  0xb8   :  { %v216_v47 = vadd.f32 %v215_v46, %v187_v45  ;;  %v131_v48 = vpop.f32.mrf.mxu0 }
  0xb9   :  { %v132_v50 = vadd.f32 %v262_v16, %v131_v48 }
  0xba   :  { %v231_v51 = vmul.f32 %v263_v24, %v216_v47  ;;  %v160_v52 = vpop.f32.mrf.mxu1 }
  0xbb   :  { %v161_v53 = vadd.f32 %v160_v52, %v132_v50 }
  0xbc   :  { %v235_v54 = vadd.f32 %v231_v51, %v223_v49 }
  0xbd   :  { %v189_v55 = vpop.f32.mrf.mxu2 }
  0xbe   :  { %239 = vst [vmem:[#allocation2 + $0x10] sm:$0xff] %v235_v54  ;;  %v190_v56 = vadd.f32 %v189_v55, %v161_v53  ;;  %v218_v57 = vpop.f32.mrf.mxu3 }
  0xc0   :  { %v219_v58 = vadd.f32 %v218_v57, %v190_v56 }
  0xc2   :  { %v232_v60 = vmul.f32 %v263_v24, %v219_v58 }
  0xc4   :  { %v236_v61 = vadd.f32 %v232_v60, %v224_v59 }
  0xc6   :  { %240 = vst [vmem:[#allocation2 + $0x18] sm:$0xff] %v236_v61 }
  0xc7   :  { %253 = dma.vmem_to_hbm [thread:$0]  %s246_s9, 512, %s248_s12, [#allocation3], %s291_s15, %s291_s15, %s292_s16  }
  0xc8   :  { %288 = dma.done.wait [#allocation3], 512  }
  0xc9   :  { %289 = vsyncadd [#allocation3], 4294966784 }
  0xca   :  { %258 = vsyncpa [#allocation3], 1 }

// kernel: separate_block_forward.8
= control target key start
LH: loop header
LB: loop body
LE: loop exit
PB: predicated region body
PF: predicated region fallthrough
CT: control target
= control target key end

     0   :  { %v1054_v4 = vmov 128.0   ;;  %s1862_s0 = inlined_call_operand.vmem [shape: f32[32,128], index: 0, kind: input, shape index: {}]   ;;  %s1863_s3 = inlined_call_operand.vmem [shape: f32[128,512], index: 3, kind: input, shape index: {}]   ;;  %s1864_s1 = inlined_call_operand.vmem [shape: f32[1,128], index: 1, kind: input, shape index: {}]   ;;  %s1865_s2 = inlined_call_operand.vmem [shape: f32[1,128], index: 2, kind: input, shape index: {}]   ;;  %s1866_s4 = inlined_call_operand.vmem [shape: f32[1,512], index: 4, kind: input, shape index: {}]   ;;  %s1867_s5 = inlined_call_operand.vmem [shape: f32[32,512], index: 5, kind: output, shape index: {}]  }
   0x1   :  { %v22_v0 = vld [vmem:[%s1862_s0 + $0x10] sm:$0xff]  ;;  %v20_v1 = vld [vmem:[%s1862_s0] sm:$0xff]  ;;  %v23_v2 = vld [vmem:[%s1862_s0 + $0x18] sm:$0xff]  ;;  %980 = vrcp.f32 %v1054_v4 }
   0x2   :  { %28 = vadd.xlane.f32.xlu1 %v22_v0  ;;  %24 = vadd.xlane.f32.xlu0 %v20_v1  ;;  %v21_v3 = vld [vmem:[%s1862_s0 + $0x8] sm:$0xff]  ;;  %v187_v7 = vld [vmem:[%s1863_s3 + $0x1e0] sm:$0xff]  ;;  %v189_v9 = vld [vmem:[%s1863_s3 + $0x1f0] sm:$0xff] }
   0x3   :  { %v188_v8 = vld [vmem:[%s1863_s3 + $0x1e8] sm:$0xff]  ;;  %201 = vmatpush.msra.mxu0 %v187_v7  ;;  %v190_v10 = vld [vmem:[%s1863_s3 + $0x1f8] sm:$0xff]  ;;  %v183_v11 = vld [vmem:[%s1863_s3 + $0x1c0] sm:$0xff]  ;;  %259 = vmatpush.msra.mxu2 %v189_v9 }
   0x4   :  { %230 = vmatpush.msra.mxu1 %v188_v8  ;;  %v184_v12 = vld [vmem:[%s1863_s3 + $0x1c8] sm:$0xff]  ;;  %288 = vmatpush.msra.mxu3 %v190_v10  ;;  %v185_v13 = vld [vmem:[%s1863_s3 + $0x1d0] sm:$0xff]  ;;  %v186_v14 = vld [vmem:[%s1863_s3 + $0x1d8] sm:$0xff] }
   0x5   :  { %202 = vmatpush.msra.mxu0 %v183_v11  ;;  %260 = vmatpush.msra.mxu2 %v185_v13  ;;  %v179_v35 = vld [vmem:[%s1863_s3 + $0x1a0] sm:$0xff]  ;;  %v180_v36 = vld [vmem:[%s1863_s3 + $0x1a8] sm:$0xff]  ;;  %v181_v37 = vld [vmem:[%s1863_s3 + $0x1b0] sm:$0xff] }
   0x6   :  { %231 = vmatpush.msra.mxu1 %v184_v12  ;;  %289 = vmatpush.msra.mxu3 %v186_v14  ;;  %v182_v38 = vld [vmem:[%s1863_s3 + $0x1b8] sm:$0xff]  ;;  %v175_v39 = vld [vmem:[%s1863_s3 + $0x180] sm:$0xff]  ;;  %v176_v40 = vld [vmem:[%s1863_s3 + $0x188] sm:$0xff] }
   0x7   :  { %v981_v5 = vpop.eup %980  ;;  %203 = vmatpush.msra.mxu0 %v179_v35  ;;  %261 = vmatpush.msra.mxu2 %v181_v37  ;;  %v177_v41 = vld [vmem:[%s1863_s3 + $0x190] sm:$0xff]  ;;  %v178_v42 = vld [vmem:[%s1863_s3 + $0x198] sm:$0xff]  ;;  %v171_v43 = vld [vmem:[%s1863_s3 + $0x160] sm:$0xff] }
   0x8   :  { %v33_v6 = vmul.f32 128.0, %v981_v5  ;;  %vm37_vm0 = vweird.f32 %v981_v5  ;;  %232 = vmatpush.msra.mxu1 %v180_v36  ;;  %290 = vmatpush.msra.mxu3 %v182_v38  ;;  %v172_v44 = vld [vmem:[%s1863_s3 + $0x168] sm:$0xff]  ;;  %v173_v45 = vld [vmem:[%s1863_s3 + $0x170] sm:$0xff]  ;;  %v174_v46 = vld [vmem:[%s1863_s3 + $0x178] sm:$0xff] }
   0x9   :  { %204 = vmatpush.msra.mxu0 %v175_v39  ;;  %262 = vmatpush.msra.mxu2 %v177_v41  ;;  %v167_v47 = vld [vmem:[%s1863_s3 + $0x140] sm:$0xff]  ;;  %v168_v48 = vld [vmem:[%s1863_s3 + $0x148] sm:$0xff]  ;;  %v169_v49 = vld [vmem:[%s1863_s3 + $0x150] sm:$0xff] }
   0xa   :  { %30 = vadd.xlane.f32.xlu1 %v23_v2  ;;  %26 = vadd.xlane.f32.xlu0 %v21_v3  ;;  %v34_v15 = vsub.f32 1.0, %v33_v6  ;;  %v170_v50 = vld [vmem:[%s1863_s3 + $0x158] sm:$0xff]  ;;  %v163_v51 = vld [vmem:[%s1863_s3 + $0x120] sm:$0xff]  ;;  %v164_v52 = vld [vmem:[%s1863_s3 + $0x128] sm:$0xff] }
   0xb   :  { %233 = vmatpush.msra.mxu1 %v176_v40  ;;  %291 = vmatpush.msra.mxu3 %v178_v42  ;;  %v165_v53 = vld [vmem:[%s1863_s3 + $0x130] sm:$0xff]  ;;  %v166_v54 = vld [vmem:[%s1863_s3 + $0x138] sm:$0xff]  ;;  %v159_v55 = vld [vmem:[%s1863_s3 + $0x100] sm:$0xff] }
   0xc   :  { %v35_v16 = vmul.f32 %v981_v5, %v34_v15  ;;  %205 = vmatpush.msra.mxu0 %v171_v43  ;;  %263 = vmatpush.msra.mxu2 %v173_v45  ;;  %v160_v56 = vld [vmem:[%s1863_s3 + $0x108] sm:$0xff]  ;;  %v161_v57 = vld [vmem:[%s1863_s3 + $0x110] sm:$0xff]  ;;  %v162_v58 = vld [vmem:[%s1863_s3 + $0x118] sm:$0xff] }
   0xd   :  { %234 = vmatpush.msra.mxu1 %v172_v44  ;;  %292 = vmatpush.msra.mxu3 %v174_v46  ;;  %v155_v59 = vld [vmem:[%s1863_s3 + $0xe0] sm:$0xff]  ;;  %v156_v60 = vld [vmem:[%s1863_s3 + $0xe8] sm:$0xff]  ;;  %v157_v61 = vld [vmem:[%s1863_s3 + $0xf0] sm:$0xff] }
   0xe   :  { %v36_v17 = vadd.f32 %v981_v5, %v35_v16  ;;  %206 = vmatpush.msra.mxu0 %v167_v47  ;;  %264 = vmatpush.msra.mxu2 %v169_v49  ;;  %v158_v62 = vld [vmem:[%s1863_s3 + $0xf8] sm:$0xff]  ;;  %v151_v63 = vld [vmem:[%s1863_s3 + $0xc0] sm:$0xff]  ;;  %v148_v4 = vld [vmem:[%s1863_s3 + $0xa8] sm:$0xff] }
   0xf   :  { %235 = vmatpush.msra.mxu1 %v168_v48  ;;  %293 = vmatpush.msra.mxu3 %v170_v50  ;;  %v150_v6 = vld [vmem:[%s1863_s3 + $0xb8] sm:$0xff]  ;;  %v143_v7 = vld [vmem:[%s1863_s3 + $0x80] sm:$0xff]  ;;  %v144_v8 = vld [vmem:[%s1863_s3 + $0x88] sm:$0xff] }
  0x10   :  { %v1121_v18 = vsel %vm37_vm0, %v981_v5, %v36_v17  ;;  %207 = vmatpush.msra.mxu0 %v163_v51  ;;  %265 = vmatpush.msra.mxu2 %v165_v53  ;;  %v149_v5 = vld [vmem:[%s1863_s3 + $0xb0] sm:$0xff]  ;;  %v146_v10 = vld [vmem:[%s1863_s3 + $0x98] sm:$0xff]  ;;  %v139_v11 = vld [vmem:[%s1863_s3 + $0x60] sm:$0xff] }
  0x11   :  { %236 = vmatpush.msra.mxu1 %v164_v52  ;;  %294 = vmatpush.msra.mxu3 %v166_v54  ;;  %v145_v9 = vld [vmem:[%s1863_s3 + $0x90] sm:$0xff]  ;;  %v140_v12 = vld [vmem:[%s1863_s3 + $0x68] sm:$0xff]  ;;  %v142_v14 = vld [vmem:[%s1863_s3 + $0x78] sm:$0xff] }
  0x12   :  { %208 = vmatpush.msra.mxu0 %v159_v55  ;;  %266 = vmatpush.msra.mxu2 %v161_v57  ;;  %v141_v13 = vld [vmem:[%s1863_s3 + $0x70] sm:$0xff]  ;;  %v135_v15 = vld [vmem:[%s1863_s3 + $0x40] sm:$0xff]  ;;  %v136_v16 = vld [vmem:[%s1863_s3 + $0x48] sm:$0xff] }
  0x13   :  { %237 = vmatpush.msra.mxu1 %v160_v56  ;;  %295 = vmatpush.msra.mxu3 %v162_v58  ;;  %v137_v17 = vld [vmem:[%s1863_s3 + $0x50] sm:$0xff]  ;;  %v978_v57 = vld [vmem:[%s1864_s1] ss:$0 sm:$0xff] }
  0x14   :  { %209 = vmatpush.msra.mxu0 %v155_v59  ;;  %267 = vmatpush.msra.mxu2 %v157_v61  ;;  %v979_v61 = vld [vmem:[%s1865_s2] ss:$0 sm:$0xff] }
  0x15   :  { %238 = vmatpush.msra.mxu1 %v156_v60  ;;  %296 = vmatpush.msra.mxu3 %v158_v62 }
  0x16   :  { %210 = vmatpush.msra.mxu0 %v151_v63 }
  0x75   :  { %v29_v19 = vpop.xlane.xlu1 %28  ;;  %v25_v20 = vpop.xlane.xlu0 %24 }
  0x76   :  { %v41_v21 = vmul.f32 %v1121_v18, %v29_v19  ;;  %v39_v22 = vmul.f32 %v1121_v18, %v25_v20  ;;  %v138_v19 = vld [vmem:[%s1863_s3 + $0x58] sm:$0xff]  ;;  %v131_v20 = vld [vmem:[%s1863_s3 + $0x20] sm:$0xff] }
  0x78   :  { %v1125_v23 = vsub.f32 %v22_v0, %v41_v21  ;;  %v1127_v24 = vsub.f32 %v20_v1, %v39_v22  ;;  %v152_v0 = vld [vmem:[%s1863_s3 + $0xc8] sm:$0xff]  ;;  %v153_v1 = vld [vmem:[%s1863_s3 + $0xd0] sm:$0xff] }
  0x79   :  { %239 = vmatpush.msra.mxu1 %v152_v0  ;;  %268 = vmatpush.msra.mxu2 %v153_v1  ;;  %v132_v21 = vld [vmem:[%s1863_s3 + $0x28] sm:$0xff]  ;;  %v133_v22 = vld [vmem:[%s1863_s3 + $0x30] sm:$0xff] }
  0x7a   :  { %v49_v25 = vmul.f32 %v1125_v23, %v1125_v23  ;;  %v47_v26 = vmul.f32 %v1127_v24, %v1127_v24 }
  0x7b   :  { %240 = vmatpush.msra.mxu1 %v148_v4  ;;  %269 = vmatpush.msra.mxu2 %v149_v5 }
  0x7c   :  { %55 = vadd.xlane.f32.xlu0 %v49_v25  ;;  %51 = vadd.xlane.f32.xlu2 %v47_v26  ;;  %v134_v25 = vld [vmem:[%s1863_s3 + $0x38] sm:$0xff]  ;;  %v127_v26 = vld [vmem:[%s1863_s3] sm:$0xff] }
  0x7d   :  { %v31_v27 = vpop.xlane.xlu1 %30  ;;  %v27_v28 = vpop.xlane.xlu0 %26  ;;  %241 = vmatpush.msra.mxu1 %v144_v8  ;;  %270 = vmatpush.msra.mxu2 %v145_v9 }
  0x7e   :  { %v42_v29 = vmul.f32 %v1121_v18, %v31_v27  ;;  %v40_v30 = vmul.f32 %v1121_v18, %v27_v28  ;;  %v128_v27 = vld [vmem:[%s1863_s3 + $0x8] sm:$0xff]  ;;  %v129_v28 = vld [vmem:[%s1863_s3 + $0x10] sm:$0xff] }
  0x7f   :  { %242 = vmatpush.msra.mxu1 %v140_v12  ;;  %271 = vmatpush.msra.mxu2 %v141_v13 }
  0x80   :  { %v1135_v31 = vsub.f32 %v23_v2, %v42_v29  ;;  %v1137_v32 = vsub.f32 %v21_v3, %v40_v30  ;;  %v154_v2 = vld [vmem:[%s1863_s3 + $0xd8] sm:$0xff]  ;;  %v147_v3 = vld [vmem:[%s1863_s3 + $0xa0] sm:$0xff] }
  0x81   :  { %297 = vmatpush.msra.mxu3 %v154_v2  ;;  %211 = vmatpush.msra.mxu0 %v147_v3  ;;  %v130_v29 = vld [vmem:[%s1863_s3 + $0x18] sm:$0xff] }
  0x82   :  { %v50_v33 = vmul.f32 %v1135_v31, %v1135_v31  ;;  %v48_v34 = vmul.f32 %v1137_v32, %v1137_v32  ;;  %243 = vmatpush.msra.mxu1 %v136_v16  ;;  %272 = vmatpush.msra.mxu2 %v137_v17 }
  0x83   :  { %298 = vmatpush.msra.mxu3 %v150_v6  ;;  %212 = vmatpush.msra.mxu0 %v143_v7 }
  0x84   :  { %57 = vadd.xlane.f32.xlu1 %v50_v33  ;;  %53 = vadd.xlane.f32.xlu2 %v48_v34 }
  0x85   :  { %299 = vmatpush.msra.mxu3 %v146_v10  ;;  %213 = vmatpush.msra.mxu0 %v139_v11 }
  0x86   :  { %244 = vmatpush.msra.mxu1 %v132_v21  ;;  %273 = vmatpush.msra.mxu2 %v133_v22 }
  0x87   :  { %300 = vmatpush.msra.mxu3 %v142_v14  ;;  %214 = vmatpush.msra.mxu0 %v135_v15 }
  0x88   :  { %245 = vmatpush.msra.mxu1 %v128_v27  ;;  %274 = vmatpush.msra.mxu2 %v129_v28 }
  0x89   :  { %301 = vmatpush.msra.mxu3 %v138_v19  ;;  %215 = vmatpush.msra.mxu0 %v131_v20 }
  0x8b   :  { %302 = vmatpush.msra.mxu3 %v134_v25  ;;  %216 = vmatpush.msra.mxu0 %v127_v26 }
  0x8d   :  { %303 = vmatpush.msra.mxu3 %v130_v29 }
  0xef   :  { %v52_v30 = vpop.xlane.xlu2 %51  ;;  %v56_v33 = vpop.xlane.xlu0 %55 }
  0xf0   :  { %v59_v34 = vmul.f32 %v52_v30, %v1121_v18  ;;  %v61_v35 = vmul.f32 %v56_v33, %v1121_v18 }
  0xf2   :  { %v63_v36 = vadd.f32 1e-05, %v59_v34  ;;  %v65_v37 = vadd.f32 1e-05, %v61_v35 }
  0xf4   :  { %982 = vrsqrt.f32 %v63_v36  ;;  %vm73_vm2 = vweird.f32 %v63_v36  ;;  %vm93_vm4 = vweird.f32 %v65_v37 }
  0xf5   :  { %984 = vrsqrt.f32 %v65_v37 }
  0xf7   :  { %v58_v38 = vpop.xlane.xlu1 %57  ;;  %v54_v39 = vpop.xlane.xlu2 %53 }
  0xf8   :  { %v62_v40 = vmul.f32 %v58_v38, %v1121_v18  ;;  %v60_v41 = vmul.f32 %v54_v39, %v1121_v18 }
  0xfa   :  { %v983_v42 = vpop.eup %982  ;;  %v66_v43 = vadd.f32 1e-05, %v62_v40  ;;  %v64_v44 = vadd.f32 1e-05, %v60_v41 }
  0xfb   :  { %v985_v45 = vpop.eup %984  ;;  %v68_v46 = vmul.f32 %v983_v42, %v63_v36  ;;  %vm74_vm1 = vweird.f32 %v983_v42 }
  0xfc   :  { %v88_v47 = vmul.f32 %v985_v45, %v65_v37  ;;  %986 = vrsqrt.f32 %v66_v43  ;;  %vm75_vm3 = vmor %vm73_vm2, %vm74_vm1  ;;  %vm94_vm5 = vweird.f32 %v985_v45  ;;  %vm83_vm8 = vweird.f32 %v64_v44 }
  0xfd   :  { %v69_v48 = vmul.f32 %v983_v42, %v68_v46  ;;  %988 = vrsqrt.f32 %v64_v44  ;;  %vm1322_vm7 = vmor %vm93_vm4, %vm94_vm5  ;;  %vm103_vm10 = vweird.f32 %v66_v43 }
  0xfe   :  { %v89_v50 = vmul.f32 %v985_v45, %v88_v47 }
  0xff   :  { %v70_v49 = vmul.f32 0.5, %v69_v48 }
 0x100   :  { %v90_v55 = vmul.f32 0.5, %v89_v50 }
 0x101   :  { %v71_v51 = vsub.f32 1.5, %v70_v49 }
 0x102   :  { %v987_v52 = vpop.eup %986  ;;  %v91_v62 = vsub.f32 1.5, %v90_v55 }
 0x103   :  { %v989_v53 = vpop.eup %988  ;;  %v72_v54 = vmul.f32 %v983_v42, %v71_v51  ;;  %v98_v18 = vmul.f32 %v987_v52, %v66_v43  ;;  %vm104_vm11 = vweird.f32 %v987_v52 }
 0x104   :  { %v78_v56 = vmul.f32 %v989_v53, %v64_v44  ;;  %vm84_vm6 = vweird.f32 %v989_v53  ;;  %v92_v4 = vmul.f32 %v985_v45, %v91_v62  ;;  %vm105_vm12 = vmor %vm103_vm10, %vm104_vm11 }
 0x105   :  { %v76_v58 = vsel %vm75_vm3, %v983_v42, %v72_v54  ;;  %v99_v63 = vmul.f32 %v987_v52, %v98_v18  ;;  %vm85_vm9 = vmor %vm83_vm8, %vm84_vm6 }
 0x106   :  { %v107_v59 = vmul.f32 %v76_v58, %v1127_v24  ;;  %v79_v60 = vmul.f32 %v989_v53, %v78_v56  ;;  %v96_v9 = vsel %vm1322_vm7, %v985_v45, %v92_v4 }
 0x107   :  { %v100_v24 = vmul.f32 0.5, %v99_v63  ;;  %v109_v12 = vmul.f32 %v96_v9, %v1125_v23  ;;  %v191_v23 = vld [vmem:[%s1866_s4] sm:$0xf] }
 0x108   :  { %v80_v0 = vmul.f32 0.5, %v79_v60  ;;  %v115_v1 = vmul.f32 %v978_v57, %v107_v59  ;;  %v1334_v21 = vperm.slane %v191_v23, 0  ;;  %v1336_v22 = vperm.slane %v191_v23, 1 }
 0x109   :  { %v101_v10 = vsub.f32 1.5, %v100_v24  ;;  %v117_v15 = vmul.f32 %v978_v57, %v109_v12  ;;  %v1344_v30 = vperm.slane %v191_v23, 2  ;;  %v1346_v33 = vperm.slane %v191_v23, 3 }
 0x10a   :  { %v81_v2 = vsub.f32 1.5, %v80_v0  ;;  %v123_v3 = vadd.f32 %v979_v61, %v115_v1 }
 0x10b   :  { %v102_v14 = vmul.f32 %v987_v52, %v101_v10  ;;  %v125_v17 = vadd.f32 %v979_v61, %v117_v15 }
 0x10c   :  { %v82_v6 = vmul.f32 %v989_v53, %v81_v2  ;;  %217 = vmatmul.f32.vlgmr.msra.gmra.mxu0 %v123_v3  ;;  %246 = vmatmul.f32.vlgmr.msra.gmra.mxu1 %v123_v3 }
 0x10d   :  { %275 = vmatmul.f32.vlgmr.msra.gmra.mxu2 %v123_v3  ;;  %304 = vmatmul.f32.vlgmr.msra.gmra.mxu3 %v123_v3  ;;  %v106_v16 = vsel %vm105_vm12, %v987_v52, %v102_v14 }
 0x10e   :  { %v86_v7 = vsel %vm85_vm9, %v989_v53, %v82_v6 }
 0x10f   :  { %v108_v8 = vmul.f32 %v86_v7, %v1137_v32  ;;  %v110_v32 = vmul.f32 %v106_v16, %v1135_v31 }
 0x111   :  { %v116_v11 = vmul.f32 %v978_v57, %v108_v8  ;;  %v118_v19 = vmul.f32 %v978_v57, %v110_v32 }
 0x113   :  { %v124_v13 = vadd.f32 %v979_v61, %v116_v11  ;;  %v126_v20 = vadd.f32 %v979_v61, %v118_v19 }
 0x115   :  { %220 = vmatmul.f32.gmra.mxu0 %v124_v13  ;;  %249 = vmatmul.f32.gmra.mxu1 %v124_v13 }
 0x116   :  { %278 = vmatmul.f32.gmra.mxu2 %v124_v13  ;;  %307 = vmatmul.f32.gmra.mxu3 %v124_v13 }
 0x11d   :  { %223 = vmatmul.f32.gmra.mxu0 %v125_v17  ;;  %252 = vmatmul.f32.gmra.mxu1 %v125_v17 }
 0x11e   :  { %281 = vmatmul.f32.gmra.mxu2 %v125_v17  ;;  %310 = vmatmul.f32.gmra.mxu3 %v125_v17 }
 0x125   :  { %226 = vmatmul.f32.gmra.mxu0 %v126_v20  ;;  %255 = vmatmul.f32.gmra.mxu1 %v126_v20 }
 0x126   :  { %284 = vmatmul.f32.gmra.mxu2 %v126_v20  ;;  %313 = vmatmul.f32.gmra.mxu3 %v126_v20 }
 0x189   :  { %v218_v31 = vpop.f32.mrf.mxu0  ;;  %v247_v25 = vpop.f32.mrf.mxu1 }
 0x18a   :  { %v219_v26 = vadd.f32 %v218_v31, %v1334_v21  ;;  %v248_v27 = vadd.f32 %v247_v25, %v1336_v22 }
 0x18c   :  { %v1340_v28 = vmul.f32 0.70710677, %v219_v26  ;;  %v1342_v29 = vmul.f32 0.70710677, %v248_v27  ;;  %v1364_v54 = vmul.f32 0.5, %v219_v26  ;;  %v1366_v55 = vmul.f32 0.5, %v248_v27 }
 0x18e   :  { %v349_v34 = vand.u32 2147483647, %v1340_v28  ;;  %v350_v35 = vand.u32 2147483647, %v1342_v29 }
 0x190   :  { %v365_v36 = vmul.f32 0.3275911, %v349_v34  ;;  %v781_v37 = vsub.f32 0.0, %v349_v34  ;;  %v366_v38 = vmul.f32 0.3275911, %v350_v35  ;;  %v276_v39 = vpop.f32.mrf.mxu2  ;;  %v305_v40 = vpop.f32.mrf.mxu3  ;;  %v782_v48 = vsub.f32 0.0, %v350_v35 }
 0x191   :  { %v1351_v41 = vadd.f32 %v276_v39, %v1344_v30  ;;  %v1354_v42 = vadd.f32 %v305_v40, %v1346_v33 }
 0x192   :  { %v381_v43 = vadd.f32 1.0, %v365_v36  ;;  %v382_v44 = vadd.f32 1.0, %v366_v38  ;;  %v797_v46 = vmul.f32 %v781_v37, %v349_v34  ;;  %v798_v18 = vmul.f32 %v782_v48, %v350_v35  ;;  %v221_v1 = vpop.f32.mrf.mxu0  ;;  %v250_v5 = vpop.f32.mrf.mxu1 }
 0x193   :  { %v1357_v45 = vmul.f32 0.70710677, %v1351_v41  ;;  %v1360_v47 = vmul.f32 0.70710677, %v1354_v42  ;;  %v1379_v10 = vadd.f32 %v221_v1, %v1334_v21  ;;  %v1382_v14 = vadd.f32 %v250_v5, %v1336_v22 }
 0x194   :  { %990 = vrcp.f32 %v381_v43  ;;  %v406_v49 = vand.u32 2147483647, %v381_v43  ;;  %v408_v51 = vand.u32 2147483648, %v381_v43  ;;  %v813_v52 = vmul.f32 1.442695, %v797_v46 }
 0x195   :  { %992 = vrcp.f32 %v382_v44  ;;  %v351_v50 = vand.u32 2147483647, %v1357_v45  ;;  %v352_v53 = vand.u32 2147483647, %v1360_v47  ;;  %vm402_vm13 = vweird.f32 %v381_v43 }
 0x196   :  { %vm417_vm14 = vweird.f32 %v382_v44  ;;  %v421_v58 = vand.u32 2147483647, %v382_v44  ;;  %vm1368_vm15 = vcmp.eq.f32.partialorder %v406_v49, 8.507059e+37  ;;  %v409_v2 = vor.u32 1.1754944e-38, %v408_v51 }
 0x197   :  { %v367_v56 = vmul.f32 0.3275911, %v351_v50  ;;  %v368_v59 = vmul.f32 0.3275911, %v352_v53  ;;  %v783_v0 = vsub.f32 0.0, %v351_v50  ;;  %994 = vpow2.f32 %v813_v52 }
 0x198   :  { %v423_v6 = vand.u32 2147483648, %v382_v44  ;;  %v815_v7 = vmul.f32 1.442695, %v798_v18  ;;  %v784_v9 = vsub.f32 0.0, %v352_v53  ;;  %vm1384_vm2 = vcmp.eq.f32.partialorder %v421_v58, 8.507059e+37 }
 0x199   :  { %v1372_v63 = vadd.f32 1.0, %v367_v56  ;;  %v1374_v4 = vadd.f32 1.0, %v368_v59  ;;  %v279_v11 = vpop.f32.mrf.mxu2  ;;  %v799_v13 = vmul.f32 %v783_v0, %v351_v50  ;;  %v1397_v26 = vmul.f32 0.70710677, %v1379_v10 }
 0x19a   :  { %v991_v57 = vpop.eup %990  ;;  %v424_v19 = vor.u32 1.1754944e-38, %v423_v6  ;;  %v1390_v20 = vadd.f32 %v279_v11, %v1344_v30  ;;  %v800_v25 = vmul.f32 %v784_v9, %v352_v53  ;;  %v1403_v37 = vmul.f32 0.70710677, %v1382_v14 }
 0x19b   :  { %v993_v60 = vpop.eup %992  ;;  %v398_v61 = vmul.f32 %v991_v57, %v381_v43  ;;  %996 = vrcp.f32 %v1372_v63  ;;  %vm403_vm0 = vweird.f32 %v991_v57  ;;  %v436_v32 = vand.u32 2147483647, %v1372_v63 }
 0x19c   :  { %v413_v3 = vmul.f32 %v993_v60, %v382_v44  ;;  %998 = vrcp.f32 %v1374_v4  ;;  %vm418_vm1 = vweird.f32 %v993_v60  ;;  %vm404_vm3 = vmor %vm402_vm13, %vm403_vm0  ;;  %vm432_vm4 = vweird.f32 %v1372_v63 }
 0x19d   :  { %v399_v24 = vsub.f32 1.0, %v398_v61  ;;  %1000 = vpow2.f32 %v815_v7  ;;  %v1392_v23 = vpop.eup %994  ;;  %vm419_vm5 = vmor %vm417_vm14, %vm418_vm1  ;;  %v438_v35 = vand.u32 2147483648, %v1372_v63  ;;  %v817_v36 = vmul.f32 1.442695, %v799_v13 }
 0x19e   :  { %v414_v8 = vsub.f32 1.0, %v413_v3  ;;  %vm1410_vm6 = vcmp.eq.f32.partialorder %v436_v32, 8.507059e+37  ;;  %v451_v50 = vand.u32 2147483647, %v1374_v4  ;;  %vm447_vm7 = vweird.f32 %v1374_v4 }
 0x19f   :  { %v400_v12 = vmul.f32 %v991_v57, %v399_v24  ;;  %v353_v53 = vand.u32 2147483647, %v1397_v26  ;;  %v453_v58 = vand.u32 2147483648, %v1374_v4  ;;  %v1428_v59 = vand.u32 2147483647, %v1403_v37 }
 0x1a0   :  { %v415_v15 = vmul.f32 %v993_v60, %v414_v8  ;;  %v439_v24 = vor.u32 1.1754944e-38, %v438_v35  ;;  %vm452_vm11 = vcmp.eq.f32.partialorder %v451_v50, 8.507059e+37  ;;  %v819_v32 = vmul.f32 1.442695, %v800_v25 }
 0x1a1   :  { %v401_v17 = vadd.f32 %v991_v57, %v400_v12  ;;  %v997_v27 = vpop.eup %996  ;;  %v369_v62 = vmul.f32 0.3275911, %v353_v53  ;;  %v454_v13 = vor.u32 1.1754944e-38, %v453_v58  ;;  %vm878_vm1 = vcmp.ge.f32.partialorder %v1342_v29, 0.0 }
 0x1a2   :  { %v416_v31 = vadd.f32 %v993_v60, %v415_v15  ;;  %v999_v38 = vpop.eup %998  ;;  %v428_v43 = vmul.f32 %v997_v27, %v1372_v63  ;;  %vm433_vm8 = vweird.f32 %v997_v27 }
 0x1a3   :  { %v405_v34 = vsel %vm404_vm3, %v991_v57, %v401_v17  ;;  %v443_v49 = vmul.f32 %v999_v38, %v1374_v4  ;;  %v1424_v18 = vpop.eup %1000  ;;  %vm448_vm9 = vweird.f32 %v999_v38  ;;  %v1433_v6 = vadd.f32 1.0, %v369_v62  ;;  %vm434_vm10 = vmor %vm432_vm4, %vm433_vm8 }
 0x1a4   :  { %v1407_v39 = vsel %vm1368_vm15, %v409_v2, %v405_v34  ;;  %v420_v40 = vsel %vm419_vm5, %v993_v60, %v416_v31  ;;  %v429_v52 = vsub.f32 1.0, %v428_v43  ;;  %v370_v2 = vmul.f32 0.3275911, %v1428_v59  ;;  %vm449_vm12 = vmor %vm447_vm7, %vm448_vm9 }
 0x1a5   :  { %v637_v44 = vmul.f32 1.0614054, %v1407_v39  ;;  %v1417_v48 = vsel %vm1384_vm2, %v424_v19, %v420_v40  ;;  %v444_v57 = vsub.f32 1.0, %v443_v49  ;;  %1002 = vrcp.f32 %v1433_v6 }
 0x1a6   :  { %v638_v51 = vmul.f32 1.0614054, %v1417_v48  ;;  %v430_v61 = vmul.f32 %v997_v27, %v429_v52  ;;  %v1437_v9 = vadd.f32 1.0, %v370_v2  ;;  %v466_v35 = vand.u32 2147483647, %v1433_v6 }
 0x1a7   :  { %v653_v56 = vadd.f32 -1.4531521, %v637_v44  ;;  %v445_v1 = vmul.f32 %v999_v38, %v444_v57  ;;  %v786_v44 = vsub.f32 0.0, %v1428_v59  ;;  %vm462_vm13 = vweird.f32 %v1433_v6 }
 0x1a8   :  { %v654_v60 = vadd.f32 -1.4531521, %v638_v51  ;;  %v431_v5 = vadd.f32 %v997_v27, %v430_v61  ;;  %1004 = vrcp.f32 %v1437_v9  ;;  %vm1464_vm14 = vcmp.eq.f32.partialorder %v466_v35, 8.507059e+37 }
 0x1a9   :  { %v669_v0 = vmul.f32 %v653_v56, %v1407_v39  ;;  %v446_v8 = vadd.f32 %v999_v38, %v445_v1  ;;  %1006 = vpow2.f32 %v817_v36  ;;  %vm877_vm15 = vcmp.ge.f32.partialorder %v1340_v28, 0.0 }
 0x1aa   :  { %v670_v3 = vmul.f32 %v654_v60, %v1417_v48  ;;  %v435_v12 = vsel %vm434_vm10, %v997_v27, %v431_v5  ;;  %v785_v27 = vsub.f32 0.0, %v353_v53  ;;  %1008 = vpow2.f32 %v819_v32 }
 0x1ab   :  { %v685_v7 = vadd.f32 1.4214138, %v669_v0  ;;  %v1445_v16 = vsel %vm1410_vm6, %v439_v24, %v435_v12  ;;  %v450_v63 = vsel %vm449_vm12, %v999_v38, %v446_v8  ;;  %v468_v38 = vand.u32 2147483648, %v1433_v6  ;;  %v1003_v49 = vpop.eup %1002 }
 0x1ac   :  { %v686_v11 = vadd.f32 1.4214138, %v670_v3  ;;  %v639_v19 = vmul.f32 1.0614054, %v1445_v16  ;;  %v1449_v31 = vsel %vm452_vm11, %v454_v13, %v450_v63  ;;  %v1460_v52 = vmul.f32 %v785_v27, %v353_v53 }
 0x1ad   :  { %v701_v15 = vmul.f32 %v685_v7, %v1407_v39  ;;  %v640_v34 = vmul.f32 1.0614054, %v1449_v31  ;;  %v458_v57 = vmul.f32 %v1003_v49, %v1433_v6  ;;  %v481_v60 = vand.u32 2147483647, %v1437_v9 }
 0x1ae   :  { %v702_v17 = vmul.f32 %v686_v11, %v1417_v48  ;;  %v655_v43 = vadd.f32 -1.4531521, %v639_v19  ;;  %v469_v0 = vor.u32 1.1754944e-38, %v468_v38  ;;  %vm477_vm0 = vweird.f32 %v1437_v9  ;;  %v1005_v53 = vpop.eup %1004 }
 0x1af   :  { %v717_v4 = vadd.f32 -0.28449672, %v701_v15  ;;  %v656_v46 = vadd.f32 -1.4531521, %v640_v34  ;;  %v459_v3 = vsub.f32 1.0, %v458_v57  ;;  %v483_v5 = vand.u32 2147483648, %v1437_v9  ;;  %v1007_v24 = vpop.eup %1006 }
 0x1b0   :  { %v718_v40 = vadd.f32 -0.28449672, %v702_v17  ;;  %v671_v51 = vmul.f32 %v655_v43, %v1445_v16  ;;  %vm463_vm2 = vweird.f32 %v1003_v49  ;;  %v473_v11 = vmul.f32 %v1005_v53, %v1437_v9  ;;  %v1009_v12 = vpop.eup %1008 }
 0x1b1   :  { %v733_v25 = vmul.f32 %v717_v4, %v1407_v39  ;;  %v672_v36 = vmul.f32 %v656_v46, %v1449_v31  ;;  %vm1479_vm3 = vcmp.eq.f32.partialorder %v481_v60, 8.507059e+37  ;;  %vm478_vm4 = vweird.f32 %v1005_v53  ;;  %vm464_vm5 = vmor %vm462_vm13, %vm463_vm2 }
 0x1b2   :  { %v734_v50 = vmul.f32 %v718_v40, %v1417_v48  ;;  %v687_v62 = vadd.f32 1.4214138, %v671_v51  ;;  %v474_v19 = vsub.f32 1.0, %v473_v11  ;;  %v484_v46 = vor.u32 1.1754944e-38, %v483_v5  ;;  %vm479_vm6 = vmor %vm477_vm0, %vm478_vm4  ;;  %v308_v5 = vpop.f32.mrf.mxu3 }
 0x1b3   :  { %v749_v56 = vadd.f32 0.2548296, %v733_v25  ;;  %v688_v2 = vadd.f32 1.4214138, %v672_v36  ;;  %v821_v63 = vmul.f32 1.442695, %v1460_v52 }
 0x1b4   :  { %v750_v61 = vadd.f32 0.2548296, %v734_v50  ;;  %v703_v8 = vmul.f32 %v687_v62, %v1445_v16  ;;  %v475_v40 = vmul.f32 %v1005_v53, %v474_v19  ;;  %vm879_vm7 = vcmp.ge.f32.partialorder %v1357_v45, 0.0 }
 0x1b5   :  { %v765_v1 = vmul.f32 %v749_v56, %v1407_v39  ;;  %v704_v15 = vmul.f32 %v688_v2, %v1449_v31  ;;  %v460_v39 = vmul.f32 %v1003_v49, %v459_v3  ;;  %vm880_vm8 = vcmp.ge.f32.partialorder %v1360_v47, 0.0 }
 0x1b6   :  { %v766_v7 = vmul.f32 %v750_v61, %v1417_v48  ;;  %v719_v17 = vadd.f32 -0.28449672, %v703_v8  ;;  %v1485_v48 = vmul.f32 0.70710677, %v1390_v20  ;;  %v476_v36 = vadd.f32 %v1005_v53, %v475_v40 }
 0x1b7   :  { %v845_v13 = vmul.f32 %v1392_v23, %v765_v1  ;;  %v720_v4 = vadd.f32 -0.28449672, %v704_v15  ;;  %v461_v34 = vadd.f32 %v1003_v49, %v460_v39  ;;  %v319_v15 = vmul.f32 0.5, %v1351_v41 }
 0x1b8   :  { %v846_v32 = vmul.f32 %v1424_v18, %v766_v7  ;;  %v735_v23 = vmul.f32 %v719_v17, %v1445_v16  ;;  %v1492_v43 = vand.u32 2147483647, %v1485_v48  ;;  %v320_v17 = vmul.f32 0.5, %v1354_v42 }
 0x1b9   :  { %v861_v27 = vsub.f32 1.0, %v845_v13  ;;  %v736_v38 = vmul.f32 %v720_v4, %v1449_v31  ;;  %v465_v25 = vsel %vm464_vm5, %v1003_v49, %v461_v34  ;;  %vm881_vm13 = vcmp.ge.f32.partialorder %v1397_v26, 0.0 }
 0x1ba   :  { %v862_v35 = vsub.f32 1.0, %v846_v32  ;;  %v751_v51 = vadd.f32 0.2548296, %v735_v23  ;;  %v1497_v56 = vsel %vm1464_vm14, %v469_v0, %v465_v25  ;;  %v371_v49 = vmul.f32 0.3275911, %v1492_v43 }
 0x1bb   :  { %v893_v18 = vsub.f32 0.0, %v861_v27  ;;  %v752_v57 = vadd.f32 0.2548296, %v736_v38  ;;  %v641_v60 = vmul.f32 1.0614054, %v1497_v56  ;;  %v480_v0 = vsel %vm479_vm6, %v1005_v53, %v476_v36 }
 0x1bc   :  { %v894_v50 = vsub.f32 0.0, %v862_v35  ;;  %v767_v58 = vmul.f32 %v751_v51, %v1445_v16  ;;  %v1512_v3 = vsel %vm1479_vm3, %v484_v46, %v480_v0  ;;  %v1516_v11 = vadd.f32 1.0, %v371_v49 }
 0x1bd   :  { %v909_v6 = vsel %vm877_vm15, %v861_v27, %v893_v18  ;;  %v768_v28 = vmul.f32 %v752_v57, %v1449_v31  ;;  %v657_v2 = vadd.f32 -1.4531521, %v641_v60  ;;  %v642_v8 = vmul.f32 1.0614054, %v1512_v3  ;;  %v224_v18 = vpop.f32.mrf.mxu0 }
 0x1be   :  { %v925_v61 = vadd.f32 1.0, %v909_v6  ;;  %v910_v62 = vsel %vm878_vm1, %v862_v35, %v894_v50  ;;  %v847_v7 = vmul.f32 %v1007_v24, %v767_v58  ;;  %1010 = vrcp.f32 %v1516_v11 }
 0x1bf   :  { %v926_v1 = vadd.f32 1.0, %v910_v62  ;;  %v848_v16 = vmul.f32 %v1009_v12, %v768_v28  ;;  %v673_v53 = vmul.f32 %v657_v2, %v1497_v56  ;;  %v658_v13 = vadd.f32 -1.4531521, %v642_v8  ;;  %v253_v28 = vpop.f32.mrf.mxu1 }
 0x1c0   :  { %v941_v9 = vmul.f32 %v925_v61, %v1364_v54  ;;  %v863_v31 = vsub.f32 1.0, %v847_v7  ;;  %v1525_v54 = vadd.f32 %v308_v5, %v1346_v33  ;;  %v802_v12 = vmul.f32 %v786_v44, %v1428_v59 }
 0x1c1   :  { %v942_v29 = vmul.f32 %v926_v1, %v1366_v55  ;;  %v864_v24 = vsub.f32 1.0, %v848_v16  ;;  %v689_v55 = vadd.f32 1.4214138, %v673_v53  ;;  %v674_v32 = vmul.f32 %v658_v13, %v1512_v3 }
 0x1c2   :  { %957 = vst [vmem:[%s1867_s5] sm:$0xff] %v941_v9  ;;  %v895_v39 = vsub.f32 0.0, %v863_v31  ;;  %v1541_v59 = vmul.f32 0.70710677, %v1525_v54  ;;  %v823_v52 = vmul.f32 1.442695, %v802_v12  ;;  %1012 = vpow2.f32 %v821_v63 }
 0x1c3   :  { %958 = vst [vmem:[%s1867_s5 + $0x8] sm:$0xff] %v942_v29  ;;  %v896_v19 = vsub.f32 0.0, %v864_v24  ;;  %v705_v27 = vmul.f32 %v689_v55, %v1497_v56  ;;  %v690_v34 = vadd.f32 1.4214138, %v674_v32  ;;  %v1554_v57 = vadd.f32 %v224_v18, %v1334_v21 }
 0x1c4   :  { %v911_v4 = vsel %vm879_vm7, %v863_v31, %v895_v39  ;;  %v1011_v23 = vpop.eup %1010  ;;  %v1545_v42 = vand.u32 2147483647, %v1541_v59  ;;  %1014 = vpow2.f32 %v823_v52  ;;  %v496_v49 = vand.u32 2147483647, %v1516_v11 }
 0x1c5   :  { %v927_v41 = vadd.f32 1.0, %v911_v4  ;;  %v912_v44 = vsel %vm880_vm8, %v864_v24, %v896_v19  ;;  %v721_v35 = vadd.f32 -0.28449672, %v705_v27  ;;  %v706_v45 = vmul.f32 %v690_v34, %v1512_v3  ;;  %v282_v34 = vpop.f32.mrf.mxu2 }
 0x1c6   :  { %v928_v40 = vadd.f32 1.0, %v912_v44  ;;  %v488_v25 = vmul.f32 %v1011_v23, %v1516_v11  ;;  %v372_v51 = vmul.f32 0.3275911, %v1545_v42  ;;  %v498_v61 = vand.u32 2147483648, %v1516_v11 }
 0x1c7   :  { %v943_v38 = vmul.f32 %v927_v41, %v319_v15  ;;  %v737_v47 = vmul.f32 %v721_v35, %v1497_v56  ;;  %v722_v50 = vadd.f32 -0.28449672, %v706_v45  ;;  %vm493_vm9 = vweird.f32 %v1011_v23 }
 0x1c8   :  { %v944_v46 = vmul.f32 %v928_v40, %v320_v17  ;;  %v489_v6 = vsub.f32 1.0, %v488_v25  ;;  %v1562_v62 = vadd.f32 1.0, %v372_v51  ;;  %v1566_v1 = vmul.f32 0.70710677, %v1554_v57  ;;  %v1013_v2 = vpop.eup %1012 }
 0x1c9   :  { %959 = vst [vmem:[%s1867_s5 + $0x10] sm:$0xff] %v943_v38  ;;  %v753_v36 = vadd.f32 0.2548296, %v737_v47  ;;  %v738_v60 = vmul.f32 %v722_v50, %v1512_v3  ;;  %v787_v9 = vsub.f32 0.0, %v1492_v43  ;;  %vm492_vm10 = vweird.f32 %v1516_v11 }
 0x1ca   :  { %960 = vst [vmem:[%s1867_s5 + $0x18] sm:$0xff] %v944_v46  ;;  %v490_v0 = vmul.f32 %v1011_v23, %v489_v6  ;;  %1016 = vrcp.f32 %v1562_v62  ;;  %vm494_vm11 = vmor %vm492_vm10, %vm493_vm9  ;;  %v1573_v16 = vand.u32 2147483647, %v1566_v1  ;;  %v1576_v53 = vadd.f32 %v253_v28, %v1336_v22  ;;  %v1015_v31 = vpop.eup %1014 }
 0x1cb   :  { %v769_v58 = vmul.f32 %v753_v36, %v1497_v56  ;;  %v754_v5 = vadd.f32 0.2548296, %v738_v60  ;;  %v499_v56 = vor.u32 1.1754944e-38, %v498_v61  ;;  %vm497_vm12 = vcmp.eq.f32.partialorder %v496_v49, 8.507059e+37 }
 0x1cc   :  { %v491_v8 = vadd.f32 %v1011_v23, %v490_v0  ;;  %v803_v15 = vmul.f32 %v787_v9, %v1492_v43  ;;  %v373_v11 = vmul.f32 0.3275911, %v1573_v16  ;;  %v322_v63 = vmul.f32 0.5, %v1382_v14 }
 0x1cd   :  { %v849_v7 = vmul.f32 %v1013_v2, %v769_v58  ;;  %v770_v29 = vmul.f32 %v754_v5, %v1512_v3  ;;  %v321_v3 = vmul.f32 0.5, %v1379_v10  ;;  %v1589_v4 = vmul.f32 0.70710677, %v1576_v53 }
 0x1ce   :  { %v495_v24 = vsel %vm494_vm11, %v1011_v23, %v491_v8  ;;  %v1586_v27 = vadd.f32 1.0, %v373_v11  ;;  %vm882_vm14 = vcmp.ge.f32.partialorder %v1403_v37, 0.0  ;;  %v825_v35 = vmul.f32 1.442695, %v803_v15 }
 0x1cf   :  { %v865_v13 = vsub.f32 1.0, %v849_v7  ;;  %v850_v55 = vmul.f32 %v1015_v31, %v770_v29  ;;  %v1578_v12 = vsel %vm497_vm12, %v499_v56, %v495_v24  ;;  %v511_v23 = vand.u32 2147483647, %v1562_v62 }
 0x1d0   :  { %v643_v32 = vmul.f32 1.0614054, %v1578_v12  ;;  %v1017_v17 = vpop.eup %1016  ;;  %1018 = vrcp.f32 %v1586_v27  ;;  %v1597_v40 = vadd.f32 %v282_v34, %v1344_v30  ;;  %v513_v37 = vand.u32 2147483648, %v1562_v62 }
 0x1d1   :  { %v897_v39 = vsub.f32 0.0, %v865_v13  ;;  %v866_v19 = vsub.f32 1.0, %v850_v55  ;;  %v503_v10 = vmul.f32 %v1017_v17, %v1562_v62  ;;  %v1601_v38 = vand.u32 2147483647, %v1589_v4 }
 0x1d2   :  { %v659_v41 = vadd.f32 -1.4531521, %v643_v32  ;;  %vm508_vm15 = vweird.f32 %v1017_v17  ;;  %v1607_v50 = vmul.f32 0.5, %v1390_v20  ;;  %v788_v51 = vsub.f32 0.0, %v1545_v42 }
 0x1d3   :  { %v913_v43 = vsel %vm881_vm13, %v865_v13, %v897_v39  ;;  %v898_v14 = vsub.f32 0.0, %v866_v19  ;;  %v504_v52 = vsub.f32 1.0, %v503_v10  ;;  %v374_v36 = vmul.f32 0.3275911, %v1601_v38  ;;  %v311_v13 = vpop.f32.mrf.mxu3 }
 0x1d4   :  { %v929_v44 = vadd.f32 1.0, %v913_v43  ;;  %v675_v26 = vmul.f32 %v659_v41, %v1578_v12  ;;  %vm507_vm0 = vweird.f32 %v1562_v62  ;;  %1020 = vpow2.f32 %v825_v35 }
 0x1d5   :  { %v914_v18 = vsel %vm882_vm14, %v866_v19, %v898_v14  ;;  %v505_v46 = vmul.f32 %v1017_v17, %v504_v52  ;;  %vm509_vm1 = vmor %vm507_vm0, %vm508_vm15  ;;  %v514_v58 = vor.u32 1.1754944e-38, %v513_v37  ;;  %v1613_v0 = vadd.f32 1.0, %v374_v36 }
 0x1d6   :  { %v945_v45 = vmul.f32 %v929_v44, %v321_v3  ;;  %v930_v47 = vadd.f32 1.0, %v914_v18  ;;  %v691_v25 = vadd.f32 1.4214138, %v675_v26  ;;  %v1019_v61 = vpop.eup %1018  ;;  %v1616_v28 = vmul.f32 0.70710677, %v1597_v40 }
 0x1d7   :  { %v506_v49 = vadd.f32 %v1017_v17, %v505_v46  ;;  %vm512_vm2 = vcmp.eq.f32.partialorder %v511_v23, 8.507059e+37  ;;  %v518_v5 = vmul.f32 %v1019_v61, %v1586_v27  ;;  %v804_v62 = vmul.f32 %v788_v51, %v1545_v42 }
 0x1d8   :  { %961 = vst [vmem:[%s1867_s5 + $0x20] sm:$0xff] %v945_v45  ;;  %v946_v6 = vmul.f32 %v930_v47, %v322_v63  ;;  %v707_v60 = vmul.f32 %v691_v25, %v1578_v12  ;;  %v789_v7 = vsub.f32 0.0, %v1573_v16  ;;  %1022 = vrcp.f32 %v1613_v0 }
 0x1d9   :  { %v510_v2 = vsel %vm509_vm1, %v1017_v17, %v506_v49  ;;  %v1629_v29 = vmul.f32 0.5, %v1525_v54  ;;  %v519_v31 = vsub.f32 1.0, %v518_v5  ;;  %v1633_v24 = vmul.f32 0.5, %v1554_v57 }
 0x1da   :  { %962 = vst [vmem:[%s1867_s5 + $0x28] sm:$0xff] %v946_v6  ;;  %v723_v20 = vadd.f32 -0.28449672, %v707_v60  ;;  %v1622_v9 = vsel %vm512_vm2, %v514_v58, %v510_v2  ;;  %v526_v55 = vand.u32 2147483647, %v1586_v27  ;;  %v528_v42 = vand.u32 2147483648, %v1586_v27  ;;  %v1021_v54 = vpop.eup %1020 }
 0x1db   :  { %v644_v56 = vmul.f32 1.0614054, %v1622_v9  ;;  %v1638_v15 = vand.u32 2147483647, %v1616_v28  ;;  %v520_v39 = vmul.f32 %v1019_v61, %v519_v31  ;;  %vm523_vm3 = vweird.f32 %v1019_v61 }
 0x1dc   :  { %v739_v8 = vmul.f32 %v723_v20, %v1578_v12  ;;  %vm883_vm4 = vcmp.ge.f32.partialorder %v1485_v48, 0.0  ;;  %v827_v63 = vmul.f32 1.442695, %v804_v62  ;;  %v805_v32 = vmul.f32 %v789_v7, %v1573_v16  ;;  %v227_v7 = vpop.f32.mrf.mxu0 }
 0x1dd   :  { %v660_v3 = vadd.f32 -1.4531521, %v644_v56  ;;  %v375_v57 = vmul.f32 0.3275911, %v1638_v15  ;;  %v1644_v17 = vadd.f32 %v311_v13, %v1346_v33  ;;  %v521_v43 = vadd.f32 %v1019_v61, %v520_v39 }
 0x1de   :  { %v755_v11 = vadd.f32 0.2548296, %v739_v8  ;;  %vm522_vm5 = vweird.f32 %v1586_v27  ;;  %v1023_v41 = vpop.eup %1022  ;;  %vm527_vm7 = vcmp.eq.f32.partialorder %v526_v55, 8.507059e+37  ;;  %v529_v10 = vor.u32 1.1754944e-38, %v528_v42 }
 0x1df   :  { %v676_v34 = vmul.f32 %v660_v3, %v1622_v9  ;;  %vm524_vm6 = vmor %vm522_vm5, %vm523_vm3  ;;  %v790_v44 = vsub.f32 0.0, %v1601_v38  ;;  %v1650_v14 = vadd.f32 1.0, %v375_v57  ;;  %v533_v52 = vmul.f32 %v1023_v41, %v1613_v0 }
 0x1e0   :  { %v771_v19 = vmul.f32 %v755_v11, %v1578_v12  ;;  %v525_v26 = vsel %vm524_vm6, %v1019_v61, %v521_v43  ;;  %v541_v12 = vand.u32 2147483647, %v1613_v0  ;;  %v1658_v27 = vmul.f32 0.70710677, %v1644_v17 }
 0x1e1   :  { %v692_v35 = vadd.f32 1.4214138, %v676_v34  ;;  %v1653_v23 = vsel %vm527_vm7, %v529_v10, %v525_v26  ;;  %1024 = vrcp.f32 %v1650_v14  ;;  %v534_v47 = vsub.f32 1.0, %v533_v52 }
 0x1e2   :  { %v851_v16 = vmul.f32 %v1021_v54, %v771_v19  ;;  %v645_v37 = vmul.f32 1.0614054, %v1653_v23  ;;  %1026 = vpow2.f32 %v827_v63  ;;  %v829_v25 = vmul.f32 1.442695, %v805_v32 }
 0x1e3   :  { %v708_v18 = vmul.f32 %v692_v35, %v1622_v9  ;;  %vm538_vm8 = vweird.f32 %v1023_v41  ;;  %v543_v46 = vand.u32 2147483648, %v1613_v0  ;;  %v535_v60 = vmul.f32 %v1023_v41, %v534_v47 }
 0x1e4   :  { %v867_v45 = vsub.f32 1.0, %v851_v16  ;;  %v661_v6 = vadd.f32 -1.4531521, %v645_v37  ;;  %vm537_vm9 = vweird.f32 %v1613_v0  ;;  %vm1664_vm10 = vcmp.eq.f32.partialorder %v541_v12, 8.507059e+37 }
 0x1e5   :  { %v724_v36 = vadd.f32 -0.28449672, %v708_v18  ;;  %v806_v61 = vmul.f32 %v790_v44, %v1601_v38  ;;  %v1670_v58 = vand.u32 2147483647, %v1658_v27  ;;  %v536_v62 = vadd.f32 %v1023_v41, %v535_v60  ;;  %vm539_vm11 = vmor %vm537_vm9, %vm538_vm8 }
 0x1e6   :  { %v899_v51 = vsub.f32 0.0, %v867_v45  ;;  %v677_v5 = vmul.f32 %v661_v6, %v1653_v23  ;;  %v544_v56 = vor.u32 1.1754944e-38, %v543_v46  ;;  %v791_v31 = vsub.f32 0.0, %v1638_v15 }
 0x1e7   :  { %v740_v2 = vmul.f32 %v724_v36, %v1622_v9  ;;  %v1025_v8 = vpop.eup %1024  ;;  %v376_v38 = vmul.f32 0.3275911, %v1670_v58  ;;  %v540_v42 = vsel %vm539_vm11, %v1023_v41, %v536_v62  ;;  %vm884_vm12 = vcmp.ge.f32.partialorder %v1541_v59, 0.0 }
 0x1e8   :  { %v915_v20 = vsel %vm883_vm4, %v867_v45, %v899_v51  ;;  %v693_v55 = vadd.f32 1.4214138, %v677_v5  ;;  %v548_v48 = vmul.f32 %v1025_v8, %v1650_v14  ;;  %v1027_v11 = vpop.eup %1026  ;;  %v1684_v39 = vsel %vm1664_vm10, %v544_v56, %v540_v42  ;;  %v256_v51 = vpop.f32.mrf.mxu1 }
 0x1e9   :  { %v931_v0 = vadd.f32 1.0, %v915_v20  ;;  %v756_v13 = vadd.f32 0.2548296, %v740_v2  ;;  %v1686_v54 = vadd.f32 1.0, %v376_v38  ;;  %v1689_v63 = vadd.f32 %v227_v7, %v1334_v21 }
 0x1ea   :  { %v709_v57 = vmul.f32 %v693_v55, %v1653_v23  ;;  %v646_v19 = vmul.f32 1.0614054, %v1684_v39  ;;  %v549_v34 = vsub.f32 1.0, %v548_v48  ;;  %vm553_vm13 = vweird.f32 %v1025_v8 }
 0x1eb   :  { %v947_v3 = vmul.f32 %v931_v0, %v1607_v50  ;;  %v772_v32 = vmul.f32 %v756_v13, %v1622_v9  ;;  %v556_v50 = vand.u32 2147483647, %v1650_v14  ;;  %v558_v43 = vand.u32 2147483648, %v1650_v14 }
 0x1ec   :  { %1028 = vrcp.f32 %v1686_v54  ;;  %v725_v41 = vadd.f32 -0.28449672, %v709_v57  ;;  %v662_v10 = vadd.f32 -1.4531521, %v646_v19  ;;  %v550_v9 = vmul.f32 %v1025_v8, %v549_v34 }
 0x1ed   :  { %963 = vst [vmem:[%s1867_s5 + $0x30] sm:$0xff] %v947_v3  ;;  %v852_v21 = vmul.f32 %v1027_v11, %v772_v32  ;;  %1030 = vpow2.f32 %v829_v25  ;;  %v831_v44 = vmul.f32 1.442695, %v806_v61  ;;  %vm552_vm14 = vweird.f32 %v1650_v14 }
 0x1ee   :  { %v1702_v16 = vmul.f32 0.70710677, %v1689_v63  ;;  %v741_v26 = vmul.f32 %v725_v41, %v1653_v23  ;;  %v678_v52 = vmul.f32 %v662_v10, %v1684_v39  ;;  %v551_v12 = vadd.f32 %v1025_v8, %v550_v9  ;;  %vm554_vm15 = vmor %vm552_vm14, %vm553_vm13 }
 0x1ef   :  { %v868_v35 = vsub.f32 1.0, %v852_v21  ;;  %vm557_vm0 = vcmp.eq.f32.partialorder %v556_v50, 8.507059e+37  ;;  %v559_v45 = vor.u32 1.1754944e-38, %v558_v43  ;;  %v807_v18 = vmul.f32 %v791_v31, %v1638_v15 }
 0x1f0   :  { %v1709_v37 = vand.u32 2147483647, %v1702_v16  ;;  %v757_v14 = vadd.f32 0.2548296, %v741_v26  ;;  %v694_v25 = vadd.f32 1.4214138, %v678_v52  ;;  %v555_v46 = vsel %vm554_vm15, %v1025_v8, %v551_v12 }
 0x1f1   :  { %v900_v47 = vsub.f32 0.0, %v868_v35  ;;  %vm885_vm1 = vcmp.ge.f32.partialorder %v1566_v1, 0.0  ;;  %1032 = vpow2.f32 %v831_v44  ;;  %v1712_v6 = vsel %vm557_vm0, %v559_v45, %v555_v46 }
 0x1f2   :  { %v1029_v36 = vpop.eup %1028  ;;  %v377_v60 = vmul.f32 0.3275911, %v1709_v37  ;;  %v773_v15 = vmul.f32 %v757_v14, %v1653_v23  ;;  %v710_v61 = vmul.f32 %v694_v25, %v1684_v39  ;;  %v647_v20 = vmul.f32 1.0614054, %v1712_v6 }
 0x1f3   :  { %v916_v49 = vsel %vm884_vm12, %v868_v35, %v900_v47  ;;  %v1031_v2 = vpop.eup %1030  ;;  %v563_v62 = vmul.f32 %v1029_v36, %v1686_v54  ;;  %v1724_v8 = vadd.f32 %v256_v51, %v1336_v22  ;;  %v833_v59 = vmul.f32 1.442695, %v807_v18 }
 0x1f4   :  { %v932_v5 = vadd.f32 1.0, %v916_v49  ;;  %v1721_v7 = vadd.f32 1.0, %v377_v60  ;;  %v853_v0 = vmul.f32 %v1031_v2, %v773_v15  ;;  %v726_v56 = vadd.f32 -0.28449672, %v710_v61  ;;  %v285_v49 = vpop.f32.mrf.mxu2 }
 0x1f5   :  { %v663_v31 = vadd.f32 -1.4531521, %v647_v20  ;;  %v1728_v23 = vmul.f32 0.5, %v1576_v53  ;;  %v564_v13 = vsub.f32 1.0, %v563_v62  ;;  %v573_v22 = vand.u32 2147483648, %v1686_v54 }
 0x1f6   :  { %v948_v38 = vmul.f32 %v932_v5, %v1629_v29  ;;  %1034 = vrcp.f32 %v1721_v7  ;;  %v869_v55 = vsub.f32 1.0, %v853_v0  ;;  %v742_v42 = vmul.f32 %v726_v56, %v1684_v39 }
 0x1f7   :  { %v679_v48 = vmul.f32 %v663_v31, %v1712_v6  ;;  %v1033_v11 = vpop.eup %1032  ;;  %v565_v3 = vmul.f32 %v1029_v36, %v564_v13  ;;  %vm568_vm2 = vweird.f32 %v1029_v36  ;;  %v571_v53 = vand.u32 2147483647, %v1686_v54 }
 0x1f8   :  { %964 = vst [vmem:[%s1867_s5 + $0x38] sm:$0xff] %v948_v38  ;;  %v1739_v29 = vmul.f32 0.70710677, %v1724_v8  ;;  %v901_v32 = vsub.f32 0.0, %v869_v55  ;;  %v758_v57 = vadd.f32 0.2548296, %v742_v42  ;;  %1036 = vpow2.f32 %v833_v59  ;;  %v314_v59 = vpop.f32.mrf.mxu3 }
 0x1f9   :  { %v695_v19 = vadd.f32 1.4214138, %v679_v48  ;;  %v566_v34 = vadd.f32 %v1029_v36, %v565_v3  ;;  %vm567_vm3 = vweird.f32 %v1686_v54  ;;  %v792_v50 = vsub.f32 0.0, %v1670_v58 }
 0x1fa   :  { %v1744_v43 = vand.u32 2147483647, %v1739_v29  ;;  %v917_v21 = vsel %vm885_vm1, %v869_v55, %v901_v32  ;;  %v774_v41 = vmul.f32 %v758_v57, %v1684_v39  ;;  %vm569_vm4 = vmor %vm567_vm3, %vm568_vm2  ;;  %v574_v9 = vor.u32 1.1754944e-38, %v573_v22 }
 0x1fb   :  { %v711_v10 = vmul.f32 %v695_v19, %v1712_v6  ;;  %v933_v35 = vadd.f32 1.0, %v917_v21  ;;  %v570_v26 = vsel %vm569_vm4, %v1029_v36, %v566_v34  ;;  %vm572_vm5 = vcmp.eq.f32.partialorder %v571_v53, 8.507059e+37 }
 0x1fc   :  { %v1035_v44 = vpop.eup %1034  ;;  %v378_v54 = vmul.f32 0.3275911, %v1744_v43  ;;  %v854_v52 = vmul.f32 %v1033_v11, %v774_v41  ;;  %v1751_v45 = vsel %vm572_vm5, %v574_v9, %v570_v26  ;;  %v808_v47 = vmul.f32 %v792_v50, %v1670_v58 }
 0x1fd   :  { %v727_v12 = vadd.f32 -0.28449672, %v711_v10  ;;  %v578_v18 = vmul.f32 %v1035_v44, %v1721_v7  ;;  %v949_v1 = vmul.f32 %v933_v35, %v1633_v24  ;;  %v648_v39 = vmul.f32 1.0614054, %v1751_v45 }
 0x1fe   :  { %v1757_v14 = vadd.f32 1.0, %v378_v54  ;;  %v1037_v25 = vpop.eup %1036  ;;  %v870_v46 = vsub.f32 1.0, %v854_v52  ;;  %v1760_v51 = vmul.f32 0.5, %v1597_v40  ;;  %v586_v15 = vand.u32 2147483647, %v1721_v7 }
 0x1ff   :  { %v743_v36 = vmul.f32 %v727_v12, %v1712_v6  ;;  %v579_v60 = vsub.f32 1.0, %v578_v18  ;;  %965 = vst [vmem:[%s1867_s5 + $0x40] sm:$0xff] %v949_v1  ;;  %v664_v24 = vadd.f32 -1.4531521, %v648_v39  ;;  %v588_v58 = vand.u32 2147483648, %v1721_v7 }
 0x200   :  { %1038 = vrcp.f32 %v1757_v14  ;;  %v902_v61 = vsub.f32 0.0, %v870_v46  ;;  %vm583_vm6 = vweird.f32 %v1035_v44  ;;  %vm886_vm7 = vcmp.ge.f32.partialorder %v1589_v4, 0.0 }
 0x201   :  { %v759_v20 = vadd.f32 0.2548296, %v743_v36  ;;  %v580_v2 = vmul.f32 %v1035_v44, %v579_v60  ;;  %v680_v40 = vmul.f32 %v664_v24, %v1751_v45  ;;  %v835_v5 = vmul.f32 1.442695, %v808_v47 }
 0x202   :  { %v1772_v62 = vadd.f32 %v285_v49, %v1344_v30  ;;  %v918_v0 = vsel %vm886_vm7, %v870_v46, %v902_v61  ;;  %vm582_vm8 = vweird.f32 %v1721_v7  ;;  %v589_v55 = vor.u32 1.1754944e-38, %v588_v58 }
 0x203   :  { %v775_v56 = vmul.f32 %v759_v20, %v1712_v6  ;;  %v581_v31 = vadd.f32 %v1035_v44, %v580_v2  ;;  %v934_v38 = vadd.f32 1.0, %v918_v0  ;;  %v696_v13 = vadd.f32 1.4214138, %v680_v40  ;;  %vm584_vm9 = vmor %vm582_vm8, %vm583_vm6 }
 0x204   :  { %v793_v42 = vsub.f32 0.0, %v1709_v37  ;;  %vm587_vm10 = vcmp.eq.f32.partialorder %v586_v15, 8.507059e+37  ;;  %v1778_v22 = vmul.f32 0.70710677, %v1772_v62  ;;  %v1785_v7 = vadd.f32 %v314_v59, %v1346_v33 }
 0x205   :  { %v855_v4 = vmul.f32 %v1037_v25, %v775_v56  ;;  %v585_v48 = vsel %vm584_vm9, %v1035_v44, %v581_v31  ;;  %v950_v11 = vmul.f32 %v934_v38, %v1728_v23  ;;  %v712_v6 = vmul.f32 %v696_v13, %v1751_v45 }
 0x206   :  { %v1039_v30 = vpop.eup %1038  ;;  %v1782_v3 = vsel %vm587_vm10, %v589_v55, %v585_v48  ;;  %vm887_vm11 = vcmp.ge.f32.partialorder %v1616_v28, 0.0  ;;  %1040 = vpow2.f32 %v835_v5  ;;  %v809_v23 = vmul.f32 %v793_v42, %v1709_v37 }
 0x207   :  { %v871_v53 = vsub.f32 1.0, %v855_v4  ;;  %v649_v32 = vmul.f32 1.0614054, %v1782_v3  ;;  %v593_v57 = vmul.f32 %v1039_v30, %v1757_v14  ;;  %966 = vst [vmem:[%s1867_s5 + $0x48] sm:$0xff] %v950_v11  ;;  %v728_v19 = vadd.f32 -0.28449672, %v712_v6 }
 0x208   :  { %v1795_v34 = vand.u32 2147483647, %v1778_v22  ;;  %v601_v41 = vand.u32 2147483647, %v1757_v14  ;;  %v603_v9 = vand.u32 2147483648, %v1757_v14  ;;  %vm598_vm12 = vweird.f32 %v1039_v30 }
 0x209   :  { %v903_v33 = vsub.f32 0.0, %v871_v53  ;;  %v665_v50 = vadd.f32 -1.4531521, %v649_v32  ;;  %v594_v21 = vsub.f32 1.0, %v593_v57  ;;  %v744_v10 = vmul.f32 %v728_v19, %v1751_v45 }
 0x20a   :  { %v379_v44 = vmul.f32 0.3275911, %v1795_v34  ;;  %v1802_v35 = vmul.f32 0.70710677, %v1785_v7  ;;  %v837_v18 = vmul.f32 1.442695, %v809_v23  ;;  %vm597_vm13 = vweird.f32 %v1757_v14 }
 0x20b   :  { %v919_v37 = vsel %vm887_vm11, %v871_v53, %v903_v33  ;;  %v681_v26 = vmul.f32 %v665_v50, %v1782_v3  ;;  %v595_v54 = vmul.f32 %v1039_v30, %v594_v21  ;;  %v760_v12 = vadd.f32 0.2548296, %v744_v10  ;;  %vm599_vm14 = vmor %vm597_vm13, %vm598_vm12 }
 0x20c   :  { %v935_v52 = vadd.f32 1.0, %v919_v37  ;;  %v395_v1 = vadd.f32 1.0, %v379_v44  ;;  %v1809_v25 = vand.u32 2147483647, %v1802_v35  ;;  %v1041_v46 = vpop.eup %1040  ;;  %v604_v60 = vor.u32 1.1754944e-38, %v603_v9 }
 0x20d   :  { %v697_v39 = vadd.f32 1.4214138, %v681_v26  ;;  %v596_v47 = vadd.f32 %v1039_v30, %v595_v54  ;;  %v776_v28 = vmul.f32 %v760_v12, %v1751_v45  ;;  %vm602_vm15 = vcmp.eq.f32.partialorder %v601_v41, 8.507059e+37 }
 0x20e   :  { %v951_v36 = vmul.f32 %v935_v52, %v1760_v51  ;;  %1042 = vrcp.f32 %v395_v1  ;;  %v794_v58 = vsub.f32 0.0, %v1744_v43  ;;  %v380_v61 = vmul.f32 0.3275911, %v1809_v25 }
 0x20f   :  { %v713_v49 = vmul.f32 %v697_v39, %v1782_v3  ;;  %v600_v24 = vsel %vm599_vm14, %v1039_v30, %v596_v47  ;;  %v856_v14 = vmul.f32 %v1041_v46, %v776_v28  ;;  %1044 = vpow2.f32 %v837_v18 }
 0x210   :  { %967 = vst [vmem:[%s1867_s5 + $0x50] sm:$0xff] %v951_v36  ;;  %v605_v15 = vsel %vm602_vm15, %v604_v60, %v600_v24  ;;  %v1819_v2 = vadd.f32 1.0, %v380_v61  ;;  %v810_v31 = vmul.f32 %v794_v58, %v1744_v43  ;;  %vm888_vm0 = vcmp.ge.f32.partialorder %v1658_v27, 0.0 }
 0x211   :  { %v729_v51 = vadd.f32 -0.28449672, %v713_v49  ;;  %v650_v20 = vmul.f32 1.0614054, %v605_v15  ;;  %v872_v45 = vsub.f32 1.0, %v856_v14  ;;  %v328_v55 = vmul.f32 0.5, %v1644_v17 }
 0x212   :  { %1046 = vrcp.f32 %v1819_v2  ;;  %v839_v53 = vmul.f32 1.442695, %v810_v31  ;;  %v616_v32 = vand.u32 2147483647, %v395_v1  ;;  %v618_v43 = vand.u32 2147483648, %v395_v1 }
 0x213   :  { %v745_v40 = vmul.f32 %v729_v51, %v1782_v3  ;;  %v666_v5 = vadd.f32 -1.4531521, %v650_v20  ;;  %v904_v56 = vsub.f32 0.0, %v872_v45  ;;  %vm889_vm2 = vcmp.ge.f32.partialorder %v1702_v16, 0.0 }
 0x214   :  { %v1043_v0 = vpop.eup %1042  ;;  %vm612_vm3 = vweird.f32 %v395_v1  ;;  %1048 = vpow2.f32 %v839_v53  ;;  %vm617_vm5 = vcmp.eq.f32.partialorder %v616_v32, 8.507059e+37  ;;  %v619_v41 = vor.u32 1.1754944e-38, %v618_v43 }
 0x215   :  { %v761_v59 = vadd.f32 0.2548296, %v745_v40  ;;  %v682_v38 = vmul.f32 %v666_v5, %v605_v15  ;;  %v608_v13 = vmul.f32 %v1043_v0, %v395_v1  ;;  %v920_v42 = vsel %vm888_vm0, %v872_v45, %v904_v56  ;;  %v1045_v6 = vpop.eup %1044 }
 0x216   :  { %v936_v4 = vadd.f32 1.0, %v920_v42  ;;  %vm613_vm1 = vweird.f32 %v1043_v0  ;;  %v795_v10 = vsub.f32 0.0, %v1795_v34  ;;  %v631_v52 = vand.u32 2147483647, %v1819_v2 }
 0x217   :  { %v777_v48 = vmul.f32 %v761_v59, %v1782_v3  ;;  %v698_v30 = vadd.f32 1.4214138, %v682_v38  ;;  %v609_v11 = vsub.f32 1.0, %v608_v13  ;;  %vm614_vm4 = vmor %vm612_vm3, %vm613_vm1  ;;  %v633_v12 = vand.u32 2147483648, %v1819_v2 }
 0x218   :  { %v952_v57 = vmul.f32 %v936_v4, %v328_v55  ;;  %v1047_v33 = vpop.eup %1046  ;;  %v329_v46 = vmul.f32 0.5, %v1689_v63  ;;  %vm627_vm7 = vweird.f32 %v1819_v2  ;;  %v811_v58 = vmul.f32 %v795_v10, %v1795_v34 }
 0x219   :  { %v857_v19 = vmul.f32 %v1045_v6, %v777_v48  ;;  %v714_v23 = vmul.f32 %v698_v30, %v605_v15  ;;  %v610_v27 = vmul.f32 %v1043_v0, %v609_v11  ;;  %v623_v21 = vmul.f32 %v1047_v33, %v1819_v2 }
 0x21a   :  { %968 = vst [vmem:[%s1867_s5 + $0x58] sm:$0xff] %v952_v57  ;;  %vm628_vm6 = vweird.f32 %v1047_v33  ;;  %v1049_v24 = vpop.eup %1048  ;;  %v634_v61 = vor.u32 1.1754944e-38, %v633_v12  ;;  %vm632_vm9 = vcmp.eq.f32.partialorder %v631_v52, 8.507059e+37  ;;  %v841_v5 = vmul.f32 1.442695, %v811_v58 }
 0x21b   :  { %v873_v17 = vsub.f32 1.0, %v857_v19  ;;  %v730_v3 = vadd.f32 -0.28449672, %v714_v23  ;;  %v611_v50 = vadd.f32 %v1043_v0, %v610_v27  ;;  %v624_v26 = vsub.f32 1.0, %v623_v21  ;;  %vm629_vm8 = vmor %vm627_vm7, %vm628_vm6 }
 0x21c   :  { %vm890_vm10 = vcmp.ge.f32.partialorder %v1739_v29, 0.0  ;;  %v330_v55 = vmul.f32 0.5, %v1724_v8  ;;  %1050 = vpow2.f32 %v841_v5  ;;  %vm891_vm11 = vcmp.ge.f32.partialorder %v1778_v22, 0.0 }
 0x21d   :  { %v905_v9 = vsub.f32 0.0, %v873_v17  ;;  %v746_v44 = vmul.f32 %v730_v3, %v605_v15  ;;  %v615_v37 = vsel %vm614_vm4, %v1043_v0, %v611_v50  ;;  %v625_v47 = vmul.f32 %v1047_v33, %v624_v26 }
 0x21e   :  { %v620_v54 = vsel %vm617_vm5, %v619_v41, %v615_v37  ;;  %v331_v50 = vmul.f32 0.5, %v1772_v62  ;;  %vm892_vm12 = vcmp.ge.f32.partialorder %v1802_v35, 0.0  ;;  %v332_v37 = vmul.f32 0.5, %v1785_v7 }
 0x21f   :  { %v921_v18 = vsel %vm889_vm2, %v873_v17, %v905_v9  ;;  %v762_v1 = vadd.f32 0.2548296, %v746_v44  ;;  %v651_v39 = vmul.f32 1.0614054, %v620_v54  ;;  %v626_v49 = vadd.f32 %v1047_v33, %v625_v47 }
 0x220   :  { %v937_v36 = vadd.f32 1.0, %v921_v18 }
 0x221   :  { %v778_v28 = vmul.f32 %v762_v1, %v605_v15  ;;  %v667_v60 = vadd.f32 -1.4531521, %v651_v39  ;;  %v630_v20 = vsel %vm629_vm8, %v1047_v33, %v626_v49  ;;  %v796_v15 = vsub.f32 0.0, %v1809_v25 }
 0x222   :  { %v953_v14 = vmul.f32 %v937_v36, %v329_v46  ;;  %v635_v63 = vsel %vm632_vm9, %v634_v61, %v630_v20 }
 0x223   :  { %v858_v16 = vmul.f32 %v1049_v24, %v778_v28  ;;  %v683_v51 = vmul.f32 %v667_v60, %v620_v54  ;;  %v652_v40 = vmul.f32 1.0614054, %v635_v63  ;;  %v812_v31 = vmul.f32 %v796_v15, %v1809_v25  ;;  %v1051_v25 = vpop.eup %1050 }
 0x224   :  { %969 = vst [vmem:[%s1867_s5 + $0x60] sm:$0xff] %v953_v14 }
 0x225   :  { %v874_v45 = vsub.f32 1.0, %v858_v16  ;;  %v699_v2 = vadd.f32 1.4214138, %v683_v51  ;;  %v668_v56 = vadd.f32 -1.4531521, %v652_v40 }
 0x226   :  { %v843_v11 = vmul.f32 1.442695, %v812_v31 }
 0x227   :  { %v906_v0 = vsub.f32 0.0, %v874_v45  ;;  %v715_v34 = vmul.f32 %v699_v2, %v620_v54  ;;  %v684_v13 = vmul.f32 %v668_v56, %v635_v63 }
 0x228   :  { %1052 = vpow2.f32 %v843_v11 }
 0x229   :  { %v922_v59 = vsel %vm890_vm10, %v874_v45, %v906_v0  ;;  %v731_v38 = vadd.f32 -0.28449672, %v715_v34  ;;  %v700_v48 = vadd.f32 1.4214138, %v684_v13 }
 0x22a   :  { %v938_v42 = vadd.f32 1.0, %v922_v59 }
 0x22b   :  { %v747_v4 = vmul.f32 %v731_v38, %v620_v54  ;;  %v716_v53 = vmul.f32 %v700_v48, %v635_v63 }
 0x22c   :  { %v954_v30 = vmul.f32 %v938_v42, %v330_v55 }
 0x22d   :  { %v763_v6 = vadd.f32 0.2548296, %v747_v4  ;;  %v732_v32 = vadd.f32 -0.28449672, %v716_v53 }
 0x22e   :  { %970 = vst [vmem:[%s1867_s5 + $0x68] sm:$0xff] %v954_v30  ;;  %v1053_v33 = vpop.eup %1052 }
 0x22f   :  { %v779_v29 = vmul.f32 %v763_v6, %v620_v54  ;;  %v748_v57 = vmul.f32 %v732_v32, %v635_v63 }
 0x231   :  { %v859_v43 = vmul.f32 %v1051_v25, %v779_v29  ;;  %v764_v8 = vadd.f32 0.2548296, %v748_v57 }
 0x233   :  { %v875_v19 = vsub.f32 1.0, %v859_v43  ;;  %v780_v27 = vmul.f32 %v764_v8, %v635_v63 }
 0x235   :  { %v907_v23 = vsub.f32 0.0, %v875_v19  ;;  %v860_v3 = vmul.f32 %v1053_v33, %v780_v27 }
 0x237   :  { %v923_v17 = vsel %vm891_vm11, %v875_v19, %v907_v23  ;;  %v876_v41 = vsub.f32 1.0, %v860_v3 }
 0x238   :  { %v939_v21 = vadd.f32 1.0, %v923_v17 }
 0x239   :  { %v908_v9 = vsub.f32 0.0, %v876_v41 }
 0x23a   :  { %v955_v10 = vmul.f32 %v939_v21, %v331_v50 }
 0x23b   :  { %v924_v44 = vsel %vm892_vm12, %v876_v41, %v908_v9 }
 0x23c   :  { %971 = vst [vmem:[%s1867_s5 + $0x70] sm:$0xff] %v955_v10  ;;  %v940_v26 = vadd.f32 1.0, %v924_v44 }
 0x23e   :  { %v956_v54 = vmul.f32 %v940_v26, %v332_v37 }
 0x240   :  { %972 = vst [vmem:[%s1867_s5 + $0x78] sm:$0xff] %v956_v54 }

</bundles_post_ra>
